<compile_context>
chip_gen: v7x
topology: tpu7x:2x2x1
jax: 0.10.0
libtpu: 0.0.40
codegen_flags: <defaults>
</compile_context>

<pallas_src>
import math
import numpy as np
import jax
import jax.numpy as jnp
from jax.experimental import pallas as pl
from jax.experimental.pallas import tpu as pltpu

# ---------------- tiny synthetic T5-style decoder config ----------------
VOCAB        = 32
D_MODEL      = 64
N_HEADS      = 4
D_KV         = 16
D_FF         = 128
N_LAYERS     = 2
REL_BUCKETS  = 8
REL_MAX_DIST = 16
EPS          = 1e-6
OUT_SCALE    = 768.0 ** (-0.5)   # literal constant from the PyTorch forward
HD           = N_HEADS * D_KV    # == D_MODEL
V_PAD        = 128               # lane-dense logits width (VOCAB padded to 128)

# TODO(synk): dropout layers of T5 are omitted (eval-mode semantics); the
# pretrained checkpoint is replaced by deterministic random init of this
# tiny T5-style config.


# ----------------------------- kernel helpers ----------------------------
def _rmsnorm(x, w_row):
    # T5 LayerNorm: no mean subtraction, no bias.  w_row is (1, D).  f32 math.
    var = jnp.mean(x * x, axis=-1, keepdims=True)
    return x * jax.lax.rsqrt(var + EPS) * w_row


def decoder_kernel(emb_ref, enc_ref, bias_ref,
                   ln1_ref, wq_ref, wk_ref, wv_ref, wo_ref,
                   ln2_ref, cq_ref, ck_ref, cv_ref, co_ref,
                   ln3_ref, wi_ref, wf_ref,
                   fln_ref, lmh_ref,
                   out_ref):
    # One grid step == one batch element (grid axis is "parallel" for v7x).
    x = emb_ref[0]                      # (T, D) f32 residual stream
    enc_bf = enc_ref[0]                 # (S, D) bf16 encoder states
    bias = bias_ref[...]                # (H, T, T) f32, causal mask pre-folded

    def attention(q_in_bf, kv_in_bf, wq, wk, wv, wo, att_bias):
        # Dense bf16 projections (full H*Dkv lane width), f32 accumulation.
        q = jnp.dot(q_in_bf, wq, preferred_element_type=jnp.float32).astype(jnp.bfloat16)
        k = jnp.dot(kv_in_bf, wk, preferred_element_type=jnp.float32).astype(jnp.bfloat16)
        v = jnp.dot(kv_in_bf, wv, preferred_element_type=jnp.float32).astype(jnp.bfloat16)
        ctx_heads = []
        for hh in range(N_HEADS):                       # static unroll over heads
            sl = slice(hh * D_KV, (hh + 1) * D_KV)
            # scores: q_h @ k_h^T  (T5 attention has NO 1/sqrt(d_k) scaling)
            s = jax.lax.dot_general(q[:, sl], k[:, sl],
                                    (((1,), (1,)), ((), ())),
                                    preferred_element_type=jnp.float32)
            if att_bias is not None:
                s = s + att_bias[hh]
            m = jnp.max(s, axis=-1, keepdims=True)
            e = jnp.exp(s - m)
            p = e * pl.reciprocal(jnp.sum(e, axis=-1, keepdims=True), approx=True)
            ctx_heads.append(jnp.dot(p.astype(jnp.bfloat16), v[:, sl],
                                     preferred_element_type=jnp.float32))
        # concat heads along lanes -> single dense (T, H*Dkv)@(H*Dkv, D) matmul
        ctx = jnp.concatenate(ctx_heads, axis=-1).astype(jnp.bfloat16)
        return jnp.dot(ctx, wo, preferred_element_type=jnp.float32)

    # TODO(synk): at realistic T/D, tile the key axis so score tiles are
    # lane-dense (multiple of 128) and pipeline layers over a grid axis
    # (v7x has only 64 MiB VMEM).
    for l in range(N_LAYERS):                           # static unroll over layers
        # ---- self attention (causal + shared relative-position bias) ----
        h = _rmsnorm(x, ln1_ref[l]).astype(jnp.bfloat16)
        x = x + attention(h, h, wq_ref[l], wk_ref[l], wv_ref[l], wo_ref[l], bias)
        # ---- cross attention over encoder hidden states ----
        h = _rmsnorm(x, ln2_ref[l]).astype(jnp.bfloat16)
        x = x + attention(h, enc_bf, cq_ref[l], ck_ref[l], cv_ref[l], co_ref[l], None)
        # ---- feed forward (DenseReluDense) ----
        h = _rmsnorm(x, ln3_ref[l]).astype(jnp.bfloat16)
        ff = jnp.dot(
            jnp.maximum(jnp.dot(h, wi_ref[l], preferred_element_type=jnp.float32),
                        0.0).astype(jnp.bfloat16),
            wf_ref[l], preferred_element_type=jnp.float32)
        x = x + ff

    h = _rmsnorm(x, fln_ref[...]) * OUT_SCALE           # final_layer_norm * 768**-0.5
    out_ref[0] = jnp.dot(h.astype(jnp.bfloat16), lmh_ref[...],
                         preferred_element_type=jnp.float32)   # (T, 128) lane-dense


# ------------------------------- JAX glue --------------------------------
def shift_right(ids, start_id=0, pad_id=0):
    shifted = jnp.concatenate(
        [jnp.full((ids.shape[0], 1), start_id, ids.dtype), ids[:, :-1]], axis=1)
    return jnp.where(shifted == -100, pad_id, shifted)


def _rel_pos_bucket(rel_pos, num_buckets, max_distance):
    # decoder self-attention: bidirectional=False
    rel_pos = -jnp.minimum(rel_pos, 0)
    max_exact = num_buckets // 2
    is_small = rel_pos < max_exact
    rel_f = jnp.maximum(rel_pos.astype(jnp.float32), 1.0)
    rel_large = max_exact + (jnp.log(rel_f / max_exact)
                             / math.log(max_distance / max_exact)
                             * (num_buckets - max_exact)).astype(jnp.int32)
    rel_large = jnp.minimum(rel_large, num_buckets - 1)
    return jnp.where(is_small, rel_pos, rel_large)


def relative_position_bias(q_len, k_len, rel_emb):
    ctx = jnp.arange(q_len)[:, None]
    mem = jnp.arange(k_len)[None, :]
    buckets = _rel_pos_bucket(mem - ctx, REL_BUCKETS, REL_MAX_DIST)
    bias = rel_emb[buckets]                                    # (Tq, Tk, H)
    return jnp.transpose(bias, (2, 0, 1)).astype(jnp.float32)  # (H, Tq, Tk)


def init_params(key):
    ks = jax.random.split(key, 12)
    w = lambda k, shape, s=0.05: jax.random.normal(k, shape, jnp.float32) * s
    p = {
        'embed': w(ks[0], (VOCAB, D_MODEL), 1.0),
        'rel_emb': w(ks[1], (REL_BUCKETS, N_HEADS), 0.1),
        'ln1': jnp.ones((N_LAYERS, D_MODEL), jnp.float32),
        'ln2': jnp.ones((N_LAYERS, D_MODEL), jnp.float32),
        'ln3': jnp.ones((N_LAYERS, D_MODEL), jnp.float32),
        'fln': jnp.ones((1, D_MODEL), jnp.float32),
        'wq': w(ks[2], (N_LAYERS, D_MODEL, HD)),
        'wk': w(ks[3], (N_LAYERS, D_MODEL, HD)),
        'wv': w(ks[4], (N_LAYERS, D_MODEL, HD)),
        'wo': w(ks[5], (N_LAYERS, HD, D_MODEL)),
        'cq': w(ks[6], (N_LAYERS, D_MODEL, HD)),
        'ck': w(ks[7], (N_LAYERS, D_MODEL, HD)),
        'cv': w(ks[8], (N_LAYERS, D_MODEL, HD)),
        'co': w(ks[9], (N_LAYERS, HD, D_MODEL)),
        'wi': w(ks[10], (N_LAYERS, D_MODEL, D_FF)),
        'wf': w(ks[11], (N_LAYERS, D_FF, D_MODEL)),
    }
    p['lmh'] = p['embed'].T    # tied lm_head (T5 tie_word_embeddings=True)
    return p


@jax.jit
def decoder_model_forward(decoder_input_ids, encoder_hidden_states, params):
    B, T = decoder_input_ids.shape
    S = encoder_hidden_states.shape[1]

    ids = shift_right(decoder_input_ids)                    # T5 _shift_right (glue)
    emb = params['embed'][ids]                              # (B, T, D) embedding gather (glue)

    # Relative-position bias with the causal mask folded in (constant glue work).
    # Passed once as (H, T, T); NOT replicated over batch.
    causal = jnp.where(jnp.arange(T)[:, None] >= jnp.arange(T)[None, :],
                       0.0, -1e9).astype(jnp.float32)
    bias = relative_position_bias(T, T, params['rel_emb']) + causal[None]   # (H, T, T)

    # bf16 weights for every matmul input; norm weights stay f32 (elementwise).
    bf = lambda a: a.astype(jnp.bfloat16)
    # lane-dense lm_head: pad VOCAB -> 128 so the output store is unmasked.
    lmh_pad = bf(jnp.zeros((D_MODEL, V_PAD), jnp.float32).at[:, :VOCAB].set(params['lmh']))

    weights = [
        params['ln1'][:, None, :],                                   # (L, 1, D) f32
        bf(params['wq']), bf(params['wk']), bf(params['wv']), bf(params['wo']),
        params['ln2'][:, None, :],
        bf(params['cq']), bf(params['ck']), bf(params['cv']), bf(params['co']),
        params['ln3'][:, None, :],
        bf(params['wi']), bf(params['wf']),
        params['fln'],                                               # (1, D) f32
        lmh_pad,                                                     # (D, 128) bf16
    ]

    def const_spec(arr):
        nd = arr.ndim
        return pl.BlockSpec(arr.shape, lambda b, _nd=nd: (0,) * _nd)

    in_specs = ([pl.BlockSpec((1, T, D_MODEL), lambda b: (b, 0, 0)),   # emb per batch
                 pl.BlockSpec((1, S, D_MODEL), lambda b: (b, 0, 0)),   # enc per batch
                 const_spec(bias)]
                + [const_spec(a) for a in weights])

    # grid=(B,) marked "parallel": shards batch across the 2 TCs on v7x
    # (no-op on v5e/v6e).  Constant-index weight blocks are not re-fetched.
    logits_pad = pl.pallas_call(
        decoder_kernel,
        out_shape=jax.ShapeDtypeStruct((B, T, V_PAD), jnp.float32),
        grid_spec=pltpu.PrefetchScalarGridSpec(
            num_scalar_prefetch=0,
            grid=(B,),
            in_specs=in_specs,
            out_specs=pl.BlockSpec((1, T, V_PAD), lambda b: (b, 0, 0))),
        compiler_params=pltpu.CompilerParams(
            dimension_semantics=("parallel",),
            vmem_limit_bytes=32 * 1024 * 1024),
    )(emb, bf(encoder_hidden_states), bias, *weights)

    return logits_pad[:, :, :VOCAB]


# ---------------------- pure-JAX reference (for check) --------------------
def reference_forward(decoder_input_ids, encoder_hidden_states, params):
    ids = shift_right(decoder_input_ids)
    x = params['embed'][ids]
    B, T, _ = x.shape
    enc = encoder_hidden_states
    bias = relative_position_bias(T, T, params['rel_emb'])
    causal = jnp.where(jnp.arange(T)[:, None] >= jnp.arange(T)[None, :], 0.0, -1e9)

    def rms(y, w):
        var = jnp.mean(y * y, axis=-1, keepdims=True)
        return y * jax.lax.rsqrt(var + EPS) * w

    def attn(hq, hkv, wq, wk, wv, wo, b):
        q = (hq @ wq).reshape(B, hq.shape[1], N_HEADS, D_KV)
        k = (hkv @ wk).reshape(B, hkv.shape[1], N_HEADS, D_KV)
        v = (hkv @ wv).reshape(B, hkv.shape[1], N_HEADS, D_KV)
        s = jnp.einsum('bqhd,bkhd->bhqk', q, k)
        if b is not None:
            s = s + b
        p = jax.nn.softmax(s, axis=-1)
        ctx = jnp.einsum('bhqk,bkhd->bqhd', p, v).reshape(B, hq.shape[1], HD)
        return ctx @ wo

    for l in range(N_LAYERS):
        h = rms(x, params['ln1'][l])
        x = x + attn(h, h, params['wq'][l], params['wk'][l], params['wv'][l],
                     params['wo'][l], bias + causal)
        h = rms(x, params['ln2'][l])
        x = x + attn(h, enc, params['cq'][l], params['ck'][l], params['cv'][l],
                     params['co'][l], None)
        h = rms(x, params['ln3'][l])
        x = x + jnp.maximum(h @ params['wi'][l], 0.0) @ params['wf'][l]

    x = rms(x, params['fln'][0]) * OUT_SCALE
    return x @ params['lmh']


# --------------------------------- main -----------------------------------
if __name__ == "__main__":
    key = jax.random.PRNGKey(0)
    k_ids, k_enc = jax.random.split(key)
    B, T, S = 2, 8, 8
    decoder_input_ids = jax.random.randint(k_ids, (B, T), 0, VOCAB, dtype=jnp.int32)
    encoder_hidden_states = jax.random.normal(k_enc, (B, S, D_MODEL), jnp.float32)

    params = init_params(jax.random.PRNGKey(1234))

    out = decoder_model_forward(decoder_input_ids, encoder_hidden_states, params)
    out = jax.block_until_ready(out)
    assert out.shape == (B, T, VOCAB), out.shape
    assert bool(jnp.all(jnp.isfinite(out)))

    ref = reference_forward(decoder_input_ids, encoder_hidden_states, params)
    # bf16 matmul inputs + approx reciprocal -> slightly looser tolerance than f32.
    np.testing.assert_allclose(np.asarray(out), np.asarray(ref), rtol=5e-2, atol=1.5e-2)

    print("KERNEL_OK")
</pallas_src>

<mosaic_0001>
module attributes {stable_mosaic.version = 11 : i64} {
  func.func @decoder_kernel(%arg0: i32, %arg1: memref<1x8x64xf32, #tpu.memory_space<vmem>>, %arg2: memref<1x8x64xbf16, #tpu.memory_space<vmem>>, %arg3: memref<4x8x8xf32, #tpu.memory_space<vmem>>, %arg4: memref<2x1x64xf32, #tpu.memory_space<vmem>>, %arg5: memref<2x64x64xbf16, #tpu.memory_space<vmem>>, %arg6: memref<2x64x64xbf16, #tpu.memory_space<vmem>>, %arg7: memref<2x64x64xbf16, #tpu.memory_space<vmem>>, %arg8: memref<2x64x64xbf16, #tpu.memory_space<vmem>>, %arg9: memref<2x1x64xf32, #tpu.memory_space<vmem>>, %arg10: memref<2x64x64xbf16, #tpu.memory_space<vmem>>, %arg11: memref<2x64x64xbf16, #tpu.memory_space<vmem>>, %arg12: memref<2x64x64xbf16, #tpu.memory_space<vmem>>, %arg13: memref<2x64x64xbf16, #tpu.memory_space<vmem>>, %arg14: memref<2x1x64xf32, #tpu.memory_space<vmem>>, %arg15: memref<2x64x128xbf16, #tpu.memory_space<vmem>>, %arg16: memref<2x128x64xbf16, #tpu.memory_space<vmem>>, %arg17: memref<1x64xf32, #tpu.memory_space<vmem>>, %arg18: memref<64x128xbf16, #tpu.memory_space<vmem>>, %arg19: memref<1x8x128xf32, #tpu.memory_space<vmem>>) attributes {dimension_semantics = [#tpu.dimension_semantics<parallel>], iteration_bounds = array<i64: 2>, scalar_prefetch = 0 : i64, scratch_operands = 0 : i64, tpu.core_type = #tpu.core_type<tc>, window_params = [{transform_indices = @transform_0, window_bounds = array<i64: 1, 8, 64>}, {transform_indices = @transform_1, window_bounds = array<i64: 1, 8, 64>}, {pipeline_mode = #tpu.pipeline_mode<synchronous>, transform_indices = @transform_2, window_bounds = array<i64: 4, 8, 8>}, {pipeline_mode = #tpu.pipeline_mode<synchronous>, transform_indices = @transform_3, window_bounds = array<i64: 2, 1, 64>}, {pipeline_mode = #tpu.pipeline_mode<synchronous>, transform_indices = @transform_4, window_bounds = array<i64: 2, 64, 64>}, {pipeline_mode = #tpu.pipeline_mode<synchronous>, transform_indices = @transform_5, window_bounds = array<i64: 2, 64, 64>}, {pipeline_mode = #tpu.pipeline_mode<synchronous>, transform_indices = @transform_6, window_bounds = array<i64: 2, 64, 64>}, {pipeline_mode = #tpu.pipeline_mode<synchronous>, transform_indices = @transform_7, window_bounds = array<i64: 2, 64, 64>}, {pipeline_mode = #tpu.pipeline_mode<synchronous>, transform_indices = @transform_8, window_bounds = array<i64: 2, 1, 64>}, {pipeline_mode = #tpu.pipeline_mode<synchronous>, transform_indices = @transform_9, window_bounds = array<i64: 2, 64, 64>}, {pipeline_mode = #tpu.pipeline_mode<synchronous>, transform_indices = @transform_10, window_bounds = array<i64: 2, 64, 64>}, {pipeline_mode = #tpu.pipeline_mode<synchronous>, transform_indices = @transform_11, window_bounds = array<i64: 2, 64, 64>}, {pipeline_mode = #tpu.pipeline_mode<synchronous>, transform_indices = @transform_12, window_bounds = array<i64: 2, 64, 64>}, {pipeline_mode = #tpu.pipeline_mode<synchronous>, transform_indices = @transform_13, window_bounds = array<i64: 2, 1, 64>}, {pipeline_mode = #tpu.pipeline_mode<synchronous>, transform_indices = @transform_14, window_bounds = array<i64: 2, 64, 128>}, {pipeline_mode = #tpu.pipeline_mode<synchronous>, transform_indices = @transform_15, window_bounds = array<i64: 2, 128, 64>}, {pipeline_mode = #tpu.pipeline_mode<synchronous>, transform_indices = @transform_16, window_bounds = array<i64: 1, 64>}, {pipeline_mode = #tpu.pipeline_mode<synchronous>, transform_indices = @transform_17, window_bounds = array<i64: 64, 128>}, {transform_indices = @transform_18, window_bounds = array<i64: 1, 8, 128>}]} {
    %c0 = arith.constant 0 : index
    %c0_0 = arith.constant 0 : index
    %c0_1 = arith.constant 0 : index
    %0 = vector.load %arg1[%c0, %c0_0, %c0_1] : memref<1x8x64xf32, #tpu.memory_space<vmem>>, vector<1x8x64xf32>
    %1 = vector.shape_cast %0 : vector<1x8x64xf32> to vector<8x64xf32>
    %c0_2 = arith.constant 0 : index
    %c0_3 = arith.constant 0 : index
    %c0_4 = arith.constant 0 : index
    %2 = vector.load %arg2[%c0_2, %c0_3, %c0_4] : memref<1x8x64xbf16, #tpu.memory_space<vmem>>, vector<1x8x64xbf16>
    %3 = vector.shape_cast %2 : vector<1x8x64xbf16> to vector<8x64xbf16>
    %c0_5 = arith.constant 0 : index
    %c0_6 = arith.constant 0 : index
    %c0_7 = arith.constant 0 : index
    %4 = vector.load %arg3[%c0_5, %c0_6, %c0_7] : memref<4x8x8xf32, #tpu.memory_space<vmem>>, vector<4x8x8xf32>
    %c0_8 = arith.constant 0 : index
    %c0_9 = arith.constant 0 : index
    %c0_10 = arith.constant 0 : index
    %5 = vector.load %arg4[%c0_8, %c0_9, %c0_10] : memref<2x1x64xf32, #tpu.memory_space<vmem>>, vector<1x1x64xf32>
    %6 = vector.shape_cast %5 : vector<1x1x64xf32> to vector<1x64xf32>
    %7 = arith.mulf %1, %1 : vector<8x64xf32>
    %cst = arith.constant dense<0.000000e+00> : vector<8xf32>
    %8 = vector.multi_reduction <add>, %7, %cst [1] : vector<8x64xf32> to vector<8xf32>
    %9 = vector.shape_cast %8 : vector<8xf32> to vector<8x1xf32>
    %cst_11 = arith.constant 6.400000e+01 : f32
    %10 = vector.broadcast %cst_11 : f32 to vector<8x1xf32>
    %11 = arith.divf %9, %10 : vector<8x1xf32>
    %cst_12 = arith.constant 9.99999997E-7 : f32
    %12 = vector.broadcast %cst_12 : f32 to vector<8x1xf32>
    %13 = arith.addf %11, %12 : vector<8x1xf32>
    %14 = math.rsqrt %13 : vector<8x1xf32>
    %15 = vector.broadcast %14 : vector<8x1xf32> to vector<8x64xf32>
    %16 = arith.mulf %1, %15 : vector<8x64xf32>
    %17 = vector.broadcast %6 : vector<1x64xf32> to vector<8x64xf32>
    %18 = arith.mulf %16, %17 : vector<8x64xf32>
    %19 = arith.truncf %18 : vector<8x64xf32> to vector<8x64xbf16>
    %c0_13 = arith.constant 0 : index
    %c0_14 = arith.constant 0 : index
    %c0_15 = arith.constant 0 : index
    %20 = vector.load %arg5[%c0_13, %c0_14, %c0_15] : memref<2x64x64xbf16, #tpu.memory_space<vmem>>, vector<1x64x64xbf16>
    %21 = vector.shape_cast %20 : vector<1x64x64xbf16> to vector<64x64xbf16>
    %c0_16 = arith.constant 0 : index
    %c0_17 = arith.constant 0 : index
    %c0_18 = arith.constant 0 : index
    %22 = vector.load %arg6[%c0_16, %c0_17, %c0_18] : memref<2x64x64xbf16, #tpu.memory_space<vmem>>, vector<1x64x64xbf16>
    %23 = vector.shape_cast %22 : vector<1x64x64xbf16> to vector<64x64xbf16>
    %c0_19 = arith.constant 0 : index
    %c0_20 = arith.constant 0 : index
    %c0_21 = arith.constant 0 : index
    %24 = vector.load %arg7[%c0_19, %c0_20, %c0_21] : memref<2x64x64xbf16, #tpu.memory_space<vmem>>, vector<1x64x64xbf16>
    %25 = vector.shape_cast %24 : vector<1x64x64xbf16> to vector<64x64xbf16>
    %c0_22 = arith.constant 0 : index
    %c0_23 = arith.constant 0 : index
    %c0_24 = arith.constant 0 : index
    %26 = vector.load %arg8[%c0_22, %c0_23, %c0_24] : memref<2x64x64xbf16, #tpu.memory_space<vmem>>, vector<1x64x64xbf16>
    %27 = vector.shape_cast %26 : vector<1x64x64xbf16> to vector<64x64xbf16>
    %cst_25 = arith.constant dense<0.000000e+00> : vector<8x64xf32>
    %28 = tpu.matmul %19, %21, %cst_25 {dimension_numbers = #tpu.dot_dimension_numbers<[1], [0], [0], [1], [0, 0, 1, 1], [], []>} : vector<8x64xbf16>, vector<64x64xbf16>, vector<8x64xf32> -> vector<8x64xf32>
    %29 = arith.truncf %28 : vector<8x64xf32> to vector<8x64xbf16>
    %cst_26 = arith.constant dense<0.000000e+00> : vector<8x64xf32>
    %30 = tpu.matmul %19, %23, %cst_26 {dimension_numbers = #tpu.dot_dimension_numbers<[1], [0], [0], [1], [0, 0, 1, 1], [], []>} : vector<8x64xbf16>, vector<64x64xbf16>, vector<8x64xf32> -> vector<8x64xf32>
    %31 = arith.truncf %30 : vector<8x64xf32> to vector<8x64xbf16>
    %cst_27 = arith.constant dense<0.000000e+00> : vector<8x64xf32>
    %32 = tpu.matmul %19, %25, %cst_27 {dimension_numbers = #tpu.dot_dimension_numbers<[1], [0], [0], [1], [0, 0, 1, 1], [], []>} : vector<8x64xbf16>, vector<64x64xbf16>, vector<8x64xf32> -> vector<8x64xf32>
    %33 = arith.truncf %32 : vector<8x64xf32> to vector<8x64xbf16>
    %34 = vector.extract_strided_slice %29 {offsets = [0, 0], sizes = [8, 16], strides = [1, 1]} : vector<8x64xbf16> to vector<8x16xbf16>
    %35 = vector.extract_strided_slice %31 {offsets = [0, 0], sizes = [8, 16], strides = [1, 1]} : vector<8x64xbf16> to vector<8x16xbf16>
    %cst_28 = arith.constant dense<0.000000e+00> : vector<8x8xf32>
    %36 = tpu.matmul %34, %35, %cst_28 {dimension_numbers = #tpu.dot_dimension_numbers<[1], [1], [0], [0], [0, 0, 1, 0], [], []>} : vector<8x16xbf16>, vector<8x16xbf16>, vector<8x8xf32> -> vector<8x8xf32>
    %37 = vector.extract_strided_slice %4 {offsets = [0, 0, 0], sizes = [1, 8, 8], strides = [1, 1, 1]} : vector<4x8x8xf32> to vector<1x8x8xf32>
    %38 = vector.shape_cast %37 : vector<1x8x8xf32> to vector<8x8xf32>
    %39 = arith.addf %36, %38 : vector<8x8xf32>
    %cst_29 = arith.constant dense<0xFF800000> : vector<8xf32>
    %40 = vector.multi_reduction <maximumf>, %39, %cst_29 [1] : vector<8x8xf32> to vector<8xf32>
    %41 = vector.shape_cast %40 : vector<8xf32> to vector<8x1xf32>
    %42 = vector.broadcast %41 : vector<8x1xf32> to vector<8x8xf32>
    %43 = arith.subf %39, %42 : vector<8x8xf32>
    %44 = math.exp %43 : vector<8x8xf32>
    %cst_30 = arith.constant dense<0.000000e+00> : vector<8xf32>
    %45 = vector.multi_reduction <add>, %44, %cst_30 [1] : vector<8x8xf32> to vector<8xf32>
    %46 = vector.shape_cast %45 : vector<8xf32> to vector<8x1xf32>
    %47 = tpu.reciprocal %46 {approx = true} : vector<8x1xf32> -> vector<8x1xf32>
    %48 = vector.broadcast %47 : vector<8x1xf32> to vector<8x8xf32>
    %49 = arith.mulf %44, %48 : vector<8x8xf32>
    %50 = arith.truncf %49 : vector<8x8xf32> to vector<8x8xbf16>
    %51 = vector.extract_strided_slice %33 {offsets = [0, 0], sizes = [8, 16], strides = [1, 1]} : vector<8x64xbf16> to vector<8x16xbf16>
    %cst_31 = arith.constant dense<0.000000e+00> : vector<8x16xf32>
    %52 = tpu.matmul %50, %51, %cst_31 {dimension_numbers = #tpu.dot_dimension_numbers<[1], [0], [0], [1], [0, 0, 1, 1], [], []>} : vector<8x8xbf16>, vector<8x16xbf16>, vector<8x16xf32> -> vector<8x16xf32>
    %53 = vector.extract_strided_slice %29 {offsets = [0, 16], sizes = [8, 16], strides = [1, 1]} : vector<8x64xbf16> to vector<8x16xbf16>
    %54 = vector.extract_strided_slice %31 {offsets = [0, 16], sizes = [8, 16], strides = [1, 1]} : vector<8x64xbf16> to vector<8x16xbf16>
    %cst_32 = arith.constant dense<0.000000e+00> : vector<8x8xf32>
    %55 = tpu.matmul %53, %54, %cst_32 {dimension_numbers = #tpu.dot_dimension_numbers<[1], [1], [0], [0], [0, 0, 1, 0], [], []>} : vector<8x16xbf16>, vector<8x16xbf16>, vector<8x8xf32> -> vector<8x8xf32>
    %56 = vector.extract_strided_slice %4 {offsets = [1, 0, 0], sizes = [1, 8, 8], strides = [1, 1, 1]} : vector<4x8x8xf32> to vector<1x8x8xf32>
    %57 = vector.shape_cast %56 : vector<1x8x8xf32> to vector<8x8xf32>
    %58 = arith.addf %55, %57 : vector<8x8xf32>
    %cst_33 = arith.constant dense<0xFF800000> : vector<8xf32>
    %59 = vector.multi_reduction <maximumf>, %58, %cst_33 [1] : vector<8x8xf32> to vector<8xf32>
    %60 = vector.shape_cast %59 : vector<8xf32> to vector<8x1xf32>
    %61 = vector.broadcast %60 : vector<8x1xf32> to vector<8x8xf32>
    %62 = arith.subf %58, %61 : vector<8x8xf32>
    %63 = math.exp %62 : vector<8x8xf32>
    %cst_34 = arith.constant dense<0.000000e+00> : vector<8xf32>
    %64 = vector.multi_reduction <add>, %63, %cst_34 [1] : vector<8x8xf32> to vector<8xf32>
    %65 = vector.shape_cast %64 : vector<8xf32> to vector<8x1xf32>
    %66 = tpu.reciprocal %65 {approx = true} : vector<8x1xf32> -> vector<8x1xf32>
    %67 = vector.broadcast %66 : vector<8x1xf32> to vector<8x8xf32>
    %68 = arith.mulf %63, %67 : vector<8x8xf32>
    %69 = arith.truncf %68 : vector<8x8xf32> to vector<8x8xbf16>
    %70 = vector.extract_strided_slice %33 {offsets = [0, 16], sizes = [8, 16], strides = [1, 1]} : vector<8x64xbf16> to vector<8x16xbf16>
    %cst_35 = arith.constant dense<0.000000e+00> : vector<8x16xf32>
    %71 = tpu.matmul %69, %70, %cst_35 {dimension_numbers = #tpu.dot_dimension_numbers<[1], [0], [0], [1], [0, 0, 1, 1], [], []>} : vector<8x8xbf16>, vector<8x16xbf16>, vector<8x16xf32> -> vector<8x16xf32>
    %72 = vector.extract_strided_slice %29 {offsets = [0, 32], sizes = [8, 16], strides = [1, 1]} : vector<8x64xbf16> to vector<8x16xbf16>
    %73 = vector.extract_strided_slice %31 {offsets = [0, 32], sizes = [8, 16], strides = [1, 1]} : vector<8x64xbf16> to vector<8x16xbf16>
    %cst_36 = arith.constant dense<0.000000e+00> : vector<8x8xf32>
    %74 = tpu.matmul %72, %73, %cst_36 {dimension_numbers = #tpu.dot_dimension_numbers<[1], [1], [0], [0], [0, 0, 1, 0], [], []>} : vector<8x16xbf16>, vector<8x16xbf16>, vector<8x8xf32> -> vector<8x8xf32>
    %75 = vector.extract_strided_slice %4 {offsets = [2, 0, 0], sizes = [1, 8, 8], strides = [1, 1, 1]} : vector<4x8x8xf32> to vector<1x8x8xf32>
    %76 = vector.shape_cast %75 : vector<1x8x8xf32> to vector<8x8xf32>
    %77 = arith.addf %74, %76 : vector<8x8xf32>
    %cst_37 = arith.constant dense<0xFF800000> : vector<8xf32>
    %78 = vector.multi_reduction <maximumf>, %77, %cst_37 [1] : vector<8x8xf32> to vector<8xf32>
    %79 = vector.shape_cast %78 : vector<8xf32> to vector<8x1xf32>
    %80 = vector.broadcast %79 : vector<8x1xf32> to vector<8x8xf32>
    %81 = arith.subf %77, %80 : vector<8x8xf32>
    %82 = math.exp %81 : vector<8x8xf32>
    %cst_38 = arith.constant dense<0.000000e+00> : vector<8xf32>
    %83 = vector.multi_reduction <add>, %82, %cst_38 [1] : vector<8x8xf32> to vector<8xf32>
    %84 = vector.shape_cast %83 : vector<8xf32> to vector<8x1xf32>
    %85 = tpu.reciprocal %84 {approx = true} : vector<8x1xf32> -> vector<8x1xf32>
    %86 = vector.broadcast %85 : vector<8x1xf32> to vector<8x8xf32>
    %87 = arith.mulf %82, %86 : vector<8x8xf32>
    %88 = arith.truncf %87 : vector<8x8xf32> to vector<8x8xbf16>
    %89 = vector.extract_strided_slice %33 {offsets = [0, 32], sizes = [8, 16], strides = [1, 1]} : vector<8x64xbf16> to vector<8x16xbf16>
    %cst_39 = arith.constant dense<0.000000e+00> : vector<8x16xf32>
    %90 = tpu.matmul %88, %89, %cst_39 {dimension_numbers = #tpu.dot_dimension_numbers<[1], [0], [0], [1], [0, 0, 1, 1], [], []>} : vector<8x8xbf16>, vector<8x16xbf16>, vector<8x16xf32> -> vector<8x16xf32>
    %91 = vector.extract_strided_slice %29 {offsets = [0, 48], sizes = [8, 16], strides = [1, 1]} : vector<8x64xbf16> to vector<8x16xbf16>
    %92 = vector.extract_strided_slice %31 {offsets = [0, 48], sizes = [8, 16], strides = [1, 1]} : vector<8x64xbf16> to vector<8x16xbf16>
    %cst_40 = arith.constant dense<0.000000e+00> : vector<8x8xf32>
    %93 = tpu.matmul %91, %92, %cst_40 {dimension_numbers = #tpu.dot_dimension_numbers<[1], [1], [0], [0], [0, 0, 1, 0], [], []>} : vector<8x16xbf16>, vector<8x16xbf16>, vector<8x8xf32> -> vector<8x8xf32>
    %94 = vector.extract_strided_slice %4 {offsets = [3, 0, 0], sizes = [1, 8, 8], strides = [1, 1, 1]} : vector<4x8x8xf32> to vector<1x8x8xf32>
    %95 = vector.shape_cast %94 : vector<1x8x8xf32> to vector<8x8xf32>
    %96 = arith.addf %93, %95 : vector<8x8xf32>
    %cst_41 = arith.constant dense<0xFF800000> : vector<8xf32>
    %97 = vector.multi_reduction <maximumf>, %96, %cst_41 [1] : vector<8x8xf32> to vector<8xf32>
    %98 = vector.shape_cast %97 : vector<8xf32> to vector<8x1xf32>
    %99 = vector.broadcast %98 : vector<8x1xf32> to vector<8x8xf32>
    %100 = arith.subf %96, %99 : vector<8x8xf32>
    %101 = math.exp %100 : vector<8x8xf32>
    %cst_42 = arith.constant dense<0.000000e+00> : vector<8xf32>
    %102 = vector.multi_reduction <add>, %101, %cst_42 [1] : vector<8x8xf32> to vector<8xf32>
    %103 = vector.shape_cast %102 : vector<8xf32> to vector<8x1xf32>
    %104 = tpu.reciprocal %103 {approx = true} : vector<8x1xf32> -> vector<8x1xf32>
    %105 = vector.broadcast %104 : vector<8x1xf32> to vector<8x8xf32>
    %106 = arith.mulf %101, %105 : vector<8x8xf32>
    %107 = arith.truncf %106 : vector<8x8xf32> to vector<8x8xbf16>
    %108 = vector.extract_strided_slice %33 {offsets = [0, 48], sizes = [8, 16], strides = [1, 1]} : vector<8x64xbf16> to vector<8x16xbf16>
    %cst_43 = arith.constant dense<0.000000e+00> : vector<8x16xf32>
    %109 = tpu.matmul %107, %108, %cst_43 {dimension_numbers = #tpu.dot_dimension_numbers<[1], [0], [0], [1], [0, 0, 1, 1], [], []>} : vector<8x8xbf16>, vector<8x16xbf16>, vector<8x16xf32> -> vector<8x16xf32>
    %110 = tpu.concatenate %52, %71, %90, %109 in 1 : vector<8x16xf32>, vector<8x16xf32>, vector<8x16xf32>, vector<8x16xf32> -> vector<8x64xf32>
    %111 = arith.truncf %110 : vector<8x64xf32> to vector<8x64xbf16>
    %cst_44 = arith.constant dense<0.000000e+00> : vector<8x64xf32>
    %112 = tpu.matmul %111, %27, %cst_44 {dimension_numbers = #tpu.dot_dimension_numbers<[1], [0], [0], [1], [0, 0, 1, 1], [], []>} : vector<8x64xbf16>, vector<64x64xbf16>, vector<8x64xf32> -> vector<8x64xf32>
    %113 = arith.addf %1, %112 : vector<8x64xf32>
    %c0_45 = arith.constant 0 : index
    %c0_46 = arith.constant 0 : index
    %c0_47 = arith.constant 0 : index
    %114 = vector.load %arg9[%c0_45, %c0_46, %c0_47] : memref<2x1x64xf32, #tpu.memory_space<vmem>>, vector<1x1x64xf32>
    %115 = vector.shape_cast %114 : vector<1x1x64xf32> to vector<1x64xf32>
    %116 = arith.mulf %113, %113 : vector<8x64xf32>
    %cst_48 = arith.constant dense<0.000000e+00> : vector<8xf32>
    %117 = vector.multi_reduction <add>, %116, %cst_48 [1] : vector<8x64xf32> to vector<8xf32>
    %118 = vector.shape_cast %117 : vector<8xf32> to vector<8x1xf32>
    %cst_49 = arith.constant 6.400000e+01 : f32
    %119 = vector.broadcast %cst_49 : f32 to vector<8x1xf32>
    %120 = arith.divf %118, %119 : vector<8x1xf32>
    %cst_50 = arith.constant 9.99999997E-7 : f32
    %121 = vector.broadcast %cst_50 : f32 to vector<8x1xf32>
    %122 = arith.addf %120, %121 : vector<8x1xf32>
    %123 = math.rsqrt %122 : vector<8x1xf32>
    %124 = vector.broadcast %123 : vector<8x1xf32> to vector<8x64xf32>
    %125 = arith.mulf %113, %124 : vector<8x64xf32>
    %126 = vector.broadcast %115 : vector<1x64xf32> to vector<8x64xf32>
    %127 = arith.mulf %125, %126 : vector<8x64xf32>
    %128 = arith.truncf %127 : vector<8x64xf32> to vector<8x64xbf16>
    %c0_51 = arith.constant 0 : index
    %c0_52 = arith.constant 0 : index
    %c0_53 = arith.constant 0 : index
    %129 = vector.load %arg10[%c0_51, %c0_52, %c0_53] : memref<2x64x64xbf16, #tpu.memory_space<vmem>>, vector<1x64x64xbf16>
    %130 = vector.shape_cast %129 : vector<1x64x64xbf16> to vector<64x64xbf16>
    %c0_54 = arith.constant 0 : index
    %c0_55 = arith.constant 0 : index
    %c0_56 = arith.constant 0 : index
    %131 = vector.load %arg11[%c0_54, %c0_55, %c0_56] : memref<2x64x64xbf16, #tpu.memory_space<vmem>>, vector<1x64x64xbf16>
    %132 = vector.shape_cast %131 : vector<1x64x64xbf16> to vector<64x64xbf16>
    %c0_57 = arith.constant 0 : index
    %c0_58 = arith.constant 0 : index
    %c0_59 = arith.constant 0 : index
    %133 = vector.load %arg12[%c0_57, %c0_58, %c0_59] : memref<2x64x64xbf16, #tpu.memory_space<vmem>>, vector<1x64x64xbf16>
    %134 = vector.shape_cast %133 : vector<1x64x64xbf16> to vector<64x64xbf16>
    %c0_60 = arith.constant 0 : index
    %c0_61 = arith.constant 0 : index
    %c0_62 = arith.constant 0 : index
    %135 = vector.load %arg13[%c0_60, %c0_61, %c0_62] : memref<2x64x64xbf16, #tpu.memory_space<vmem>>, vector<1x64x64xbf16>
    %136 = vector.shape_cast %135 : vector<1x64x64xbf16> to vector<64x64xbf16>
    %cst_63 = arith.constant dense<0.000000e+00> : vector<8x64xf32>
    %137 = tpu.matmul %128, %130, %cst_63 {dimension_numbers = #tpu.dot_dimension_numbers<[1], [0], [0], [1], [0, 0, 1, 1], [], []>} : vector<8x64xbf16>, vector<64x64xbf16>, vector<8x64xf32> -> vector<8x64xf32>
    %138 = arith.truncf %137 : vector<8x64xf32> to vector<8x64xbf16>
    %cst_64 = arith.constant dense<0.000000e+00> : vector<8x64xf32>
    %139 = tpu.matmul %3, %132, %cst_64 {dimension_numbers = #tpu.dot_dimension_numbers<[1], [0], [0], [1], [0, 0, 1, 1], [], []>} : vector<8x64xbf16>, vector<64x64xbf16>, vector<8x64xf32> -> vector<8x64xf32>
    %140 = arith.truncf %139 : vector<8x64xf32> to vector<8x64xbf16>
    %cst_65 = arith.constant dense<0.000000e+00> : vector<8x64xf32>
    %141 = tpu.matmul %3, %134, %cst_65 {dimension_numbers = #tpu.dot_dimension_numbers<[1], [0], [0], [1], [0, 0, 1, 1], [], []>} : vector<8x64xbf16>, vector<64x64xbf16>, vector<8x64xf32> -> vector<8x64xf32>
    %142 = arith.truncf %141 : vector<8x64xf32> to vector<8x64xbf16>
    %143 = vector.extract_strided_slice %138 {offsets = [0, 0], sizes = [8, 16], strides = [1, 1]} : vector<8x64xbf16> to vector<8x16xbf16>
    %144 = vector.extract_strided_slice %140 {offsets = [0, 0], sizes = [8, 16], strides = [1, 1]} : vector<8x64xbf16> to vector<8x16xbf16>
    %cst_66 = arith.constant dense<0.000000e+00> : vector<8x8xf32>
    %145 = tpu.matmul %143, %144, %cst_66 {dimension_numbers = #tpu.dot_dimension_numbers<[1], [1], [0], [0], [0, 0, 1, 0], [], []>} : vector<8x16xbf16>, vector<8x16xbf16>, vector<8x8xf32> -> vector<8x8xf32>
    %cst_67 = arith.constant dense<0xFF800000> : vector<8xf32>
    %146 = vector.multi_reduction <maximumf>, %145, %cst_67 [1] : vector<8x8xf32> to vector<8xf32>
    %147 = vector.shape_cast %146 : vector<8xf32> to vector<8x1xf32>
    %148 = vector.broadcast %147 : vector<8x1xf32> to vector<8x8xf32>
    %149 = arith.subf %145, %148 : vector<8x8xf32>
    %150 = math.exp %149 : vector<8x8xf32>
    %cst_68 = arith.constant dense<0.000000e+00> : vector<8xf32>
    %151 = vector.multi_reduction <add>, %150, %cst_68 [1] : vector<8x8xf32> to vector<8xf32>
    %152 = vector.shape_cast %151 : vector<8xf32> to vector<8x1xf32>
    %153 = tpu.reciprocal %152 {approx = true} : vector<8x1xf32> -> vector<8x1xf32>
    %154 = vector.broadcast %153 : vector<8x1xf32> to vector<8x8xf32>
    %155 = arith.mulf %150, %154 : vector<8x8xf32>
    %156 = arith.truncf %155 : vector<8x8xf32> to vector<8x8xbf16>
    %157 = vector.extract_strided_slice %142 {offsets = [0, 0], sizes = [8, 16], strides = [1, 1]} : vector<8x64xbf16> to vector<8x16xbf16>
    %cst_69 = arith.constant dense<0.000000e+00> : vector<8x16xf32>
    %158 = tpu.matmul %156, %157, %cst_69 {dimension_numbers = #tpu.dot_dimension_numbers<[1], [0], [0], [1], [0, 0, 1, 1], [], []>} : vector<8x8xbf16>, vector<8x16xbf16>, vector<8x16xf32> -> vector<8x16xf32>
    %159 = vector.extract_strided_slice %138 {offsets = [0, 16], sizes = [8, 16], strides = [1, 1]} : vector<8x64xbf16> to vector<8x16xbf16>
    %160 = vector.extract_strided_slice %140 {offsets = [0, 16], sizes = [8, 16], strides = [1, 1]} : vector<8x64xbf16> to vector<8x16xbf16>
    %cst_70 = arith.constant dense<0.000000e+00> : vector<8x8xf32>
    %161 = tpu.matmul %159, %160, %cst_70 {dimension_numbers = #tpu.dot_dimension_numbers<[1], [1], [0], [0], [0, 0, 1, 0], [], []>} : vector<8x16xbf16>, vector<8x16xbf16>, vector<8x8xf32> -> vector<8x8xf32>
    %cst_71 = arith.constant dense<0xFF800000> : vector<8xf32>
    %162 = vector.multi_reduction <maximumf>, %161, %cst_71 [1] : vector<8x8xf32> to vector<8xf32>
    %163 = vector.shape_cast %162 : vector<8xf32> to vector<8x1xf32>
    %164 = vector.broadcast %163 : vector<8x1xf32> to vector<8x8xf32>
    %165 = arith.subf %161, %164 : vector<8x8xf32>
    %166 = math.exp %165 : vector<8x8xf32>
    %cst_72 = arith.constant dense<0.000000e+00> : vector<8xf32>
    %167 = vector.multi_reduction <add>, %166, %cst_72 [1] : vector<8x8xf32> to vector<8xf32>
    %168 = vector.shape_cast %167 : vector<8xf32> to vector<8x1xf32>
    %169 = tpu.reciprocal %168 {approx = true} : vector<8x1xf32> -> vector<8x1xf32>
    %170 = vector.broadcast %169 : vector<8x1xf32> to vector<8x8xf32>
    %171 = arith.mulf %166, %170 : vector<8x8xf32>
    %172 = arith.truncf %171 : vector<8x8xf32> to vector<8x8xbf16>
    %173 = vector.extract_strided_slice %142 {offsets = [0, 16], sizes = [8, 16], strides = [1, 1]} : vector<8x64xbf16> to vector<8x16xbf16>
    %cst_73 = arith.constant dense<0.000000e+00> : vector<8x16xf32>
    %174 = tpu.matmul %172, %173, %cst_73 {dimension_numbers = #tpu.dot_dimension_numbers<[1], [0], [0], [1], [0, 0, 1, 1], [], []>} : vector<8x8xbf16>, vector<8x16xbf16>, vector<8x16xf32> -> vector<8x16xf32>
    %175 = vector.extract_strided_slice %138 {offsets = [0, 32], sizes = [8, 16], strides = [1, 1]} : vector<8x64xbf16> to vector<8x16xbf16>
    %176 = vector.extract_strided_slice %140 {offsets = [0, 32], sizes = [8, 16], strides = [1, 1]} : vector<8x64xbf16> to vector<8x16xbf16>
    %cst_74 = arith.constant dense<0.000000e+00> : vector<8x8xf32>
    %177 = tpu.matmul %175, %176, %cst_74 {dimension_numbers = #tpu.dot_dimension_numbers<[1], [1], [0], [0], [0, 0, 1, 0], [], []>} : vector<8x16xbf16>, vector<8x16xbf16>, vector<8x8xf32> -> vector<8x8xf32>
    %cst_75 = arith.constant dense<0xFF800000> : vector<8xf32>
    %178 = vector.multi_reduction <maximumf>, %177, %cst_75 [1] : vector<8x8xf32> to vector<8xf32>
    %179 = vector.shape_cast %178 : vector<8xf32> to vector<8x1xf32>
    %180 = vector.broadcast %179 : vector<8x1xf32> to vector<8x8xf32>
    %181 = arith.subf %177, %180 : vector<8x8xf32>
    %182 = math.exp %181 : vector<8x8xf32>
    %cst_76 = arith.constant dense<0.000000e+00> : vector<8xf32>
    %183 = vector.multi_reduction <add>, %182, %cst_76 [1] : vector<8x8xf32> to vector<8xf32>
    %184 = vector.shape_cast %183 : vector<8xf32> to vector<8x1xf32>
    %185 = tpu.reciprocal %184 {approx = true} : vector<8x1xf32> -> vector<8x1xf32>
    %186 = vector.broadcast %185 : vector<8x1xf32> to vector<8x8xf32>
    %187 = arith.mulf %182, %186 : vector<8x8xf32>
    %188 = arith.truncf %187 : vector<8x8xf32> to vector<8x8xbf16>
    %189 = vector.extract_strided_slice %142 {offsets = [0, 32], sizes = [8, 16], strides = [1, 1]} : vector<8x64xbf16> to vector<8x16xbf16>
    %cst_77 = arith.constant dense<0.000000e+00> : vector<8x16xf32>
    %190 = tpu.matmul %188, %189, %cst_77 {dimension_numbers = #tpu.dot_dimension_numbers<[1], [0], [0], [1], [0, 0, 1, 1], [], []>} : vector<8x8xbf16>, vector<8x16xbf16>, vector<8x16xf32> -> vector<8x16xf32>
    %191 = vector.extract_strided_slice %138 {offsets = [0, 48], sizes = [8, 16], strides = [1, 1]} : vector<8x64xbf16> to vector<8x16xbf16>
    %192 = vector.extract_strided_slice %140 {offsets = [0, 48], sizes = [8, 16], strides = [1, 1]} : vector<8x64xbf16> to vector<8x16xbf16>
    %cst_78 = arith.constant dense<0.000000e+00> : vector<8x8xf32>
    %193 = tpu.matmul %191, %192, %cst_78 {dimension_numbers = #tpu.dot_dimension_numbers<[1], [1], [0], [0], [0, 0, 1, 0], [], []>} : vector<8x16xbf16>, vector<8x16xbf16>, vector<8x8xf32> -> vector<8x8xf32>
    %cst_79 = arith.constant dense<0xFF800000> : vector<8xf32>
    %194 = vector.multi_reduction <maximumf>, %193, %cst_79 [1] : vector<8x8xf32> to vector<8xf32>
    %195 = vector.shape_cast %194 : vector<8xf32> to vector<8x1xf32>
    %196 = vector.broadcast %195 : vector<8x1xf32> to vector<8x8xf32>
    %197 = arith.subf %193, %196 : vector<8x8xf32>
    %198 = math.exp %197 : vector<8x8xf32>
    %cst_80 = arith.constant dense<0.000000e+00> : vector<8xf32>
    %199 = vector.multi_reduction <add>, %198, %cst_80 [1] : vector<8x8xf32> to vector<8xf32>
    %200 = vector.shape_cast %199 : vector<8xf32> to vector<8x1xf32>
    %201 = tpu.reciprocal %200 {approx = true} : vector<8x1xf32> -> vector<8x1xf32>
    %202 = vector.broadcast %201 : vector<8x1xf32> to vector<8x8xf32>
    %203 = arith.mulf %198, %202 : vector<8x8xf32>
    %204 = arith.truncf %203 : vector<8x8xf32> to vector<8x8xbf16>
    %205 = vector.extract_strided_slice %142 {offsets = [0, 48], sizes = [8, 16], strides = [1, 1]} : vector<8x64xbf16> to vector<8x16xbf16>
    %cst_81 = arith.constant dense<0.000000e+00> : vector<8x16xf32>
    %206 = tpu.matmul %204, %205, %cst_81 {dimension_numbers = #tpu.dot_dimension_numbers<[1], [0], [0], [1], [0, 0, 1, 1], [], []>} : vector<8x8xbf16>, vector<8x16xbf16>, vector<8x16xf32> -> vector<8x16xf32>
    %207 = tpu.concatenate %158, %174, %190, %206 in 1 : vector<8x16xf32>, vector<8x16xf32>, vector<8x16xf32>, vector<8x16xf32> -> vector<8x64xf32>
    %208 = arith.truncf %207 : vector<8x64xf32> to vector<8x64xbf16>
    %cst_82 = arith.constant dense<0.000000e+00> : vector<8x64xf32>
    %209 = tpu.matmul %208, %136, %cst_82 {dimension_numbers = #tpu.dot_dimension_numbers<[1], [0], [0], [1], [0, 0, 1, 1], [], []>} : vector<8x64xbf16>, vector<64x64xbf16>, vector<8x64xf32> -> vector<8x64xf32>
    %210 = arith.addf %113, %209 : vector<8x64xf32>
    %c0_83 = arith.constant 0 : index
    %c0_84 = arith.constant 0 : index
    %c0_85 = arith.constant 0 : index
    %211 = vector.load %arg14[%c0_83, %c0_84, %c0_85] : memref<2x1x64xf32, #tpu.memory_space<vmem>>, vector<1x1x64xf32>
    %212 = vector.shape_cast %211 : vector<1x1x64xf32> to vector<1x64xf32>
    %213 = arith.mulf %210, %210 : vector<8x64xf32>
    %cst_86 = arith.constant dense<0.000000e+00> : vector<8xf32>
    %214 = vector.multi_reduction <add>, %213, %cst_86 [1] : vector<8x64xf32> to vector<8xf32>
    %215 = vector.shape_cast %214 : vector<8xf32> to vector<8x1xf32>
    %cst_87 = arith.constant 6.400000e+01 : f32
    %216 = vector.broadcast %cst_87 : f32 to vector<8x1xf32>
    %217 = arith.divf %215, %216 : vector<8x1xf32>
    %cst_88 = arith.constant 9.99999997E-7 : f32
    %218 = vector.broadcast %cst_88 : f32 to vector<8x1xf32>
    %219 = arith.addf %217, %218 : vector<8x1xf32>
    %220 = math.rsqrt %219 : vector<8x1xf32>
    %221 = vector.broadcast %220 : vector<8x1xf32> to vector<8x64xf32>
    %222 = arith.mulf %210, %221 : vector<8x64xf32>
    %223 = vector.broadcast %212 : vector<1x64xf32> to vector<8x64xf32>
    %224 = arith.mulf %222, %223 : vector<8x64xf32>
    %225 = arith.truncf %224 : vector<8x64xf32> to vector<8x64xbf16>
    %c0_89 = arith.constant 0 : index
    %c0_90 = arith.constant 0 : index
    %c0_91 = arith.constant 0 : index
    %226 = vector.load %arg15[%c0_89, %c0_90, %c0_91] : memref<2x64x128xbf16, #tpu.memory_space<vmem>>, vector<1x64x128xbf16>
    %227 = vector.shape_cast %226 : vector<1x64x128xbf16> to vector<64x128xbf16>
    %cst_92 = arith.constant dense<0.000000e+00> : vector<8x128xf32>
    %228 = tpu.matmul %225, %227, %cst_92 {dimension_numbers = #tpu.dot_dimension_numbers<[1], [0], [0], [1], [0, 0, 1, 1], [], []>} : vector<8x64xbf16>, vector<64x128xbf16>, vector<8x128xf32> -> vector<8x128xf32>
    %cst_93 = arith.constant 0.000000e+00 : f32
    %229 = vector.broadcast %cst_93 : f32 to vector<8x128xf32>
    %230 = arith.maximumf %228, %229 : vector<8x128xf32>
    %231 = arith.truncf %230 : vector<8x128xf32> to vector<8x128xbf16>
    %c0_94 = arith.constant 0 : index
    %c0_95 = arith.constant 0 : index
    %c0_96 = arith.constant 0 : index
    %232 = vector.load %arg16[%c0_94, %c0_95, %c0_96] : memref<2x128x64xbf16, #tpu.memory_space<vmem>>, vector<1x128x64xbf16>
    %233 = vector.shape_cast %232 : vector<1x128x64xbf16> to vector<128x64xbf16>
    %cst_97 = arith.constant dense<0.000000e+00> : vector<8x64xf32>
    %234 = tpu.matmul %231, %233, %cst_97 {dimension_numbers = #tpu.dot_dimension_numbers<[1], [0], [0], [1], [0, 0, 1, 1], [], []>} : vector<8x128xbf16>, vector<128x64xbf16>, vector<8x64xf32> -> vector<8x64xf32>
    %235 = arith.addf %210, %234 : vector<8x64xf32>
    %c1 = arith.constant 1 : index
    %c0_98 = arith.constant 0 : index
    %c0_99 = arith.constant 0 : index
    %236 = vector.load %arg4[%c1, %c0_98, %c0_99] : memref<2x1x64xf32, #tpu.memory_space<vmem>>, vector<1x1x64xf32>
    %237 = vector.shape_cast %236 : vector<1x1x64xf32> to vector<1x64xf32>
    %238 = arith.mulf %235, %235 : vector<8x64xf32>
    %cst_100 = arith.constant dense<0.000000e+00> : vector<8xf32>
    %239 = vector.multi_reduction <add>, %238, %cst_100 [1] : vector<8x64xf32> to vector<8xf32>
    %240 = vector.shape_cast %239 : vector<8xf32> to vector<8x1xf32>
    %cst_101 = arith.constant 6.400000e+01 : f32
    %241 = vector.broadcast %cst_101 : f32 to vector<8x1xf32>
    %242 = arith.divf %240, %241 : vector<8x1xf32>
    %cst_102 = arith.constant 9.99999997E-7 : f32
    %243 = vector.broadcast %cst_102 : f32 to vector<8x1xf32>
    %244 = arith.addf %242, %243 : vector<8x1xf32>
    %245 = math.rsqrt %244 : vector<8x1xf32>
    %246 = vector.broadcast %245 : vector<8x1xf32> to vector<8x64xf32>
    %247 = arith.mulf %235, %246 : vector<8x64xf32>
    %248 = vector.broadcast %237 : vector<1x64xf32> to vector<8x64xf32>
    %249 = arith.mulf %247, %248 : vector<8x64xf32>
    %250 = arith.truncf %249 : vector<8x64xf32> to vector<8x64xbf16>
    %c1_103 = arith.constant 1 : index
    %c0_104 = arith.constant 0 : index
    %c0_105 = arith.constant 0 : index
    %251 = vector.load %arg5[%c1_103, %c0_104, %c0_105] : memref<2x64x64xbf16, #tpu.memory_space<vmem>>, vector<1x64x64xbf16>
    %252 = vector.shape_cast %251 : vector<1x64x64xbf16> to vector<64x64xbf16>
    %c1_106 = arith.constant 1 : index
    %c0_107 = arith.constant 0 : index
    %c0_108 = arith.constant 0 : index
    %253 = vector.load %arg6[%c1_106, %c0_107, %c0_108] : memref<2x64x64xbf16, #tpu.memory_space<vmem>>, vector<1x64x64xbf16>
    %254 = vector.shape_cast %253 : vector<1x64x64xbf16> to vector<64x64xbf16>
    %c1_109 = arith.constant 1 : index
    %c0_110 = arith.constant 0 : index
    %c0_111 = arith.constant 0 : index
    %255 = vector.load %arg7[%c1_109, %c0_110, %c0_111] : memref<2x64x64xbf16, #tpu.memory_space<vmem>>, vector<1x64x64xbf16>
    %256 = vector.shape_cast %255 : vector<1x64x64xbf16> to vector<64x64xbf16>
    %c1_112 = arith.constant 1 : index
    %c0_113 = arith.constant 0 : index
    %c0_114 = arith.constant 0 : index
    %257 = vector.load %arg8[%c1_112, %c0_113, %c0_114] : memref<2x64x64xbf16, #tpu.memory_space<vmem>>, vector<1x64x64xbf16>
    %258 = vector.shape_cast %257 : vector<1x64x64xbf16> to vector<64x64xbf16>
    %cst_115 = arith.constant dense<0.000000e+00> : vector<8x64xf32>
    %259 = tpu.matmul %250, %252, %cst_115 {dimension_numbers = #tpu.dot_dimension_numbers<[1], [0], [0], [1], [0, 0, 1, 1], [], []>} : vector<8x64xbf16>, vector<64x64xbf16>, vector<8x64xf32> -> vector<8x64xf32>
    %260 = arith.truncf %259 : vector<8x64xf32> to vector<8x64xbf16>
    %cst_116 = arith.constant dense<0.000000e+00> : vector<8x64xf32>
    %261 = tpu.matmul %250, %254, %cst_116 {dimension_numbers = #tpu.dot_dimension_numbers<[1], [0], [0], [1], [0, 0, 1, 1], [], []>} : vector<8x64xbf16>, vector<64x64xbf16>, vector<8x64xf32> -> vector<8x64xf32>
    %262 = arith.truncf %261 : vector<8x64xf32> to vector<8x64xbf16>
    %cst_117 = arith.constant dense<0.000000e+00> : vector<8x64xf32>
    %263 = tpu.matmul %250, %256, %cst_117 {dimension_numbers = #tpu.dot_dimension_numbers<[1], [0], [0], [1], [0, 0, 1, 1], [], []>} : vector<8x64xbf16>, vector<64x64xbf16>, vector<8x64xf32> -> vector<8x64xf32>
    %264 = arith.truncf %263 : vector<8x64xf32> to vector<8x64xbf16>
    %265 = vector.extract_strided_slice %260 {offsets = [0, 0], sizes = [8, 16], strides = [1, 1]} : vector<8x64xbf16> to vector<8x16xbf16>
    %266 = vector.extract_strided_slice %262 {offsets = [0, 0], sizes = [8, 16], strides = [1, 1]} : vector<8x64xbf16> to vector<8x16xbf16>
    %cst_118 = arith.constant dense<0.000000e+00> : vector<8x8xf32>
    %267 = tpu.matmul %265, %266, %cst_118 {dimension_numbers = #tpu.dot_dimension_numbers<[1], [1], [0], [0], [0, 0, 1, 0], [], []>} : vector<8x16xbf16>, vector<8x16xbf16>, vector<8x8xf32> -> vector<8x8xf32>
    %268 = vector.extract_strided_slice %4 {offsets = [0, 0, 0], sizes = [1, 8, 8], strides = [1, 1, 1]} : vector<4x8x8xf32> to vector<1x8x8xf32>
    %269 = vector.shape_cast %268 : vector<1x8x8xf32> to vector<8x8xf32>
    %270 = arith.addf %267, %269 : vector<8x8xf32>
    %cst_119 = arith.constant dense<0xFF800000> : vector<8xf32>
    %271 = vector.multi_reduction <maximumf>, %270, %cst_119 [1] : vector<8x8xf32> to vector<8xf32>
    %272 = vector.shape_cast %271 : vector<8xf32> to vector<8x1xf32>
    %273 = vector.broadcast %272 : vector<8x1xf32> to vector<8x8xf32>
    %274 = arith.subf %270, %273 : vector<8x8xf32>
    %275 = math.exp %274 : vector<8x8xf32>
    %cst_120 = arith.constant dense<0.000000e+00> : vector<8xf32>
    %276 = vector.multi_reduction <add>, %275, %cst_120 [1] : vector<8x8xf32> to vector<8xf32>
    %277 = vector.shape_cast %276 : vector<8xf32> to vector<8x1xf32>
    %278 = tpu.reciprocal %277 {approx = true} : vector<8x1xf32> -> vector<8x1xf32>
    %279 = vector.broadcast %278 : vector<8x1xf32> to vector<8x8xf32>
    %280 = arith.mulf %275, %279 : vector<8x8xf32>
    %281 = arith.truncf %280 : vector<8x8xf32> to vector<8x8xbf16>
    %282 = vector.extract_strided_slice %264 {offsets = [0, 0], sizes = [8, 16], strides = [1, 1]} : vector<8x64xbf16> to vector<8x16xbf16>
    %cst_121 = arith.constant dense<0.000000e+00> : vector<8x16xf32>
    %283 = tpu.matmul %281, %282, %cst_121 {dimension_numbers = #tpu.dot_dimension_numbers<[1], [0], [0], [1], [0, 0, 1, 1], [], []>} : vector<8x8xbf16>, vector<8x16xbf16>, vector<8x16xf32> -> vector<8x16xf32>
    %284 = vector.extract_strided_slice %260 {offsets = [0, 16], sizes = [8, 16], strides = [1, 1]} : vector<8x64xbf16> to vector<8x16xbf16>
    %285 = vector.extract_strided_slice %262 {offsets = [0, 16], sizes = [8, 16], strides = [1, 1]} : vector<8x64xbf16> to vector<8x16xbf16>
    %cst_122 = arith.constant dense<0.000000e+00> : vector<8x8xf32>
    %286 = tpu.matmul %284, %285, %cst_122 {dimension_numbers = #tpu.dot_dimension_numbers<[1], [1], [0], [0], [0, 0, 1, 0], [], []>} : vector<8x16xbf16>, vector<8x16xbf16>, vector<8x8xf32> -> vector<8x8xf32>
    %287 = vector.extract_strided_slice %4 {offsets = [1, 0, 0], sizes = [1, 8, 8], strides = [1, 1, 1]} : vector<4x8x8xf32> to vector<1x8x8xf32>
    %288 = vector.shape_cast %287 : vector<1x8x8xf32> to vector<8x8xf32>
    %289 = arith.addf %286, %288 : vector<8x8xf32>
    %cst_123 = arith.constant dense<0xFF800000> : vector<8xf32>
    %290 = vector.multi_reduction <maximumf>, %289, %cst_123 [1] : vector<8x8xf32> to vector<8xf32>
    %291 = vector.shape_cast %290 : vector<8xf32> to vector<8x1xf32>
    %292 = vector.broadcast %291 : vector<8x1xf32> to vector<8x8xf32>
    %293 = arith.subf %289, %292 : vector<8x8xf32>
    %294 = math.exp %293 : vector<8x8xf32>
    %cst_124 = arith.constant dense<0.000000e+00> : vector<8xf32>
    %295 = vector.multi_reduction <add>, %294, %cst_124 [1] : vector<8x8xf32> to vector<8xf32>
    %296 = vector.shape_cast %295 : vector<8xf32> to vector<8x1xf32>
    %297 = tpu.reciprocal %296 {approx = true} : vector<8x1xf32> -> vector<8x1xf32>
    %298 = vector.broadcast %297 : vector<8x1xf32> to vector<8x8xf32>
    %299 = arith.mulf %294, %298 : vector<8x8xf32>
    %300 = arith.truncf %299 : vector<8x8xf32> to vector<8x8xbf16>
    %301 = vector.extract_strided_slice %264 {offsets = [0, 16], sizes = [8, 16], strides = [1, 1]} : vector<8x64xbf16> to vector<8x16xbf16>
    %cst_125 = arith.constant dense<0.000000e+00> : vector<8x16xf32>
    %302 = tpu.matmul %300, %301, %cst_125 {dimension_numbers = #tpu.dot_dimension_numbers<[1], [0], [0], [1], [0, 0, 1, 1], [], []>} : vector<8x8xbf16>, vector<8x16xbf16>, vector<8x16xf32> -> vector<8x16xf32>
    %303 = vector.extract_strided_slice %260 {offsets = [0, 32], sizes = [8, 16], strides = [1, 1]} : vector<8x64xbf16> to vector<8x16xbf16>
    %304 = vector.extract_strided_slice %262 {offsets = [0, 32], sizes = [8, 16], strides = [1, 1]} : vector<8x64xbf16> to vector<8x16xbf16>
    %cst_126 = arith.constant dense<0.000000e+00> : vector<8x8xf32>
    %305 = tpu.matmul %303, %304, %cst_126 {dimension_numbers = #tpu.dot_dimension_numbers<[1], [1], [0], [0], [0, 0, 1, 0], [], []>} : vector<8x16xbf16>, vector<8x16xbf16>, vector<8x8xf32> -> vector<8x8xf32>
    %306 = vector.extract_strided_slice %4 {offsets = [2, 0, 0], sizes = [1, 8, 8], strides = [1, 1, 1]} : vector<4x8x8xf32> to vector<1x8x8xf32>
    %307 = vector.shape_cast %306 : vector<1x8x8xf32> to vector<8x8xf32>
    %308 = arith.addf %305, %307 : vector<8x8xf32>
    %cst_127 = arith.constant dense<0xFF800000> : vector<8xf32>
    %309 = vector.multi_reduction <maximumf>, %308, %cst_127 [1] : vector<8x8xf32> to vector<8xf32>
    %310 = vector.shape_cast %309 : vector<8xf32> to vector<8x1xf32>
    %311 = vector.broadcast %310 : vector<8x1xf32> to vector<8x8xf32>
    %312 = arith.subf %308, %311 : vector<8x8xf32>
    %313 = math.exp %312 : vector<8x8xf32>
    %cst_128 = arith.constant dense<0.000000e+00> : vector<8xf32>
    %314 = vector.multi_reduction <add>, %313, %cst_128 [1] : vector<8x8xf32> to vector<8xf32>
    %315 = vector.shape_cast %314 : vector<8xf32> to vector<8x1xf32>
    %316 = tpu.reciprocal %315 {approx = true} : vector<8x1xf32> -> vector<8x1xf32>
    %317 = vector.broadcast %316 : vector<8x1xf32> to vector<8x8xf32>
    %318 = arith.mulf %313, %317 : vector<8x8xf32>
    %319 = arith.truncf %318 : vector<8x8xf32> to vector<8x8xbf16>
    %320 = vector.extract_strided_slice %264 {offsets = [0, 32], sizes = [8, 16], strides = [1, 1]} : vector<8x64xbf16> to vector<8x16xbf16>
    %cst_129 = arith.constant dense<0.000000e+00> : vector<8x16xf32>
    %321 = tpu.matmul %319, %320, %cst_129 {dimension_numbers = #tpu.dot_dimension_numbers<[1], [0], [0], [1], [0, 0, 1, 1], [], []>} : vector<8x8xbf16>, vector<8x16xbf16>, vector<8x16xf32> -> vector<8x16xf32>
    %322 = vector.extract_strided_slice %260 {offsets = [0, 48], sizes = [8, 16], strides = [1, 1]} : vector<8x64xbf16> to vector<8x16xbf16>
    %323 = vector.extract_strided_slice %262 {offsets = [0, 48], sizes = [8, 16], strides = [1, 1]} : vector<8x64xbf16> to vector<8x16xbf16>
    %cst_130 = arith.constant dense<0.000000e+00> : vector<8x8xf32>
    %324 = tpu.matmul %322, %323, %cst_130 {dimension_numbers = #tpu.dot_dimension_numbers<[1], [1], [0], [0], [0, 0, 1, 0], [], []>} : vector<8x16xbf16>, vector<8x16xbf16>, vector<8x8xf32> -> vector<8x8xf32>
    %325 = vector.extract_strided_slice %4 {offsets = [3, 0, 0], sizes = [1, 8, 8], strides = [1, 1, 1]} : vector<4x8x8xf32> to vector<1x8x8xf32>
    %326 = vector.shape_cast %325 : vector<1x8x8xf32> to vector<8x8xf32>
    %327 = arith.addf %324, %326 : vector<8x8xf32>
    %cst_131 = arith.constant dense<0xFF800000> : vector<8xf32>
    %328 = vector.multi_reduction <maximumf>, %327, %cst_131 [1] : vector<8x8xf32> to vector<8xf32>
    %329 = vector.shape_cast %328 : vector<8xf32> to vector<8x1xf32>
    %330 = vector.broadcast %329 : vector<8x1xf32> to vector<8x8xf32>
    %331 = arith.subf %327, %330 : vector<8x8xf32>
    %332 = math.exp %331 : vector<8x8xf32>
    %cst_132 = arith.constant dense<0.000000e+00> : vector<8xf32>
    %333 = vector.multi_reduction <add>, %332, %cst_132 [1] : vector<8x8xf32> to vector<8xf32>
    %334 = vector.shape_cast %333 : vector<8xf32> to vector<8x1xf32>
    %335 = tpu.reciprocal %334 {approx = true} : vector<8x1xf32> -> vector<8x1xf32>
    %336 = vector.broadcast %335 : vector<8x1xf32> to vector<8x8xf32>
    %337 = arith.mulf %332, %336 : vector<8x8xf32>
    %338 = arith.truncf %337 : vector<8x8xf32> to vector<8x8xbf16>
    %339 = vector.extract_strided_slice %264 {offsets = [0, 48], sizes = [8, 16], strides = [1, 1]} : vector<8x64xbf16> to vector<8x16xbf16>
    %cst_133 = arith.constant dense<0.000000e+00> : vector<8x16xf32>
    %340 = tpu.matmul %338, %339, %cst_133 {dimension_numbers = #tpu.dot_dimension_numbers<[1], [0], [0], [1], [0, 0, 1, 1], [], []>} : vector<8x8xbf16>, vector<8x16xbf16>, vector<8x16xf32> -> vector<8x16xf32>
    %341 = tpu.concatenate %283, %302, %321, %340 in 1 : vector<8x16xf32>, vector<8x16xf32>, vector<8x16xf32>, vector<8x16xf32> -> vector<8x64xf32>
    %342 = arith.truncf %341 : vector<8x64xf32> to vector<8x64xbf16>
    %cst_134 = arith.constant dense<0.000000e+00> : vector<8x64xf32>
    %343 = tpu.matmul %342, %258, %cst_134 {dimension_numbers = #tpu.dot_dimension_numbers<[1], [0], [0], [1], [0, 0, 1, 1], [], []>} : vector<8x64xbf16>, vector<64x64xbf16>, vector<8x64xf32> -> vector<8x64xf32>
    %344 = arith.addf %235, %343 : vector<8x64xf32>
    %c1_135 = arith.constant 1 : index
    %c0_136 = arith.constant 0 : index
    %c0_137 = arith.constant 0 : index
    %345 = vector.load %arg9[%c1_135, %c0_136, %c0_137] : memref<2x1x64xf32, #tpu.memory_space<vmem>>, vector<1x1x64xf32>
    %346 = vector.shape_cast %345 : vector<1x1x64xf32> to vector<1x64xf32>
    %347 = arith.mulf %344, %344 : vector<8x64xf32>
    %cst_138 = arith.constant dense<0.000000e+00> : vector<8xf32>
    %348 = vector.multi_reduction <add>, %347, %cst_138 [1] : vector<8x64xf32> to vector<8xf32>
    %349 = vector.shape_cast %348 : vector<8xf32> to vector<8x1xf32>
    %cst_139 = arith.constant 6.400000e+01 : f32
    %350 = vector.broadcast %cst_139 : f32 to vector<8x1xf32>
    %351 = arith.divf %349, %350 : vector<8x1xf32>
    %cst_140 = arith.constant 9.99999997E-7 : f32
    %352 = vector.broadcast %cst_140 : f32 to vector<8x1xf32>
    %353 = arith.addf %351, %352 : vector<8x1xf32>
    %354 = math.rsqrt %353 : vector<8x1xf32>
    %355 = vector.broadcast %354 : vector<8x1xf32> to vector<8x64xf32>
    %356 = arith.mulf %344, %355 : vector<8x64xf32>
    %357 = vector.broadcast %346 : vector<1x64xf32> to vector<8x64xf32>
    %358 = arith.mulf %356, %357 : vector<8x64xf32>
    %359 = arith.truncf %358 : vector<8x64xf32> to vector<8x64xbf16>
    %c1_141 = arith.constant 1 : index
    %c0_142 = arith.constant 0 : index
    %c0_143 = arith.constant 0 : index
    %360 = vector.load %arg10[%c1_141, %c0_142, %c0_143] : memref<2x64x64xbf16, #tpu.memory_space<vmem>>, vector<1x64x64xbf16>
    %361 = vector.shape_cast %360 : vector<1x64x64xbf16> to vector<64x64xbf16>
    %c1_144 = arith.constant 1 : index
    %c0_145 = arith.constant 0 : index
    %c0_146 = arith.constant 0 : index
    %362 = vector.load %arg11[%c1_144, %c0_145, %c0_146] : memref<2x64x64xbf16, #tpu.memory_space<vmem>>, vector<1x64x64xbf16>
    %363 = vector.shape_cast %362 : vector<1x64x64xbf16> to vector<64x64xbf16>
    %c1_147 = arith.constant 1 : index
    %c0_148 = arith.constant 0 : index
    %c0_149 = arith.constant 0 : index
    %364 = vector.load %arg12[%c1_147, %c0_148, %c0_149] : memref<2x64x64xbf16, #tpu.memory_space<vmem>>, vector<1x64x64xbf16>
    %365 = vector.shape_cast %364 : vector<1x64x64xbf16> to vector<64x64xbf16>
    %c1_150 = arith.constant 1 : index
    %c0_151 = arith.constant 0 : index
    %c0_152 = arith.constant 0 : index
    %366 = vector.load %arg13[%c1_150, %c0_151, %c0_152] : memref<2x64x64xbf16, #tpu.memory_space<vmem>>, vector<1x64x64xbf16>
    %367 = vector.shape_cast %366 : vector<1x64x64xbf16> to vector<64x64xbf16>
    %cst_153 = arith.constant dense<0.000000e+00> : vector<8x64xf32>
    %368 = tpu.matmul %359, %361, %cst_153 {dimension_numbers = #tpu.dot_dimension_numbers<[1], [0], [0], [1], [0, 0, 1, 1], [], []>} : vector<8x64xbf16>, vector<64x64xbf16>, vector<8x64xf32> -> vector<8x64xf32>
    %369 = arith.truncf %368 : vector<8x64xf32> to vector<8x64xbf16>
    %cst_154 = arith.constant dense<0.000000e+00> : vector<8x64xf32>
    %370 = tpu.matmul %3, %363, %cst_154 {dimension_numbers = #tpu.dot_dimension_numbers<[1], [0], [0], [1], [0, 0, 1, 1], [], []>} : vector<8x64xbf16>, vector<64x64xbf16>, vector<8x64xf32> -> vector<8x64xf32>
    %371 = arith.truncf %370 : vector<8x64xf32> to vector<8x64xbf16>
    %cst_155 = arith.constant dense<0.000000e+00> : vector<8x64xf32>
    %372 = tpu.matmul %3, %365, %cst_155 {dimension_numbers = #tpu.dot_dimension_numbers<[1], [0], [0], [1], [0, 0, 1, 1], [], []>} : vector<8x64xbf16>, vector<64x64xbf16>, vector<8x64xf32> -> vector<8x64xf32>
    %373 = arith.truncf %372 : vector<8x64xf32> to vector<8x64xbf16>
    %374 = vector.extract_strided_slice %369 {offsets = [0, 0], sizes = [8, 16], strides = [1, 1]} : vector<8x64xbf16> to vector<8x16xbf16>
    %375 = vector.extract_strided_slice %371 {offsets = [0, 0], sizes = [8, 16], strides = [1, 1]} : vector<8x64xbf16> to vector<8x16xbf16>
    %cst_156 = arith.constant dense<0.000000e+00> : vector<8x8xf32>
    %376 = tpu.matmul %374, %375, %cst_156 {dimension_numbers = #tpu.dot_dimension_numbers<[1], [1], [0], [0], [0, 0, 1, 0], [], []>} : vector<8x16xbf16>, vector<8x16xbf16>, vector<8x8xf32> -> vector<8x8xf32>
    %cst_157 = arith.constant dense<0xFF800000> : vector<8xf32>
    %377 = vector.multi_reduction <maximumf>, %376, %cst_157 [1] : vector<8x8xf32> to vector<8xf32>
    %378 = vector.shape_cast %377 : vector<8xf32> to vector<8x1xf32>
    %379 = vector.broadcast %378 : vector<8x1xf32> to vector<8x8xf32>
    %380 = arith.subf %376, %379 : vector<8x8xf32>
    %381 = math.exp %380 : vector<8x8xf32>
    %cst_158 = arith.constant dense<0.000000e+00> : vector<8xf32>
    %382 = vector.multi_reduction <add>, %381, %cst_158 [1] : vector<8x8xf32> to vector<8xf32>
    %383 = vector.shape_cast %382 : vector<8xf32> to vector<8x1xf32>
    %384 = tpu.reciprocal %383 {approx = true} : vector<8x1xf32> -> vector<8x1xf32>
    %385 = vector.broadcast %384 : vector<8x1xf32> to vector<8x8xf32>
    %386 = arith.mulf %381, %385 : vector<8x8xf32>
    %387 = arith.truncf %386 : vector<8x8xf32> to vector<8x8xbf16>
    %388 = vector.extract_strided_slice %373 {offsets = [0, 0], sizes = [8, 16], strides = [1, 1]} : vector<8x64xbf16> to vector<8x16xbf16>
    %cst_159 = arith.constant dense<0.000000e+00> : vector<8x16xf32>
    %389 = tpu.matmul %387, %388, %cst_159 {dimension_numbers = #tpu.dot_dimension_numbers<[1], [0], [0], [1], [0, 0, 1, 1], [], []>} : vector<8x8xbf16>, vector<8x16xbf16>, vector<8x16xf32> -> vector<8x16xf32>
    %390 = vector.extract_strided_slice %369 {offsets = [0, 16], sizes = [8, 16], strides = [1, 1]} : vector<8x64xbf16> to vector<8x16xbf16>
    %391 = vector.extract_strided_slice %371 {offsets = [0, 16], sizes = [8, 16], strides = [1, 1]} : vector<8x64xbf16> to vector<8x16xbf16>
    %cst_160 = arith.constant dense<0.000000e+00> : vector<8x8xf32>
    %392 = tpu.matmul %390, %391, %cst_160 {dimension_numbers = #tpu.dot_dimension_numbers<[1], [1], [0], [0], [0, 0, 1, 0], [], []>} : vector<8x16xbf16>, vector<8x16xbf16>, vector<8x8xf32> -> vector<8x8xf32>
    %cst_161 = arith.constant dense<0xFF800000> : vector<8xf32>
    %393 = vector.multi_reduction <maximumf>, %392, %cst_161 [1] : vector<8x8xf32> to vector<8xf32>
    %394 = vector.shape_cast %393 : vector<8xf32> to vector<8x1xf32>
    %395 = vector.broadcast %394 : vector<8x1xf32> to vector<8x8xf32>
    %396 = arith.subf %392, %395 : vector<8x8xf32>
    %397 = math.exp %396 : vector<8x8xf32>
    %cst_162 = arith.constant dense<0.000000e+00> : vector<8xf32>
    %398 = vector.multi_reduction <add>, %397, %cst_162 [1] : vector<8x8xf32> to vector<8xf32>
    %399 = vector.shape_cast %398 : vector<8xf32> to vector<8x1xf32>
    %400 = tpu.reciprocal %399 {approx = true} : vector<8x1xf32> -> vector<8x1xf32>
    %401 = vector.broadcast %400 : vector<8x1xf32> to vector<8x8xf32>
    %402 = arith.mulf %397, %401 : vector<8x8xf32>
    %403 = arith.truncf %402 : vector<8x8xf32> to vector<8x8xbf16>
    %404 = vector.extract_strided_slice %373 {offsets = [0, 16], sizes = [8, 16], strides = [1, 1]} : vector<8x64xbf16> to vector<8x16xbf16>
    %cst_163 = arith.constant dense<0.000000e+00> : vector<8x16xf32>
    %405 = tpu.matmul %403, %404, %cst_163 {dimension_numbers = #tpu.dot_dimension_numbers<[1], [0], [0], [1], [0, 0, 1, 1], [], []>} : vector<8x8xbf16>, vector<8x16xbf16>, vector<8x16xf32> -> vector<8x16xf32>
    %406 = vector.extract_strided_slice %369 {offsets = [0, 32], sizes = [8, 16], strides = [1, 1]} : vector<8x64xbf16> to vector<8x16xbf16>
    %407 = vector.extract_strided_slice %371 {offsets = [0, 32], sizes = [8, 16], strides = [1, 1]} : vector<8x64xbf16> to vector<8x16xbf16>
    %cst_164 = arith.constant dense<0.000000e+00> : vector<8x8xf32>
    %408 = tpu.matmul %406, %407, %cst_164 {dimension_numbers = #tpu.dot_dimension_numbers<[1], [1], [0], [0], [0, 0, 1, 0], [], []>} : vector<8x16xbf16>, vector<8x16xbf16>, vector<8x8xf32> -> vector<8x8xf32>
    %cst_165 = arith.constant dense<0xFF800000> : vector<8xf32>
    %409 = vector.multi_reduction <maximumf>, %408, %cst_165 [1] : vector<8x8xf32> to vector<8xf32>
    %410 = vector.shape_cast %409 : vector<8xf32> to vector<8x1xf32>
    %411 = vector.broadcast %410 : vector<8x1xf32> to vector<8x8xf32>
    %412 = arith.subf %408, %411 : vector<8x8xf32>
    %413 = math.exp %412 : vector<8x8xf32>
    %cst_166 = arith.constant dense<0.000000e+00> : vector<8xf32>
    %414 = vector.multi_reduction <add>, %413, %cst_166 [1] : vector<8x8xf32> to vector<8xf32>
    %415 = vector.shape_cast %414 : vector<8xf32> to vector<8x1xf32>
    %416 = tpu.reciprocal %415 {approx = true} : vector<8x1xf32> -> vector<8x1xf32>
    %417 = vector.broadcast %416 : vector<8x1xf32> to vector<8x8xf32>
    %418 = arith.mulf %413, %417 : vector<8x8xf32>
    %419 = arith.truncf %418 : vector<8x8xf32> to vector<8x8xbf16>
    %420 = vector.extract_strided_slice %373 {offsets = [0, 32], sizes = [8, 16], strides = [1, 1]} : vector<8x64xbf16> to vector<8x16xbf16>
    %cst_167 = arith.constant dense<0.000000e+00> : vector<8x16xf32>
    %421 = tpu.matmul %419, %420, %cst_167 {dimension_numbers = #tpu.dot_dimension_numbers<[1], [0], [0], [1], [0, 0, 1, 1], [], []>} : vector<8x8xbf16>, vector<8x16xbf16>, vector<8x16xf32> -> vector<8x16xf32>
    %422 = vector.extract_strided_slice %369 {offsets = [0, 48], sizes = [8, 16], strides = [1, 1]} : vector<8x64xbf16> to vector<8x16xbf16>
    %423 = vector.extract_strided_slice %371 {offsets = [0, 48], sizes = [8, 16], strides = [1, 1]} : vector<8x64xbf16> to vector<8x16xbf16>
    %cst_168 = arith.constant dense<0.000000e+00> : vector<8x8xf32>
    %424 = tpu.matmul %422, %423, %cst_168 {dimension_numbers = #tpu.dot_dimension_numbers<[1], [1], [0], [0], [0, 0, 1, 0], [], []>} : vector<8x16xbf16>, vector<8x16xbf16>, vector<8x8xf32> -> vector<8x8xf32>
    %cst_169 = arith.constant dense<0xFF800000> : vector<8xf32>
    %425 = vector.multi_reduction <maximumf>, %424, %cst_169 [1] : vector<8x8xf32> to vector<8xf32>
    %426 = vector.shape_cast %425 : vector<8xf32> to vector<8x1xf32>
    %427 = vector.broadcast %426 : vector<8x1xf32> to vector<8x8xf32>
    %428 = arith.subf %424, %427 : vector<8x8xf32>
    %429 = math.exp %428 : vector<8x8xf32>
    %cst_170 = arith.constant dense<0.000000e+00> : vector<8xf32>
    %430 = vector.multi_reduction <add>, %429, %cst_170 [1] : vector<8x8xf32> to vector<8xf32>
    %431 = vector.shape_cast %430 : vector<8xf32> to vector<8x1xf32>
    %432 = tpu.reciprocal %431 {approx = true} : vector<8x1xf32> -> vector<8x1xf32>
    %433 = vector.broadcast %432 : vector<8x1xf32> to vector<8x8xf32>
    %434 = arith.mulf %429, %433 : vector<8x8xf32>
    %435 = arith.truncf %434 : vector<8x8xf32> to vector<8x8xbf16>
    %436 = vector.extract_strided_slice %373 {offsets = [0, 48], sizes = [8, 16], strides = [1, 1]} : vector<8x64xbf16> to vector<8x16xbf16>
    %cst_171 = arith.constant dense<0.000000e+00> : vector<8x16xf32>
    %437 = tpu.matmul %435, %436, %cst_171 {dimension_numbers = #tpu.dot_dimension_numbers<[1], [0], [0], [1], [0, 0, 1, 1], [], []>} : vector<8x8xbf16>, vector<8x16xbf16>, vector<8x16xf32> -> vector<8x16xf32>
    %438 = tpu.concatenate %389, %405, %421, %437 in 1 : vector<8x16xf32>, vector<8x16xf32>, vector<8x16xf32>, vector<8x16xf32> -> vector<8x64xf32>
    %439 = arith.truncf %438 : vector<8x64xf32> to vector<8x64xbf16>
    %cst_172 = arith.constant dense<0.000000e+00> : vector<8x64xf32>
    %440 = tpu.matmul %439, %367, %cst_172 {dimension_numbers = #tpu.dot_dimension_numbers<[1], [0], [0], [1], [0, 0, 1, 1], [], []>} : vector<8x64xbf16>, vector<64x64xbf16>, vector<8x64xf32> -> vector<8x64xf32>
    %441 = arith.addf %344, %440 : vector<8x64xf32>
    %c1_173 = arith.constant 1 : index
    %c0_174 = arith.constant 0 : index
    %c0_175 = arith.constant 0 : index
    %442 = vector.load %arg14[%c1_173, %c0_174, %c0_175] : memref<2x1x64xf32, #tpu.memory_space<vmem>>, vector<1x1x64xf32>
    %443 = vector.shape_cast %442 : vector<1x1x64xf32> to vector<1x64xf32>
    %444 = arith.mulf %441, %441 : vector<8x64xf32>
    %cst_176 = arith.constant dense<0.000000e+00> : vector<8xf32>
    %445 = vector.multi_reduction <add>, %444, %cst_176 [1] : vector<8x64xf32> to vector<8xf32>
    %446 = vector.shape_cast %445 : vector<8xf32> to vector<8x1xf32>
    %cst_177 = arith.constant 6.400000e+01 : f32
    %447 = vector.broadcast %cst_177 : f32 to vector<8x1xf32>
    %448 = arith.divf %446, %447 : vector<8x1xf32>
    %cst_178 = arith.constant 9.99999997E-7 : f32
    %449 = vector.broadcast %cst_178 : f32 to vector<8x1xf32>
    %450 = arith.addf %448, %449 : vector<8x1xf32>
    %451 = math.rsqrt %450 : vector<8x1xf32>
    %452 = vector.broadcast %451 : vector<8x1xf32> to vector<8x64xf32>
    %453 = arith.mulf %441, %452 : vector<8x64xf32>
    %454 = vector.broadcast %443 : vector<1x64xf32> to vector<8x64xf32>
    %455 = arith.mulf %453, %454 : vector<8x64xf32>
    %456 = arith.truncf %455 : vector<8x64xf32> to vector<8x64xbf16>
    %c1_179 = arith.constant 1 : index
    %c0_180 = arith.constant 0 : index
    %c0_181 = arith.constant 0 : index
    %457 = vector.load %arg15[%c1_179, %c0_180, %c0_181] : memref<2x64x128xbf16, #tpu.memory_space<vmem>>, vector<1x64x128xbf16>
    %458 = vector.shape_cast %457 : vector<1x64x128xbf16> to vector<64x128xbf16>
    %cst_182 = arith.constant dense<0.000000e+00> : vector<8x128xf32>
    %459 = tpu.matmul %456, %458, %cst_182 {dimension_numbers = #tpu.dot_dimension_numbers<[1], [0], [0], [1], [0, 0, 1, 1], [], []>} : vector<8x64xbf16>, vector<64x128xbf16>, vector<8x128xf32> -> vector<8x128xf32>
    %cst_183 = arith.constant 0.000000e+00 : f32
    %460 = vector.broadcast %cst_183 : f32 to vector<8x128xf32>
    %461 = arith.maximumf %459, %460 : vector<8x128xf32>
    %462 = arith.truncf %461 : vector<8x128xf32> to vector<8x128xbf16>
    %c1_184 = arith.constant 1 : index
    %c0_185 = arith.constant 0 : index
    %c0_186 = arith.constant 0 : index
    %463 = vector.load %arg16[%c1_184, %c0_185, %c0_186] : memref<2x128x64xbf16, #tpu.memory_space<vmem>>, vector<1x128x64xbf16>
    %464 = vector.shape_cast %463 : vector<1x128x64xbf16> to vector<128x64xbf16>
    %cst_187 = arith.constant dense<0.000000e+00> : vector<8x64xf32>
    %465 = tpu.matmul %462, %464, %cst_187 {dimension_numbers = #tpu.dot_dimension_numbers<[1], [0], [0], [1], [0, 0, 1, 1], [], []>} : vector<8x128xbf16>, vector<128x64xbf16>, vector<8x64xf32> -> vector<8x64xf32>
    %466 = arith.addf %441, %465 : vector<8x64xf32>
    %c0_188 = arith.constant 0 : index
    %c0_189 = arith.constant 0 : index
    %467 = vector.load %arg17[%c0_188, %c0_189] : memref<1x64xf32, #tpu.memory_space<vmem>>, vector<1x64xf32>
    %468 = arith.mulf %466, %466 : vector<8x64xf32>
    %cst_190 = arith.constant dense<0.000000e+00> : vector<8xf32>
    %469 = vector.multi_reduction <add>, %468, %cst_190 [1] : vector<8x64xf32> to vector<8xf32>
    %470 = vector.shape_cast %469 : vector<8xf32> to vector<8x1xf32>
    %cst_191 = arith.constant 6.400000e+01 : f32
    %471 = vector.broadcast %cst_191 : f32 to vector<8x1xf32>
    %472 = arith.divf %470, %471 : vector<8x1xf32>
    %cst_192 = arith.constant 9.99999997E-7 : f32
    %473 = vector.broadcast %cst_192 : f32 to vector<8x1xf32>
    %474 = arith.addf %472, %473 : vector<8x1xf32>
    %475 = math.rsqrt %474 : vector<8x1xf32>
    %476 = vector.broadcast %475 : vector<8x1xf32> to vector<8x64xf32>
    %477 = arith.mulf %466, %476 : vector<8x64xf32>
    %478 = vector.broadcast %467 : vector<1x64xf32> to vector<8x64xf32>
    %479 = arith.mulf %477, %478 : vector<8x64xf32>
    %cst_193 = arith.constant 0.0360843912 : f32
    %480 = vector.broadcast %cst_193 : f32 to vector<8x64xf32>
    %481 = arith.mulf %479, %480 : vector<8x64xf32>
    %482 = arith.truncf %481 : vector<8x64xf32> to vector<8x64xbf16>
    %c0_194 = arith.constant 0 : index
    %c0_195 = arith.constant 0 : index
    %483 = vector.load %arg18[%c0_194, %c0_195] : memref<64x128xbf16, #tpu.memory_space<vmem>>, vector<64x128xbf16>
    %cst_196 = arith.constant dense<0.000000e+00> : vector<8x128xf32>
    %484 = tpu.matmul %482, %483, %cst_196 {dimension_numbers = #tpu.dot_dimension_numbers<[1], [0], [0], [1], [0, 0, 1, 1], [], []>} : vector<8x64xbf16>, vector<64x128xbf16>, vector<8x128xf32> -> vector<8x128xf32>
    %c0_197 = arith.constant 0 : index
    %c0_198 = arith.constant 0 : index
    %c0_199 = arith.constant 0 : index
    %485 = vector.load %arg19[%c0_197, %c0_198, %c0_199] : memref<1x8x128xf32, #tpu.memory_space<vmem>>, vector<1x8x128xf32>
    %486 = vector.shape_cast %485 : vector<1x8x128xf32> to vector<8x128xf32>
    %487 = vector.shape_cast %484 : vector<8x128xf32> to vector<1x8x128xf32>
    tpu.vector_store %arg19[%c0_197, %c0_198, %c0_199], %487 {strides = array<i32>} : memref<1x8x128xf32, #tpu.memory_space<vmem>>, vector<1x8x128xf32>,
    return
  }
  func.func @transform_0(%arg0: i32) -> (i32, i32, i32) {
    %c0_i32 = arith.constant 0 : i32
    %c0_i32_0 = arith.constant 0 : i32
    %c0_i32_1 = arith.constant 0 : i32
    return %arg0, %c0_i32, %c0_i32_0 : i32, i32, i32
  }
  func.func @transform_1(%arg0: i32) -> (i32, i32, i32) {
    %c0_i32 = arith.constant 0 : i32
    %c0_i32_0 = arith.constant 0 : i32
    %c0_i32_1 = arith.constant 0 : i32
    return %arg0, %c0_i32, %c0_i32_0 : i32, i32, i32
  }
  func.func @transform_2(%arg0: i32) -> (i32, i32, i32) {
    %c0_i32 = arith.constant 0 : i32
    %c0_i32_0 = arith.constant 0 : i32
    %c0_i32_1 = arith.constant 0 : i32
    %c0_i32_2 = arith.constant 0 : i32
    return %c0_i32, %c0_i32_0, %c0_i32_1 : i32, i32, i32
  }
  func.func @transform_3(%arg0: i32) -> (i32, i32, i32) {
    %c0_i32 = arith.constant 0 : i32
    %c0_i32_0 = arith.constant 0 : i32
    %c0_i32_1 = arith.constant 0 : i32
    %c0_i32_2 = arith.constant 0 : i32
    return %c0_i32, %c0_i32_0, %c0_i32_1 : i32, i32, i32
  }
  func.func @transform_4(%arg0: i32) -> (i32, i32, i32) {
    %c0_i32 = arith.constant 0 : i32
    %c0_i32_0 = arith.constant 0 : i32
    %c0_i32_1 = arith.constant 0 : i32
    %c0_i32_2 = arith.constant 0 : i32
    return %c0_i32, %c0_i32_0, %c0_i32_1 : i32, i32, i32
  }
  func.func @transform_5(%arg0: i32) -> (i32, i32, i32) {
    %c0_i32 = arith.constant 0 : i32
    %c0_i32_0 = arith.constant 0 : i32
    %c0_i32_1 = arith.constant 0 : i32
    %c0_i32_2 = arith.constant 0 : i32
    return %c0_i32, %c0_i32_0, %c0_i32_1 : i32, i32, i32
  }
  func.func @transform_6(%arg0: i32) -> (i32, i32, i32) {
    %c0_i32 = arith.constant 0 : i32
    %c0_i32_0 = arith.constant 0 : i32
    %c0_i32_1 = arith.constant 0 : i32
    %c0_i32_2 = arith.constant 0 : i32
    return %c0_i32, %c0_i32_0, %c0_i32_1 : i32, i32, i32
  }
  func.func @transform_7(%arg0: i32) -> (i32, i32, i32) {
    %c0_i32 = arith.constant 0 : i32
    %c0_i32_0 = arith.constant 0 : i32
    %c0_i32_1 = arith.constant 0 : i32
    %c0_i32_2 = arith.constant 0 : i32
    return %c0_i32, %c0_i32_0, %c0_i32_1 : i32, i32, i32
  }
  func.func @transform_8(%arg0: i32) -> (i32, i32, i32) {
    %c0_i32 = arith.constant 0 : i32
    %c0_i32_0 = arith.constant 0 : i32
    %c0_i32_1 = arith.constant 0 : i32
    %c0_i32_2 = arith.constant 0 : i32
    return %c0_i32, %c0_i32_0, %c0_i32_1 : i32, i32, i32
  }
  func.func @transform_9(%arg0: i32) -> (i32, i32, i32) {
    %c0_i32 = arith.constant 0 : i32
    %c0_i32_0 = arith.constant 0 : i32
    %c0_i32_1 = arith.constant 0 : i32
    %c0_i32_2 = arith.constant 0 : i32
    return %c0_i32, %c0_i32_0, %c0_i32_1 : i32, i32, i32
  }
  func.func @transform_10(%arg0: i32) -> (i32, i32, i32) {
    %c0_i32 = arith.constant 0 : i32
    %c0_i32_0 = arith.constant 0 : i32
    %c0_i32_1 = arith.constant 0 : i32
    %c0_i32_2 = arith.constant 0 : i32
    return %c0_i32, %c0_i32_0, %c0_i32_1 : i32, i32, i32
  }
  func.func @transform_11(%arg0: i32) -> (i32, i32, i32) {
    %c0_i32 = arith.constant 0 : i32
    %c0_i32_0 = arith.constant 0 : i32
    %c0_i32_1 = arith.constant 0 : i32
    %c0_i32_2 = arith.constant 0 : i32
    return %c0_i32, %c0_i32_0, %c0_i32_1 : i32, i32, i32
  }
  func.func @transform_12(%arg0: i32) -> (i32, i32, i32) {
    %c0_i32 = arith.constant 0 : i32
    %c0_i32_0 = arith.constant 0 : i32
    %c0_i32_1 = arith.constant 0 : i32
    %c0_i32_2 = arith.constant 0 : i32
    return %c0_i32, %c0_i32_0, %c0_i32_1 : i32, i32, i32
  }
  func.func @transform_13(%arg0: i32) -> (i32, i32, i32) {
    %c0_i32 = arith.constant 0 : i32
    %c0_i32_0 = arith.constant 0 : i32
    %c0_i32_1 = arith.constant 0 : i32
    %c0_i32_2 = arith.constant 0 : i32
    return %c0_i32, %c0_i32_0, %c0_i32_1 : i32, i32, i32
  }
  func.func @transform_14(%arg0: i32) -> (i32, i32, i32) {
    %c0_i32 = arith.constant 0 : i32
    %c0_i32_0 = arith.constant 0 : i32
    %c0_i32_1 = arith.constant 0 : i32
    %c0_i32_2 = arith.constant 0 : i32
    return %c0_i32, %c0_i32_0, %c0_i32_1 : i32, i32, i32
  }
  func.func @transform_15(%arg0: i32) -> (i32, i32, i32) {
    %c0_i32 = arith.constant 0 : i32
    %c0_i32_0 = arith.constant 0 : i32
    %c0_i32_1 = arith.constant 0 : i32
    %c0_i32_2 = arith.constant 0 : i32
    return %c0_i32, %c0_i32_0, %c0_i32_1 : i32, i32, i32
  }
  func.func @transform_16(%arg0: i32) -> (i32, i32) {
    %c0_i32 = arith.constant 0 : i32
    %c0_i32_0 = arith.constant 0 : i32
    %c0_i32_1 = arith.constant 0 : i32
    return %c0_i32, %c0_i32_0 : i32, i32
  }
  func.func @transform_17(%arg0: i32) -> (i32, i32) {
    %c0_i32 = arith.constant 0 : i32
    %c0_i32_0 = arith.constant 0 : i32
    %c0_i32_1 = arith.constant 0 : i32
    return %c0_i32, %c0_i32_0 : i32, i32
  }
  func.func @transform_18(%arg0: i32) -> (i32, i32, i32) {
    %c0_i32 = arith.constant 0 : i32
    %c0_i32_0 = arith.constant 0 : i32
    %c0_i32_1 = arith.constant 0 : i32
    return %arg0, %c0_i32, %c0_i32_0 : i32, i32, i32
  }
}

</mosaic_0001>

<bundles_post_ra>
// kernel: decoder_model_forward.1
= control target key start
LH: loop header
LB: loop body
LE: loop exit
PB: predicated region body
PF: predicated region fallthrough
CT: control target
= control target key end

     0   :  { %s6435_s0 = inlined_call_operand.vmem [shape: f32[2,8,64], index: 0, kind: input, shape index: {}]   ;;  %s6436_s1 = inlined_call_operand.vmem [shape: bf16[2,8,64], index: 1, kind: input, shape index: {}]   ;;  %s6437_s2 = inlined_call_operand.vmem [shape: f32[4,8,8], index: 2, kind: input, shape index: {}]   ;;  %s6438_s3 = inlined_call_operand.vmem [shape: f32[2,1,64], index: 3, kind: input, shape index: {}]   ;;  %s6439_s4 = inlined_call_operand.vmem [shape: bf16[2,64,64], index: 4, kind: input, shape index: {}]   ;;  %s6440_s5 = inlined_call_operand.vmem [shape: bf16[2,64,64], index: 5, kind: input, shape index: {}]   ;;  %s6441_s6 = inlined_call_operand.vmem [shape: bf16[2,64,64], index: 6, kind: input, shape index: {}]   ;;  %s6442_s7 = inlined_call_operand.vmem [shape: bf16[2,64,64], index: 7, kind: input, shape index: {}]   ;;  %s6443_s8 = inlined_call_operand.vmem [shape: f32[2,1,64], index: 8, kind: input, shape index: {}]   ;;  %s6444_s9 = inlined_call_operand.vmem [shape: bf16[2,64,64], index: 9, kind: input, shape index: {}]   ;;  %s6445_s10 = inlined_call_operand.vmem [shape: bf16[2,64,64], index: 10, kind: input, shape index: {}]   ;;  %s6446_s11 = inlined_call_operand.vmem [shape: bf16[2,64,64], index: 11, kind: input, shape index: {}]   ;;  %s6447_s12 = inlined_call_operand.vmem [shape: bf16[2,64,64], index: 12, kind: input, shape index: {}]   ;;  %s6448_s13 = inlined_call_operand.vmem [shape: f32[2,1,64], index: 13, kind: input, shape index: {}]   ;;  %s6449_s14 = inlined_call_operand.vmem [shape: bf16[2,64,128], index: 14, kind: input, shape index: {}]   ;;  %s6450_s15 = inlined_call_operand.vmem [shape: bf16[2,128,64], index: 15, kind: input, shape index: {}]   ;;  %s6451_s16 = inlined_call_operand.vmem [shape: f32[1,64], index: 16, kind: input, shape index: {}]   ;;  %s6452_s17 = inlined_call_operand.vmem [shape: bf16[64,128], index: 17, kind: input, shape index: {}]   ;;  %s6453_s18 = inlined_call_operand.hbm [shape: f32[2,8,128], index: 18, kind: output, shape index: {}]  }
   0x1   :  { %6477 = sst [smem:[#allocation13_spill]] %s6435_s0 }
   0x2   :  { %6478 = sst [smem:[#allocation14_spill]] %s6436_s1 }
   0x3   :  { %6479 = sst [smem:[#allocation15_spill]] %s6437_s2 }
   0x4   :  { %6480 = sst [smem:[#allocation16_spill]] %s6451_s16 }
   0x5   :  { %6481 = sst [smem:[#allocation17_spill]] %s6453_s18 }
   0x6   :  { %23 = vsyncpa [#allocation3], 0 }
   0x7   :  { %25 = vsyncpa [#allocation3 + $0x1], 0  ;;  %s5546_s27 = smov 0   ;;  %s5548_s28 = smov 0  }
   0x8   :  { %s5550_s29 = smov 0   ;;  %s5552_s30 = smov 0  }
   0x9 LB: > { %6482 = sst [smem:[#allocation5_spill]] %s5428_s27  ;;  %s5567_s0 = sadd.s32 4294967295, %s5440_s30   ;;  %s5440_s30 = sphi %s5552_s30, %s6508_s30   ;;  %s5436_s29 = sphi %s5550_s29, %s6513_s29   ;;  %s5432_s28 = sphi %s5548_s28, %s6512_s28   ;;  %s5428_s27 = sphi %s5546_s27, %s6511_s27  }
   0xa   : > { %6483 = sst [smem:[#allocation6_spill]] %s5436_s29  ;;  %s4267_s19 = sadd.s32 4294967294, %s5440_s30  }
   0xb   : > { %6484 = sst [smem:[#allocation7_spill]] %s5440_s30  ;;  %s5571_s1 = sadd.s32 1, %s5440_s30  }
   0xc   : > { %6485 = sst [smem:[#allocation8_spill]] %s5567_s0  ;;  %s426_s20 = sadd.s32 1, %s5436_s29 }
   0xd   : > { %6486 = sst [smem:[#allocation9_spill]] %s5571_s1  ;;  %s423_s21 = ssub.s32 %s5440_s30, %s5571_s1 }
   0xe   : > { %p436_p0 = scmp.ne.s32.totalorder %s5436_s29, %s5432_s28  ;;  %p424_p1 = scmp.eq.s32.totalorder %s423_s21, 0 }
   0xf   : > { %p437_p2 = scmp.eq.s32.totalorder %s5567_s0, 1  ;;  %p442_p3 = scmp.ne.s32.totalorder %s5432_s28, %s5428_s27 }
  0x10   : > { %p443_p4 = scmp.eq.s32.totalorder %s4267_s19, 1  ;;  %p4270_p7 = scmp.ge.s32.totalorder %s5440_s30, 1 }
  0x11   : > { %s5582_s22 = scalar_select %p424_p1, %s5436_s29, %s426_s20  }
  0x12   : > { %p5584_p5 = por %p437_p2, %p436_p0  ;;  %p5588_p6 = por %p443_p4, %p442_p3 }
  0x13   : > { %6487 = sst [smem:[#allocation10_spill]] %s5582_s22  ;;  %p523_p8 = scmp.lt.s32.totalorder %s5440_s30, 3 }
  0x14   : > { %s6488_s2 = scalar_select %p5584_p5, 1, 0 }
  0x15   : > { %s6490_s23 = scalar_select %p5588_p6, 1, 0 }
  0x16   : > { %6489 = sst [smem:[#allocation11_spill]] %s6488_s2  ;;  %p524_p9 = pnand %p4270_p7, %p523_p8 }
  0x17   : > { %6491 = sst [smem:[#allocation12_spill]] %s6490_s23  ;;  %p580_p10 = scmp.lt.s32.totalorder (!%p524_p9), %s5567_s0, 1  ;;  %vm597_vm0 = vcmask (!%p524_p9), 523264   ;;  %v5203_v3 = vld [vmem:[%s6439_s4] sm:$0xff] (!%p524_p9)   ;;  %v5442_v4 = vmov (!%p524_p9), 0.0   ;;  %v5205_v6 = vld [vmem:[%s6439_s4 + $0x8] sm:$0xff] (!%p524_p9)  }
  0x18   : > { %527 = sbr.rel (%p524_p9) target bundleno = 8497 (0x2131), region = 92  ;;  %s6492_s20 = sld [smem:[#allocation13_spill]] (!%p524_p9)  ;;  %4696 = vmatprep.subr.bf16.mxu0 (!%p524_p9), %v5442_v4  ;;  %4708 = vmatprep.subr.bf16.mxu1 (!%p524_p9), %v5442_v4  ;;  %v5204_v5 = vld [vmem:[%s6440_s5] sm:$0xff] (!%p524_p9)   ;;  %vm5443_vm1 = vmmov (!%p524_p9), 0   ;;  %v5206_v7 = vld [vmem:[%s6440_s5 + $0x8] sm:$0xff] (!%p524_p9)   ;;  %v5207_v8 = vld [vmem:[%s6439_s4 + $0x10] sm:$0xff] (!%p524_p9)  }
  0x19   : > { %4697 = vmatpush3.bf16.msra.mxu0 (!%p524_p9), %v5203_v3  ;;  %4704 = vmatprep.mubr.msk.bf16.mxu0 (!%p524_p9), %vm5443_vm1, %v5442_v4  ;;  %v5208_v9 = vld [vmem:[%s6440_s5 + $0x10] sm:$0xff] (!%p524_p9)   ;;  %v5209_v10 = vld [vmem:[%s6439_s4 + $0x18] sm:$0xff] (!%p524_p9)   ;;  %v4274_v16 = vld [vmem:[%s6438_s3] ss:$0 sm:$0xff] (!%p524_p9)  ;;  %vm844_vm2 = vcmask (!%p524_p9), 130048   ;;  %vm907_vm3 = vcmask (!%p524_p9), 1043456  }
  0x1a   : > { %4709 = vmatpush3.bf16.msra.mxu1 (!%p524_p9), %v5204_v5  ;;  %4698 = vmatprep.subr.bf16.mxu0 (!%p524_p9), %v5442_v4  ;;  %v5210_v11 = vld [vmem:[%s6440_s5 + $0x18] sm:$0xff] (!%p524_p9)   ;;  %v5211_v19 = vld [vmem:[%s6441_s6] sm:$0xff] (!%p524_p9)   ;;  %v5212_v21 = vld [vmem:[%s6441_s6 + $0x8] sm:$0xff] (!%p524_p9)   ;;  %s6493_s22 = sld [smem:[#allocation15_spill]] (!%p524_p9)  ;;  %vm891_vm4 = vcmask (!%p524_p9), 64512   ;;  %s6458_s26 = smov (!%p524_p9), 80  }
  0x1b   : > { %4710 = vmatprep.subr.bf16.mxu1 (!%p524_p9), %v5442_v4  ;;  %4716 = vmatprep.mubr.msk.bf16.mxu1 (!%p524_p9), %vm5443_vm1, %v5442_v4  ;;  %v5213_v22 = vld [vmem:[%s6441_s6 + $0x10] sm:$0xff] (!%p524_p9)   ;;  %v5214_v23 = vld [vmem:[%s6441_s6 + $0x18] sm:$0xff] (!%p524_p9)   ;;  %s6470_s27 = smov (!%p524_p9), 16   ;;  %s6468_s1 = smov (!%p524_p9), 32   ;;  %vm1297_vm5 = vcmask (!%p524_p9), 261120   ;;  %vm1299_vm6 = vcmask (!%p524_p9), 392192  }
  0x1c   : > { %s6466_s23 = smov (!%p524_p9), 48   ;;  %s6496_s29 = sld [smem:[#allocation14_spill]] (!%p524_p9) }
  0x1d   : > { %4699 = vmatpush3.bf16.msra.mxu0 (!%p524_p9), %v5205_v6 }
  0x1e   : > { %4711 = vmatpush3.bf16.msra.mxu1 (!%p524_p9), %v5206_v7  ;;  %4700 = vmatprep.subr.bf16.mxu0 (!%p524_p9), %v5442_v4 }
  0x1f   : > { %s5596_s24 = scalar_select %p580_p10, %s5567_s0, 1  ;;  %4712 = vmatprep.subr.bf16.mxu1 %v5442_v4 }
  0x20   : > { %v591_v41 = vld [vmem:[%s6493_s22] sm:$0xff]  ;;  %v593_v3 = vld [vmem:[%s6493_s22 + $0x10] sm:$0xff] }
  0x21   : > { %s4272_s25 = sshll.u32 %s5596_s24, 3  ;;  %4701 = vmatpush3.bf16.msra.mxu0 %v5207_v8 }
  0x22   : > { %s583_s21 = scalar_lea.vmem %s6492_s20, %s4272_s25  ;;  %4713 = vmatpush3.bf16.msra.mxu1 %v5208_v9  ;;  %4702 = vmatprep.subr.bf16.mxu0 %v5442_v4  ;;  %s6456_s25 = smov 96  }
  0x23   : > { %v5602_v0 = vld [vmem:[%s583_s21] sm:$0xff]  ;;  %4714 = vmatprep.subr.bf16.mxu1 %v5442_v4  ;;  %s6460_s21 = smov 112  }
  0x24   : > { %v596_v1 = vmul.f32 %v5602_v0, %v5602_v0 }
  0x25   : > { %4703 = vmatpush3.bf16.msra.mxu0 %v5209_v10 }
  0x26   : > { %v598_v2 = vsel %vm597_vm0, %v596_v1, 0.0  ;;  %4715 = vmatpush3.bf16.msra.mxu1 %v5210_v11  ;;  %4720 = vmatprep.subr.bf16.mxu0 %v5442_v4 }
  0x27   : > { %599 = vadd.xlane.f32.xlu0 %v598_v2  ;;  %4732 = vmatprep.subr.bf16.mxu1 %v5442_v4 }
  0xb4   : > { %v600_v12 = vpop.xlane.xlu0 %599 }
  0xb5   : > { %v602_v13 = vmul.f32 0.015625, %v600_v12 }
  0xb7   : > { %v603_v14 = vadd.f32 1e-06, %v602_v13 }
  0xb9   : > { %5295 = vrsqrt.f32 %v603_v14 }
  0xc3   : > { %v5296_v15 = vpop.eup %5295 }
  0xc4   : > { %v605_v17 = vmul.f32 %v5296_v15, %v5602_v0  ;;  %v592_v15 = vld [vmem:[%s6493_s22 + $0x8] sm:$0xff] }
  0xc6   : > { %v612_v18 = vmul.f32 %v4274_v16, %v605_v17  ;;  %v594_v16 = vld [vmem:[%s6493_s22 + $0x18] sm:$0xff] }
  0xc8   : > { %v613_v20 = vpack.c.bf16 %v612_v18, %v612_v18 }
  0xca   : > { %4705 = vmatmul.mubr.msk.bf16.vlgmr.msra.gmra.mrb[0].mxu0 %vm597_vm0, %v613_v20  ;;  %4717 = vmatmul.mubr.msk.bf16.vlgmr.msra.gmra.mrb[0].mxu1 %vm597_vm0, %v613_v20 }
  0xcb   : > { %4721 = vmatpush3.bf16.msra.mxu0 %v5211_v19  ;;  %4728 = vmatprep.mubr.msk.bf16.mxu0 %vm5443_vm1, %v5442_v4 }
  0xcc   : > { %4722 = vmatprep.subr.bf16.mxu0 %v5442_v4  ;;  %4734 = vmatprep.mubr.msk.bf16.mxu1 %vm5443_vm1, %v5442_v4 }
  0xcf   : > { %4723 = vmatpush3.bf16.msra.mxu0 %v5212_v21 }
  0xd0   : > { %4724 = vmatprep.subr.bf16.mxu0 %v5442_v4 }
  0xd3   : > { %4725 = vmatpush3.bf16.msra.mxu0 %v5213_v22 }
  0xd4   : > { %4726 = vmatprep.subr.bf16.mxu0 %v5442_v4 }
  0xd7   : > { %4727 = vmatpush3.bf16.msra.mxu0 %v5214_v23 }
  0xd8   : > { %4756 = vmatprep.subr.bf16.mxu0 %v5442_v4 }
  0xda   : > { %4729 = vmatmul.mubr.msk.bf16.vlgmr.msra.gmra.mrb[4].mxu0 %vm597_vm0, %v613_v20 }
  0xdb   : > { %4758 = vmatprep.mubr.msk.bf16.mxu0 %vm5443_vm1, %v5442_v4 }
 0x19d   : > { %v707_v24 = vpop.f32.mrb[0].mxu0  ;;  %v772_v25 = vpop.f32.mrb[0].mxu1 }
 0x19e   : > { %v778_v26 = vpack.c.bf16 %v772_v25, %v772_v25  ;;  %v4706_v27 = vpop.f32.mrb[1].mxu0  ;;  %v4718_v28 = vpop.f32.mrb[1].mxu1  ;;  %v713_v34 = vpack.c.bf16 %v707_v24, %v707_v24 }
 0x19f   : > { %v710_v29 = vpop.f32.mrb[2].mxu0  ;;  %v775_v30 = vpop.f32.mrb[2].mxu1 }
 0x1a0   : > { %v4707_v31 = vpop.f32.mrb[3].mxu0  ;;  %v4719_v32 = vpop.f32.mrb[3].mxu1  ;;  %v849_v33 = vsel %vm844_vm2, %v778_v26, 0 }
 0x1a1   : > { %4733 = vmatpush3.bf16.xpose.msra.mxu1 %v849_v33 }
 0x1a2   : > { %4738 = vmatprep.subr.bf16.mxu1 %v5442_v4 }
 0x1a8   : > { %4735 = vmatmul.mubr.msk.bf16.vlgmr.msra.gmra.mrb[4].mxu1 %vm844_vm2, %v713_v34 }
 0x1a9   : > { %4740 = vmatprep.mubr.msk.bf16.mxu1 %vm5443_vm1, %v5442_v4 }
 0x1ad   : > { %v837_v35 = vpop.f32.mrb[4].mxu0 }
 0x1ae   : > { %v5679_v36 = vpack.c.bf16 %v837_v35, %v837_v35  ;;  %v4730_v37 = vpop.f32.mrb[5].mxu0 }
 0x1af   : > { %v840_v38 = vpop.f32.mrb[6].mxu0 }
 0x1b0   : > { %v4731_v39 = vpop.f32.mrb[7].mxu0  ;;  %v909_v40 = vsel %vm907_vm3, %v5679_v36, 0 }
 0x1b1   : > { %4739 = vmatpush3.bf16.msra.mxu1 %v909_v40 }
 0x1b2   : > { %4744 = vmatprep.subr.bf16.mxu1 %v5442_v4 }
 0x27b   : > { %v885_v42 = vpop.f32.mrb[4].mxu1 }
 0x27c   : > { %v886_v43 = vadd.f32 %v885_v42, %v591_v41  ;;  %v4736_v44 = vpop.f32.mrb[5].mxu1 }
 0x27d   : > { %v888_v45 = vpop.f32.mrb[6].mxu1 }
 0x27e   : > { %v4737_v46 = vpop.f32.mrb[7].mxu1  ;;  %v892_v47 = vsel %vm891_vm4, %v886_v43, -inf }
 0x27f   : > { %893 = vmax.xlane.f32.xlu0 %v892_v47 }
 0x295   : > { %952 = vrot.lane.b32.xlu0 %v713_v34, %s6460_s21 }
 0x299   : > { %1174 = vrot.lane.b32.xlu0 %v713_v34, %s6458_s26 }
 0x30c   : > { %v894_v48 = vpop.xlane.xlu0 %893 }
 0x30d   : > { %v895_v49 = vsub.f32 %v886_v43, %v894_v48 }
 0x30f   : > { %v896_v50 = vmul.f32 1.442695, %v895_v49 }
 0x310   : > { %v953_v1 = vpop.permute.xlu0 %952 }
 0x311   : > { %5297 = vpow2.f32 %v896_v50 }
 0x314   : > { %v1175_v2 = vpop.permute.xlu0 %1174 }
 0x31b   : > { %v5298_v51 = vpop.eup %5297 }
 0x31c   : > { %v898_v52 = vsel %vm891_vm4, %v5298_v51, 0.0 }
 0x31d   : > { %899 = vadd.xlane.f32.xlu1 %v898_v52 }
 0x32e   : > { %955 = vrot.lane.b32.xlu1 %v778_v26, %s6460_s21 }
 0x332   : > { %1066 = vrot.lane.b32.xlu1 %v778_v26, %s6456_s25 }
 0x336   : > { %1064 = vrot.lane.b32.xlu1 %v713_v34, %s6456_s25  ;;  %s6495_s25 = smov 96  }
 0x33a   : > { %1176 = vrot.lane.b32.xlu1 %v778_v26, %s6458_s26  ;;  %s6494_s26 = smov 80  }
 0x3aa   : > { %v900_v53 = vpop.xlane.xlu1 %899 }
 0x3ab   : > { %5299 = vrcp.f32 %v900_v53 }
 0x3ae   : > { %v956_v54 = vpop.permute.xlu1 %955 }
 0x3af   : > { %v961_v61 = vsel %vm844_vm2, %v956_v54, 0 }
 0x3b2   : > { %v1067_v55 = vpop.permute.xlu1 %1066 }
 0x3b3   : > { %v1072_v56 = vsel %vm844_vm2, %v1067_v55, 0 }
 0x3b4   : > { %4757 = vmatpush3.bf16.xpose.msra.mxu0 %v1072_v56 }
 0x3b5   : > { %v5300_v57 = vpop.eup %5299  ;;  %4768 = vmatprep.subr.bf16.mxu0 %v5442_v4 }
 0x3b6   : > { %v902_v58 = vmul.f32 %v5300_v57, %v5298_v51  ;;  %v1065_v59 = vpop.permute.xlu1 %1064 }
 0x3b8   : > { %v903_v60 = vpack.c.bf16 %v902_v58, %v902_v58 }
 0x3ba   : > { %v1177_v62 = vpop.permute.xlu1 %1176  ;;  %4741 = vmatmul.mubr.msk.bf16.vlgmr.msra.gmra.mrb[8].mxu1 %vm891_vm4, %v903_v60 }
 0x3bb   : > { %v1182_v63 = vsel %vm844_vm2, %v1177_v62, 0  ;;  %4745 = vmatpush3.bf16.xpose.msra.mxu1 %v961_v61  ;;  %4759 = vmatmul.mubr.msk.bf16.vlgmr.msra.gmra.mrb[8].mxu0 %vm844_vm2, %v1065_v59  ;;  %v5215_v62 = vld [vmem:[%s6442_s7] sm:$0xff]  }
 0x3bc   : > { %4769 = vmatpush3.bf16.xpose.msra.mxu0 %v1182_v63  ;;  %4746 = vmatprep.mubr.msk.bf16.mxu1 %vm5443_vm1, %v5442_v4  ;;  %v5216_v63 = vld [vmem:[%s6442_s7 + $0x8] sm:$0xff]  }
 0x3bd   : > { %4770 = vmatprep.mubr.msk.bf16.mxu0 %vm5443_vm1, %v5442_v4  ;;  %4750 = vmatprep.subr.bf16.mxu1 %v5442_v4 }
 0x3be   : > { %4780 = vmatprep.subr.bf16.mxu0 %v5442_v4 }
 0x3c2   : > { %4747 = vmatmul.mubr.msk.bf16.vlgmr.msra.gmra.mrb[12].mxu1 %vm844_vm2, %v953_v1  ;;  %v5217_v1 = vld [vmem:[%s6442_s7 + $0x10] sm:$0xff]  }
 0x3c3   : > { %4771 = vmatmul.mubr.msk.bf16.vlgmr.msra.gmra.mrb[12].mxu0 %vm844_vm2, %v1175_v2  ;;  %4752 = vmatprep.mubr.msk.bf16.mxu1 %vm5443_vm1, %v5442_v4 }
 0x3c4   : > { %4788 = vmatprep.mubr.msk.bf16.mxu0 %vm5443_vm1, %v5442_v4  ;;  %4781 = vmatpush3.bf16.msra.mxu0 %v5215_v62  ;;  %v5230_v62 = vld [vmem:[%s6446_s11 + $0x18] sm:$0xff]  }
 0x3c5   : > { %4782 = vmatprep.subr.bf16.mxu0 %v5442_v4 }
 0x3c8   : > { %4783 = vmatpush3.bf16.msra.mxu0 %v5216_v63 }
 0x3c9   : > { %4784 = vmatprep.subr.bf16.mxu0 %v5442_v4 }
 0x3cc   : > { %4785 = vmatpush3.bf16.msra.mxu0 %v5217_v1 }
 0x3cd   : > { %4786 = vmatprep.subr.bf16.mxu0 %v5442_v4 }
 0x48d   : > { %v5716_v5 = vpop.f32.mrb[8].mxu1 }
 0x48e   : > { %v4742_v6 = vpop.f32.mrb[9].mxu1  ;;  %v1108_v7 = vpop.f32.mrb[8].mxu0 }
 0x48f   : > { %v1109_v8 = vadd.f32 %v1108_v7, %v593_v3  ;;  %v948_v9 = vpop.f32.mrb[10].mxu1  ;;  %v4760_v10 = vpop.f32.mrb[9].mxu0 }
 0x490   : > { %v4743_v11 = vpop.f32.mrb[11].mxu1  ;;  %v1111_v12 = vpop.f32.mrb[10].mxu0 }
 0x491   : > { %v4761_v13 = vpop.f32.mrb[11].mxu0  ;;  %v1114_v14 = vsel %vm891_vm4, %v1109_v8, -inf }
 0x492   : > { %1115 = vmax.xlane.f32.xlu0 %v1114_v14 }
 0x495   : > { %v997_v17 = vpop.f32.mrb[12].mxu1 }
 0x496   : > { %v998_v18 = vadd.f32 %v997_v17, %v592_v15  ;;  %v4748_v19 = vpop.f32.mrb[13].mxu1  ;;  %v1218_v20 = vpop.f32.mrb[12].mxu0 }
 0x497   : > { %v1219_v21 = vadd.f32 %v1218_v20, %v594_v16  ;;  %v1000_v22 = vpop.f32.mrb[14].mxu1  ;;  %v4772_v23 = vpop.f32.mrb[13].mxu0 }
 0x498   : > { %v4749_v24 = vpop.f32.mrb[15].mxu1  ;;  %v1221_v25 = vpop.f32.mrb[14].mxu0  ;;  %v1003_v26 = vsel %vm891_vm4, %v998_v18, -inf }
 0x499   : > { %1004 = vmax.xlane.f32.xlu1 %v1003_v26  ;;  %v4773_v27 = vpop.f32.mrb[15].mxu0  ;;  %v1224_v28 = vsel %vm891_vm4, %v1219_v21, -inf  ;;  %v5219_v24 = vld [vmem:[%s6445_s10] sm:$0xff]  }
 0x49a   : > { %1225 = vmax.xlane.f32.xlu0 %v1224_v28 }
 0x51f   : > { %v1116_v29 = vpop.xlane.xlu0 %1115 }
 0x520   : > { %v1117_v30 = vsub.f32 %v1109_v8, %v1116_v29  ;;  %v5218_v8 = vld [vmem:[%s6442_s7 + $0x18] sm:$0xff]  }
 0x521   : > { %4787 = vmatpush3.bf16.msra.mxu0 %v5218_v8 }
 0x522   : > { %v1118_v31 = vmul.f32 1.442695, %v1117_v30  ;;  %4804 = vmatprep.subr.bf16.mxu0 %v5442_v4 }
 0x524   : > { %5301 = vpow2.f32 %v1118_v31 }
 0x526   : > { %v1005_v32 = vpop.xlane.xlu1 %1004 }
 0x527   : > { %v1006_v33 = vsub.f32 %v998_v18, %v1005_v32  ;;  %v1226_v34 = vpop.xlane.xlu0 %1225  ;;  %v5221_v32 = vld [vmem:[%s6445_s10 + $0x10] sm:$0xff]  }
 0x528   : > { %v1227_v35 = vsub.f32 %v1219_v21, %v1226_v34 }
 0x529   : > { %v1007_v37 = vmul.f32 1.442695, %v1006_v33  ;;  %v5223_v33 = vld [vmem:[%s6445_s10 + $0x18] sm:$0xff]  }
 0x52a   : > { %v1228_v38 = vmul.f32 1.442695, %v1227_v35  ;;  %v5224_v35 = vld [vmem:[%s6444_s9 + $0x8] sm:$0xff]  }
 0x52b   : > { %5303 = vpow2.f32 %v1007_v37  ;;  %v5225_v37 = vld [vmem:[%s6444_s9 + $0x10] sm:$0xff]  }
 0x52c   : > { %5305 = vpow2.f32 %v1228_v38  ;;  %v5226_v38 = vld [vmem:[%s6444_s9 + $0x18] sm:$0xff]  }
 0x52e   : > { %v5302_v39 = vpop.eup %5301 }
 0x52f   : > { %v1120_v40 = vsel %vm891_vm4, %v5302_v39, 0.0 }
 0x530   : > { %1121 = vadd.xlane.f32.xlu1 %v1120_v40 }
 0x535   : > { %v5304_v41 = vpop.eup %5303 }
 0x536   : > { %v1009_v42 = vsel %vm891_vm4, %v5304_v41, 0.0  ;;  %v5306_v43 = vpop.eup %5305 }
 0x537   : > { %1010 = vadd.xlane.f32.xlu0 %v1009_v42  ;;  %v1230_v44 = vsel %vm891_vm4, %v5306_v43, 0.0 }
 0x53b   : > { %1231 = vadd.xlane.f32.xlu0 %v1230_v44 }
 0x541   : > { %1016 = vrot.lane.b32.xlu1 %v5679_v36, %s6460_s21 }
 0x545   : > { %1236 = vrot.lane.b32.xlu1 %v5679_v36, %s6494_s26 }
 0x551   : > { %1126 = vrot.lane.b32.xlu0 %v5679_v36, %s6495_s25 }
 0x5bd   : > { %v1122_v45 = vpop.xlane.xlu1 %1121 }
 0x5c1   : > { %v1017_v46 = vpop.permute.xlu1 %1016 }
 0x5c2   : > { %v1022_v47 = vsel %vm907_vm3, %v1017_v46, 0 }
 0x5c3   : > { %4751 = vmatpush3.bf16.msra.mxu1 %v1022_v47 }
 0x5c4   : > { %v1011_v48 = vpop.xlane.xlu0 %1010  ;;  %4762 = vmatprep.subr.bf16.mxu1 %v5442_v4 }
 0x5c5   : > { %5307 = vrcp.f32 %v1011_v48  ;;  %v1237_v56 = vpop.permute.xlu1 %1236 }
 0x5c6   : > { %5309 = vrcp.f32 %v1122_v45  ;;  %v1242_v59 = vsel %vm907_vm3, %v1237_v56, 0 }
 0x5c8   : > { %v1232_v49 = vpop.xlane.xlu0 %1231 }
 0x5c9   : > { %5311 = vrcp.f32 %v1232_v49 }
 0x5cc   : > { %v1127_v52 = vpop.permute.xlu0 %1126 }
 0x5cd   : > { %v1132_v55 = vsel %vm907_vm3, %v1127_v52, 0 }
 0x5cf   : > { %v5308_v50 = vpop.eup %5307 }
 0x5d0   : > { %v1013_v51 = vmul.f32 %v5308_v50, %v5304_v41  ;;  %v5310_v54 = vpop.eup %5309 }
 0x5d1   : > { %v1124_v36 = vmul.f32 %v5310_v54, %v5302_v39 }
 0x5d2   : > { %v1014_v53 = vpack.c.bf16 %v1013_v51, %v1013_v51 }
 0x5d3   : > { %v1125_v57 = vpack.c.bf16 %v1124_v36, %v1124_v36  ;;  %v5312_v58 = vpop.eup %5311 }
 0x5d4   : > { %4753 = vmatmul.mubr.msk.bf16.vlgmr.msra.gmra.mrb[16].mxu1 %vm891_vm4, %v1014_v53  ;;  %v1234_v60 = vmul.f32 %v5312_v58, %v5306_v43  ;;  %v4303_v43 = vld [vmem:[%s6443_s8] ss:$0 sm:$0xff] }
 0x5d5   : > { %4763 = vmatpush3.bf16.msra.mxu1 %v1132_v55  ;;  %4764 = vmatprep.mubr.msk.bf16.mxu1 %vm5443_vm1, %v5442_v4 }
 0x5d6   : > { %4774 = vmatprep.subr.bf16.mxu1 %v5442_v4  ;;  %v1235_v61 = vpack.c.bf16 %v1234_v60, %v1234_v60  ;;  %v5228_v60 = vld [vmem:[%s6446_s11 + $0x8] sm:$0xff]  }
 0x5dc   : > { %4765 = vmatmul.mubr.msk.bf16.vlgmr.msra.gmra.mrb[20].mxu1 %vm891_vm4, %v1125_v57 }
 0x5dd   : > { %4775 = vmatpush3.bf16.msra.mxu1 %v1242_v59  ;;  %4776 = vmatprep.mubr.msk.bf16.mxu1 %vm5443_vm1, %v5442_v4  ;;  %v5227_v59 = vld [vmem:[%s6446_s11] sm:$0xff]  }
 0x5de   : > { %4792 = vmatprep.subr.bf16.mxu1 %v5442_v4 }
 0x5e4   : > { %4777 = vmatmul.mubr.msk.bf16.vlgmr.msra.gmra.mrb[24].mxu1 %vm891_vm4, %v1235_v61  ;;  %v5229_v61 = vld [vmem:[%s6446_s11 + $0x10] sm:$0xff]  }
 0x5e5   : > { %4800 = vmatprep.mubr.msk.bf16.mxu1 %vm5443_vm1, %v5442_v4 }
 0x6a7   : > { %v1058_v2 = vpop.f32.mrb[16].mxu1 }
 0x6a8   : > { %1285 = vrot.lane.b32.xlu1 %v1058_v2, %s6470_s27  ;;  %v4754_v3 = vpop.f32.mrb[17].mxu1  ;;  %s4273_s27 = sshll.u32 %s5596_s24, 2  ;;  %s6500_s24 = smov 48  }
 0x6a9   : > { %v1061_v6 = vpop.f32.mrb[18].mxu1  ;;  %s5806_s19 = scalar_lea.vmem %s6496_s29, %s4273_s27  ;;  %s6497_s29 = smov 112  }
 0x6aa   : > { %v4755_v7 = vpop.f32.mrb[19].mxu1  ;;  %v590_v34 = vld [vmem:[%s5806_s19] sm:$0xf]  ;;  %s6498_s27 = smov 16  }
 0x6af   : > { %v1168_v9 = vpop.f32.mrb[20].mxu1 }
 0x6b0   : > { %1289 = vrot.lane.b32.xlu1 %v1168_v9, %s6468_s1  ;;  %v4766_v10 = vpop.f32.mrb[21].mxu1  ;;  %s6501_s1 = sld [smem:[#allocation8_spill]] }
 0x6b1   : > { %v1171_v11 = vpop.f32.mrb[22].mxu1 }
 0x6b2   : > { %v4767_v12 = vpop.f32.mrb[23].mxu1 }
 0x6b6   : > { %s4516_s21 = sshll.u32 %s6501_s1, 7  ;;  %s5450_s1 = smov [#allocation2]  }
 0x6b7   : > { %v1278_v13 = vpop.f32.mrb[24].mxu1 }
 0x6b8   : > { %1293 = vrot.lane.b32.xlu0 %v1278_v13, %s6466_s23  ;;  %v4778_v14 = vpop.f32.mrb[25].mxu1  ;;  %s6499_s23 = smov 32  }
 0x6b9   : > { %v1281_v15 = vpop.f32.mrb[26].mxu1 }
 0x6ba   : > { %v4779_v16 = vpop.f32.mrb[27].mxu1 }
 0x71a   : > { %v1286_v17 = vpop.permute.xlu1 %1285 }
 0x71b   : > { %v1296_v19 = vsel %vm844_vm2, %v5716_v5, %v1286_v17  ;;  %v5220_v5 = vld [vmem:[%s6445_s10 + $0x8] sm:$0xff]  }
 0x722   : > { %v1290_v18 = vpop.permute.xlu1 %1289 }
 0x723   : > { %v1298_v20 = vsel %vm1297_vm5, %v1296_v19, %v1290_v18 }
 0x72a   : > { %v1294_v21 = vpop.permute.xlu0 %1293 }
 0x72b   : > { %v1300_v22 = vsel %vm1299_vm6, %v1298_v20, %v1294_v21 }
 0x72c   : > { %v1301_v23 = vpack.c.bf16 %v1300_v22, %v1300_v22 }
 0x72e   : > { %4789 = vmatmul.mubr.msk.bf16.vlgmr.msra.gmra.mrb[16].mxu0 %vm597_vm0, %v1301_v23 }
 0x72f   : > { %4812 = vmatprep.mubr.msk.bf16.mxu0 %vm5443_vm1, %v5442_v4  ;;  %4805 = vmatpush3.bf16.msra.mxu0 %v5219_v24 }
 0x730   : > { %4806 = vmatprep.subr.bf16.mxu0 %v5442_v4 }
 0x733   : > { %4807 = vmatpush3.bf16.msra.mxu0 %v5220_v5 }
 0x734   : > { %4808 = vmatprep.subr.bf16.mxu0 %v5442_v4 }
 0x737   : > { %4809 = vmatpush3.bf16.msra.mxu0 %v5221_v32 }
 0x738   : > { %4810 = vmatprep.subr.bf16.mxu0 %v5442_v4 }
 0x73b   : > { %4811 = vmatpush3.bf16.msra.mxu0 %v5223_v33 }
 0x73c   : > { %4828 = vmatprep.subr.bf16.mxu0 %v5442_v4 }
 0x73e   : > { %4813 = vmatmul.mubr.msk.bf16.vlgmr.msra.gmra.mrb[20].mxu0 %vm597_vm0, %v590_v34 }
 0x73f   : > { %4830 = vmatprep.mubr.msk.bf16.mxu0 %vm5443_vm1, %v5442_v4 }
 0x801   : > { %v1363_v25 = vpop.f32.mrb[16].mxu0 }
 0x802   : > { %v5786_v26 = vadd.f32 %v1363_v25, %v5602_v0  ;;  %v4790_v27 = vpop.f32.mrb[17].mxu0  ;;  %v5222_v0 = vld [vmem:[%s6444_s9] sm:$0xff]  }
 0x803   : > { %v1366_v28 = vpop.f32.mrb[18].mxu0  ;;  %4793 = vmatpush3.bf16.msra.mxu1 %v5222_v0 }
 0x804   : > { %v4791_v29 = vpop.f32.mrb[19].mxu0  ;;  %v1371_v30 = vmul.f32 %v5786_v26, %v5786_v26  ;;  %4794 = vmatprep.subr.bf16.mxu1 %v5442_v4 }
 0x806   : > { %v1372_v31 = vsel %vm597_vm0, %v1371_v30, 0.0 }
 0x807   : > { %1373 = vadd.xlane.f32.xlu1 %v1372_v31  ;;  %4795 = vmatpush3.bf16.msra.mxu1 %v5224_v35 }
 0x808   : > { %4796 = vmatprep.subr.bf16.mxu1 %v5442_v4 }
 0x80b   : > { %4797 = vmatpush3.bf16.msra.mxu1 %v5225_v37 }
 0x80c   : > { %4798 = vmatprep.subr.bf16.mxu1 %v5442_v4 }
 0x80f   : > { %4799 = vmatpush3.bf16.msra.mxu1 %v5226_v38 }
 0x810   : > { %4816 = vmatprep.subr.bf16.mxu1 %v5442_v4 }
 0x811   : > { %v1548_v47 = vpop.f32.mrb[20].mxu0 }
 0x812   : > { %v1554_v48 = vpack.c.bf16 %v1548_v47, %v1548_v47  ;;  %v4814_v49 = vpop.f32.mrb[21].mxu0 }
 0x813   : > { %v1551_v50 = vpop.f32.mrb[22].mxu0 }
 0x814   : > { %1728 = vrot.lane.b32.xlu0 %v1554_v48, %s6497_s29  ;;  %v4815_v51 = vpop.f32.mrb[23].mxu0  ;;  %v1624_v52 = vsel %vm844_vm2, %v1554_v48, 0 }
 0x815   : > { %4829 = vmatpush3.bf16.xpose.msra.mxu0 %v1624_v52 }
 0x816   : > { %4840 = vmatprep.subr.bf16.mxu0 %v5442_v4 }
 0x818   : > { %1839 = vrot.lane.b32.xlu0 %v1554_v48, %s6495_s25 }
 0x886   : > { %v1729_v54 = vpop.permute.xlu0 %1728 }
 0x887   : > { %v1734_v56 = vsel %vm844_vm2, %v1729_v54, 0 }
 0x88a   : > { %v1840_v63 = vpop.permute.xlu0 %1839 }
 0x88b   : > { %v1845_v2 = vsel %vm844_vm2, %v1840_v63, 0 }
 0x894   : > { %v1374_v39 = vpop.xlane.xlu1 %1373 }
 0x895   : > { %v1375_v40 = vmul.f32 0.015625, %v1374_v39 }
 0x897   : > { %v1376_v41 = vadd.f32 1e-06, %v1375_v40 }
 0x899   : > { %5313 = vrsqrt.f32 %v1376_v41 }
 0x8a3   : > { %v5314_v42 = vpop.eup %5313 }
 0x8a4   : > { %v1378_v44 = vmul.f32 %v5314_v42, %v5786_v26 }
 0x8a6   : > { %v1385_v45 = vmul.f32 %v4303_v43, %v1378_v44 }
 0x8a8   : > { %v1386_v46 = vpack.c.bf16 %v1385_v45, %v1385_v45 }
 0x8aa   : > { %4801 = vmatmul.mubr.msk.bf16.vlgmr.msra.gmra.mrb[28].mxu1 %vm597_vm0, %v1386_v46 }
 0x8ab   : > { %4824 = vmatprep.mubr.msk.bf16.mxu1 %vm5443_vm1, %v5442_v4  ;;  %4817 = vmatpush3.bf16.msra.mxu1 %v5227_v59 }
 0x8ac   : > { %4818 = vmatprep.subr.bf16.mxu1 %v5442_v4 }
 0x8af   : > { %4819 = vmatpush3.bf16.msra.mxu1 %v5228_v60 }
 0x8b0   : > { %4820 = vmatprep.subr.bf16.mxu1 %v5442_v4 }
 0x8b3   : > { %4821 = vmatpush3.bf16.msra.mxu1 %v5229_v61 }
 0x8b4   : > { %4822 = vmatprep.subr.bf16.mxu1 %v5442_v4 }
 0x8b7   : > { %4823 = vmatpush3.bf16.msra.mxu1 %v5230_v62 }
 0x8b8   : > { %4834 = vmatprep.subr.bf16.mxu1 %v5442_v4 }
 0x8ba   : > { %4825 = vmatmul.mubr.msk.bf16.vlgmr.msra.gmra.mrb[32].mxu1 %vm597_vm0, %v590_v34 }
 0x8bb   : > { %4836 = vmatprep.mubr.msk.bf16.mxu1 %vm5443_vm1, %v5442_v4 }
 0x97d   : > { %v1480_v53 = vpop.f32.mrb[28].mxu1 }
 0x97e   : > { %v1486_v55 = vpack.c.bf16 %v1480_v53, %v1480_v53  ;;  %v4802_v36 = vpop.f32.mrb[29].mxu1 }
 0x97f   : > { %v1483_v57 = vpop.f32.mrb[30].mxu1 }
 0x980   : > { %v4803_v58 = vpop.f32.mrb[31].mxu1  ;;  %1725 = vrot.lane.b32.xlu0 %v1486_v55, %s6497_s29  ;;  %4831 = vmatmul.mubr.msk.bf16.vlgmr.msra.gmra.mrb[24].mxu0 %vm844_vm2, %v1486_v55 }
 0x981   : > { %4841 = vmatpush3.bf16.xpose.msra.mxu0 %v1734_v56  ;;  %4842 = vmatprep.mubr.msk.bf16.mxu0 %vm5443_vm1, %v5442_v4 }
 0x982   : > { %4852 = vmatprep.subr.bf16.mxu0 %v5442_v4 }
 0x984   : > { %1837 = vrot.lane.b32.xlu0 %v1486_v55, %s6495_s25 }
 0x988   : > { %1949 = vrot.lane.b32.xlu0 %v1554_v48, %s6494_s26 }
 0x98c   : > { %1947 = vrot.lane.b32.xlu0 %v1486_v55, %s6494_s26 }
 0x98d   : > { %v1613_v32 = vpop.f32.mrb[32].mxu1 }
 0x98e   : > { %v4826_v0 = vpop.f32.mrb[33].mxu1  ;;  %v1619_v38 = vpack.c.bf16 %v1613_v32, %v1613_v32 }
 0x98f   : > { %v1616_v33 = vpop.f32.mrb[34].mxu1 }
 0x990   : > { %v4827_v35 = vpop.f32.mrb[35].mxu1  ;;  %v1682_v39 = vsel %vm907_vm3, %v1619_v38, 0 }
 0x991   : > { %4835 = vmatpush3.bf16.msra.mxu1 %v1682_v39 }
 0x992   : > { %4846 = vmatprep.subr.bf16.mxu1 %v5442_v4 }
 0x9f2   : > { %v1726_v1 = vpop.permute.xlu0 %1725 }
 0x9f3   : > { %4843 = vmatmul.mubr.msk.bf16.vlgmr.msra.gmra.mrb[28].mxu0 %vm844_vm2, %v1726_v1 }
 0x9f4   : > { %4853 = vmatpush3.bf16.xpose.msra.mxu0 %v1845_v2  ;;  %4854 = vmatprep.mubr.msk.bf16.mxu0 %vm5443_vm1, %v5442_v4 }
 0x9f5   : > { %4864 = vmatprep.subr.bf16.mxu0 %v5442_v4 }
 0x9f6   : > { %v1838_v3 = vpop.permute.xlu0 %1837 }
 0x9fa   : > { %v1950_v6 = vpop.permute.xlu0 %1949 }
 0x9fb   : > { %v1955_v7 = vsel %vm844_vm2, %v1950_v6, 0  ;;  %4855 = vmatmul.mubr.msk.bf16.vlgmr.msra.gmra.mrb[32].mxu0 %vm844_vm2, %v1838_v3 }
 0x9fc   : > { %4865 = vmatpush3.bf16.xpose.msra.mxu0 %v1955_v7  ;;  %4866 = vmatprep.mubr.msk.bf16.mxu0 %vm5443_vm1, %v5442_v4 }
 0x9fd   : > { %4876 = vmatprep.subr.bf16.mxu0 %v5442_v4 }
 0x9fe   : > { %v1948_v8 = vpop.permute.xlu0 %1947 }
 0xa03   : > { %4867 = vmatmul.mubr.msk.bf16.vlgmr.msra.gmra.mrb[36].mxu0 %vm844_vm2, %v1948_v8 }
 0xa04   : > { %4884 = vmatprep.mubr.msk.bf16.mxu0 %vm5443_vm1, %v5442_v4 }
 0xa53   : > { %v1660_v9 = vpop.f32.mrb[24].mxu0 }
 0xa54   : > { %v4832_v10 = vpop.f32.mrb[25].mxu0  ;;  %v1666_v11 = vsel %vm891_vm4, %v1660_v9, -inf }
 0xa55   : > { %1667 = vmax.xlane.f32.xlu0 %v1666_v11  ;;  %v1663_v12 = vpop.f32.mrb[26].mxu0 }
 0xa56   : > { %v4833_v13 = vpop.f32.mrb[27].mxu0 }
 0xac6   : > { %v1770_v14 = vpop.f32.mrb[28].mxu0 }
 0xac7   : > { %v4844_v15 = vpop.f32.mrb[29].mxu0  ;;  %v1776_v16 = vsel %vm891_vm4, %v1770_v14, -inf }
 0xac8   : > { %1777 = vmax.xlane.f32.xlu1 %v1776_v16  ;;  %v1773_v17 = vpop.f32.mrb[30].mxu0 }
 0xac9   : > { %v4845_v18 = vpop.f32.mrb[31].mxu0 }
 0xace   : > { %v1881_v19 = vpop.f32.mrb[32].mxu0 }
 0xacf   : > { %v4856_v20 = vpop.f32.mrb[33].mxu0  ;;  %v1887_v21 = vsel %vm891_vm4, %v1881_v19, -inf }
 0xad0   : > { %1888 = vmax.xlane.f32.xlu1 %v1887_v21  ;;  %v1884_v22 = vpop.f32.mrb[34].mxu0  ;;  %v5232_v20 = vld [vmem:[%s6447_s12 + $0x8] sm:$0xff]  }
 0xad1   : > { %v4857_v23 = vpop.f32.mrb[35].mxu0 }
 0xad6   : > { %v1991_v24 = vpop.f32.mrb[36].mxu0 }
 0xad7   : > { %v4868_v5 = vpop.f32.mrb[37].mxu0  ;;  %v1997_v25 = vsel %vm891_vm4, %v1991_v24, -inf }
 0xad8   : > { %1998 = vmax.xlane.f32.xlu1 %v1997_v25  ;;  %v1994_v27 = vpop.f32.mrb[38].mxu0 }
 0xad9   : > { %v4869_v28 = vpop.f32.mrb[39].mxu0 }
 0xae2   : > { %v1668_v29 = vpop.xlane.xlu0 %1667 }
 0xae3   : > { %v1669_v30 = vsub.f32 %v1660_v9, %v1668_v29 }
 0xae5   : > { %v1670_v31 = vmul.f32 1.442695, %v1669_v30  ;;  %v5234_v30 = vld [vmem:[%s6447_s12 + $0x18] sm:$0xff]  }
 0xae7   : > { %5315 = vpow2.f32 %v1670_v31 }
 0xaf1   : > { %v5316_v34 = vpop.eup %5315 }
 0xaf2   : > { %v1672_v37 = vsel %vm891_vm4, %v5316_v34, 0.0 }
 0xaf3   : > { %1673 = vadd.xlane.f32.xlu1 %v1672_v37 }
 0xb55   : > { %v1778_v40 = vpop.xlane.xlu1 %1777 }
 0xb56   : > { %v1779_v41 = vsub.f32 %v1770_v14, %v1778_v40 }
 0xb58   : > { %v1780_v42 = vmul.f32 1.442695, %v1779_v41 }
 0xb5a   : > { %5317 = vpow2.f32 %v1780_v42 }
 0xb5d   : > { %v1889_v43 = vpop.xlane.xlu1 %1888 }
 0xb5e   : > { %v1890_v44 = vsub.f32 %v1881_v19, %v1889_v43  ;;  %v5231_v19 = vld [vmem:[%s6447_s12] sm:$0xff]  }
 0xb5f   : > { %4877 = vmatpush3.bf16.msra.mxu0 %v5231_v19  ;;  %v5247_v19 = vld [vmem:[%s6439_s4 + $0x20] sm:$0xff]  }
 0xb60   : > { %v1891_v45 = vmul.f32 1.442695, %v1890_v44  ;;  %4878 = vmatprep.subr.bf16.mxu0 %v5442_v4 }
 0xb62   : > { %5319 = vpow2.f32 %v1891_v45 }
 0xb63   : > { %4879 = vmatpush3.bf16.msra.mxu0 %v5232_v20  ;;  %v5248_v20 = vld [vmem:[%s6441_s6 + $0x20] sm:$0xff]  }
 0xb64   : > { %v5318_v46 = vpop.eup %5317  ;;  %4880 = vmatprep.subr.bf16.mxu0 %v5442_v4 }
 0xb65   : > { %v1782_v47 = vsel %vm891_vm4, %v5318_v46, 0.0  ;;  %v1999_v50 = vpop.xlane.xlu1 %1998 }
 0xb66   : > { %1783 = vadd.xlane.f32.xlu1 %v1782_v47  ;;  %v2000_v52 = vsub.f32 %v1991_v24, %v1999_v50  ;;  %v5233_v24 = vld [vmem:[%s6447_s12 + $0x10] sm:$0xff]  }
 0xb67   : > { %4881 = vmatpush3.bf16.msra.mxu0 %v5233_v24  ;;  %v5237_v50 = vld [vmem:[%s6449_s14 + $0x10] sm:$0xff]  }
 0xb68   : > { %v2001_v53 = vmul.f32 1.442695, %v2000_v52  ;;  %4882 = vmatprep.subr.bf16.mxu0 %v5442_v4  ;;  %v5239_v52 = vld [vmem:[%s6450_s15] sm:$0xff]   ;;  %v5252_v24 = vld [vmem:[%s6441_s6 + $0x30] sm:$0xff]  }
 0xb6b   : > { %4883 = vmatpush3.bf16.msra.mxu0 %v5234_v30 }
 0xb6c   : > { %v5320_v48 = vpop.eup %5319  ;;  %4900 = vmatprep.subr.bf16.mxu0 %v5442_v4 }
 0xb6d   : > { %v1893_v49 = vsel %vm891_vm4, %v5320_v48, 0.0 }
 0xb6e   : > { %1894 = vadd.xlane.f32.xlu0 %v1893_v49  ;;  %v5235_v49 = vld [vmem:[%s6449_s14] sm:$0xff]  }
 0xb77   : > { %1899 = vrot.lane.b32.xlu1 %v1619_v38, %s6495_s25 }
 0xb80   : > { %v1674_v51 = vpop.xlane.xlu1 %1673 }
 0xb81   : > { %5321 = vrcp.f32 %v1674_v51  ;;  %v5238_v51 = vld [vmem:[%s6449_s14 + $0x18] sm:$0xff]  }
 0xb82   : > { %5323 = vpow2.f32 %v2001_v53  ;;  %v5240_v53 = vld [vmem:[%s6450_s15 + $0x8] sm:$0xff]  }
 0xb84   : > { %1789 = vrot.lane.b32.xlu0 %v1619_v38, %s6497_s29 }
 0xb8b   : > { %v5322_v54 = vpop.eup %5321 }
 0xb8c   : > { %v1676_v55 = vmul.f32 %v5322_v54, %v5316_v34  ;;  %v5324_v56 = vpop.eup %5323  ;;  %v5241_v54 = vld [vmem:[%s6450_s15 + $0x10] sm:$0xff]  }
 0xb8d   : > { %v2003_v57 = vsel %vm891_vm4, %v5324_v56, 0.0 }
 0xb8e   : > { %v1677_v36 = vpack.c.bf16 %v1676_v55, %v1676_v55  ;;  %v5242_v55 = vld [vmem:[%s6450_s15 + $0x18] sm:$0xff]  }
 0xb90   : > { %4837 = vmatmul.mubr.msk.bf16.vlgmr.msra.gmra.mrb[36].mxu1 %vm891_vm4, %v1677_v36  ;;  %v5243_v36 = vld [vmem:[%s6450_s15 + $0x20] sm:$0xff]  }
 0xb91   : > { %4848 = vmatprep.mubr.msk.bf16.mxu1 %vm5443_vm1, %v5442_v4 }
 0xb9b   : > { %2004 = vadd.xlane.f32.xlu1 %v2003_v57  ;;  %v5245_v57 = vld [vmem:[%s6450_s15 + $0x30] sm:$0xff]  }
 0xbac   : > { %2009 = vrot.lane.b32.xlu1 %v1619_v38, %s6494_s26 }
 0xbf3   : > { %v1784_v58 = vpop.xlane.xlu1 %1783 }
 0xbf4   : > { %5325 = vrcp.f32 %v1784_v58 }
 0xbf7   : > { %v1900_v1 = vpop.permute.xlu1 %1899 }
 0xbf8   : > { %v1905_v3 = vsel %vm907_vm3, %v1900_v1, 0 }
 0xbfb   : > { %v1895_v59 = vpop.xlane.xlu0 %1894 }
 0xbfc   : > { %5327 = vrcp.f32 %v1895_v59 }
 0xbfe   : > { %v5326_v60 = vpop.eup %5325 }
 0xbff   : > { %v1786_v61 = vmul.f32 %v5326_v60, %v5318_v46  ;;  %v1790_v62 = vpop.permute.xlu0 %1789 }
 0xc00   : > { %v1795_v63 = vsel %vm907_vm3, %v1790_v62, 0  ;;  %v4332_v62 = vld [vmem:[%s6448_s13] ss:$0 sm:$0xff] }
 0xc01   : > { %4847 = vmatpush3.bf16.msra.mxu1 %v1795_v63  ;;  %v1787_v2 = vpack.c.bf16 %v1786_v61, %v1786_v61 }
 0xc02   : > { %4858 = vmatprep.subr.bf16.mxu1 %v5442_v4 }
 0xc04   : > { %4849 = vmatmul.mubr.msk.bf16.vlgmr.msra.gmra.mrb[40].mxu1 %vm891_vm4, %v1787_v2 }
 0xc05   : > { %4859 = vmatpush3.bf16.msra.mxu1 %v1905_v3  ;;  %4860 = vmatprep.mubr.msk.bf16.mxu1 %vm5443_vm1, %v5442_v4  ;;  %v5246_v3 = vld [vmem:[%s6450_s15 + $0x38] sm:$0xff]  }
 0xc06   : > { %v5328_v6 = vpop.eup %5327  ;;  %4870 = vmatprep.subr.bf16.mxu1 %v5442_v4 }
 0xc07   : > { %v1897_v7 = vmul.f32 %v5328_v6, %v5320_v48 }
 0xc09   : > { %v1898_v8 = vpack.c.bf16 %v1897_v7, %v1897_v7 }
 0xc0c   : > { %4861 = vmatmul.mubr.msk.bf16.vlgmr.msra.gmra.mrb[44].mxu1 %vm891_vm4, %v1898_v8 }
 0xc0d   : > { %4872 = vmatprep.mubr.msk.bf16.mxu1 %vm5443_vm1, %v5442_v4 }
 0xc28   : > { %v2005_v9 = vpop.xlane.xlu1 %2004 }
 0xc29   : > { %5329 = vrcp.f32 %v2005_v9 }
 0xc2c   : > { %v2010_v10 = vpop.permute.xlu1 %2009 }
 0xc2d   : > { %v2015_v11 = vsel %vm907_vm3, %v2010_v10, 0 }
 0xc2e   : > { %4871 = vmatpush3.bf16.msra.mxu1 %v2015_v11 }
 0xc2f   : > { %4888 = vmatprep.subr.bf16.mxu1 %v5442_v4 }
 0xc33   : > { %v5330_v12 = vpop.eup %5329 }
 0xc34   : > { %v2007_v13 = vmul.f32 %v5330_v12, %v5324_v56  ;;  %v5244_v56 = vld [vmem:[%s6450_s15 + $0x28] sm:$0xff]  }
 0xc36   : > { %v2008_v14 = vpack.c.bf16 %v2007_v13, %v2007_v13 }
 0xc38   : > { %4873 = vmatmul.mubr.msk.bf16.vlgmr.msra.gmra.mrb[48].mxu1 %vm891_vm4, %v2008_v14 }
 0xc39   : > { %4896 = vmatprep.mubr.msk.bf16.mxu1 %vm5443_vm1, %v5442_v4  ;;  %4889 = vmatpush3.bf16.msra.mxu1 %v5235_v49 }
 0xc3a   : > { %4890 = vmatprep.subr.bf16.mxu1 %v5442_v4 }
 0xc63   : > { %v1718_v15 = vpop.f32.mrb[36].mxu1 }
 0xc64   : > { %v4838_v16 = vpop.f32.mrb[37].mxu1 }
 0xc65   : > { %v1721_v17 = vpop.f32.mrb[38].mxu1 }
 0xc66   : > { %v4839_v18 = vpop.f32.mrb[39].mxu1 }
 0xcd7   : > { %v1831_v21 = vpop.f32.mrb[40].mxu1 }
 0xcd8   : > { %2058 = vrot.lane.b32.xlu1 %v1831_v21, %s6498_s27  ;;  %v4850_v22 = vpop.f32.mrb[41].mxu1  ;;  %v5249_v21 = vld [vmem:[%s6439_s4 + $0x28] sm:$0xff]  }
 0xcd9   : > { %v1834_v23 = vpop.f32.mrb[42].mxu1  ;;  %v5250_v22 = vld [vmem:[%s6441_s6 + $0x28] sm:$0xff]  }
 0xcda   : > { %v4851_v5 = vpop.f32.mrb[43].mxu1  ;;  %v5251_v23 = vld [vmem:[%s6439_s4 + $0x30] sm:$0xff]  }
 0xcdb   : > { %v5253_v5 = vld [vmem:[%s6439_s4 + $0x38] sm:$0xff]  }
 0xcdf   : > { %v1941_v25 = vpop.f32.mrb[44].mxu1 }
 0xce0   : > { %2062 = vrot.lane.b32.xlu0 %v1941_v25, %s6499_s23  ;;  %v4862_v27 = vpop.f32.mrb[45].mxu1  ;;  %v5254_v25 = vld [vmem:[%s6441_s6 + $0x38] sm:$0xff]  }
 0xce1   : > { %v1944_v28 = vpop.f32.mrb[46].mxu1 }
 0xce2   : > { %v4863_v29 = vpop.f32.mrb[47].mxu1 }
 0xd0b   : > { %v2051_v31 = vpop.f32.mrb[48].mxu1 }
 0xd0c   : > { %2066 = vrot.lane.b32.xlu1 %v2051_v31, %s6500_s24  ;;  %v4874_v32 = vpop.f32.mrb[49].mxu1  ;;  %v4347_v31 = vld [vmem:[%s6438_s3 + $0x1] ss:$0 sm:$0xff] }
 0xd0d   : > { %v2054_v0 = vpop.f32.mrb[50].mxu1 }
 0xd0e   : > { %v4875_v33 = vpop.f32.mrb[51].mxu1 }
 0xd0f   : > { %v5255_v33 = vld [vmem:[%s6440_s5 + $0x20] sm:$0xff]  }
 0xd4a   : > { %v2059_v34 = vpop.permute.xlu1 %2058 }
 0xd4b   : > { %v2069_v37 = vsel %vm844_vm2, %v1718_v15, %v2059_v34 }
 0xd52   : > { %v2063_v35 = vpop.permute.xlu0 %2062 }
 0xd53   : > { %v2070_v38 = vsel %vm1297_vm5, %v2069_v37, %v2063_v35  ;;  %v5256_v35 = vld [vmem:[%s6440_s5 + $0x28] sm:$0xff]   ;;  %v5257_v37 = vld [vmem:[%s6440_s5 + $0x30] sm:$0xff]  }
 0xd7e   : > { %v2067_v39 = vpop.permute.xlu1 %2066 }
 0xd7f   : > { %v2071_v40 = vsel %vm1299_vm6, %v2070_v38, %v2067_v39  ;;  %v5258_v38 = vld [vmem:[%s6440_s5 + $0x38] sm:$0xff]  }
 0xd80   : > { %v2072_v41 = vpack.c.bf16 %v2071_v40, %v2071_v40 }
 0xd82   : > { %4885 = vmatmul.mubr.msk.bf16.vlgmr.msra.gmra.mrb[40].mxu0 %vm597_vm0, %v2072_v41 }
 0xd83   : > { %4916 = vmatprep.mubr.msk.bf16.mxu0 %vm5443_vm1, %v5442_v4  ;;  %4901 = vmatpush3.bf16.msra.mxu0 %v5239_v52 }
 0xd84   : > { %4902 = vmatprep.subr.bf16.mxu0 %v5442_v4 }
 0xd87   : > { %4903 = vmatpush3.bf16.msra.mxu0 %v5240_v53 }
 0xd88   : > { %4904 = vmatprep.subr.bf16.mxu0 %v5442_v4 }
 0xd8b   : > { %4905 = vmatpush3.bf16.msra.mxu0 %v5241_v54 }
 0xd8c   : > { %4906 = vmatprep.subr.bf16.mxu0 %v5442_v4 }
 0xd8f   : > { %4907 = vmatpush3.bf16.msra.mxu0 %v5242_v55 }
 0xd90   : > { %4908 = vmatprep.subr.bf16.mxu0 %v5442_v4 }
 0xd93   : > { %4909 = vmatpush3.bf16.msra.mxu0 %v5243_v36 }
 0xd94   : > { %4910 = vmatprep.subr.bf16.mxu0 %v5442_v4 }
 0xd97   : > { %4911 = vmatpush3.bf16.msra.mxu0 %v5244_v56 }
 0xd98   : > { %4912 = vmatprep.subr.bf16.mxu0 %v5442_v4 }
 0xd9b   : > { %4913 = vmatpush3.bf16.msra.mxu0 %v5245_v57 }
 0xd9c   : > { %4914 = vmatprep.subr.bf16.mxu0 %v5442_v4 }
 0xd9f   : > { %4915 = vmatpush3.bf16.msra.mxu0 %v5246_v3 }
 0xda0   : > { %4944 = vmatprep.subr.bf16.mxu0 %v5442_v4 }
 0xe55   : > { %v2134_v42 = vpop.f32.mrb[40].mxu0 }
 0xe56   : > { %v5934_v43 = vadd.f32 %v2134_v42, %v5786_v26  ;;  %v4886_v44 = vpop.f32.mrb[41].mxu0  ;;  %v5236_v26 = vld [vmem:[%s6449_s14 + $0x8] sm:$0xff]  }
 0xe57   : > { %v2137_v45 = vpop.f32.mrb[42].mxu0  ;;  %4891 = vmatpush3.bf16.msra.mxu1 %v5236_v26 }
 0xe58   : > { %v4887_v46 = vpop.f32.mrb[43].mxu0  ;;  %v2142_v47 = vmul.f32 %v5934_v43, %v5934_v43  ;;  %4892 = vmatprep.subr.bf16.mxu1 %v5442_v4 }
 0xe5a   : > { %v2143_v48 = vsel %vm597_vm0, %v2142_v47, 0.0 }
 0xe5b   : > { %2144 = vadd.xlane.f32.xlu0 %v2143_v48  ;;  %4893 = vmatpush3.bf16.msra.mxu1 %v5237_v50 }
 0xe5c   : > { %4894 = vmatprep.subr.bf16.mxu1 %v5442_v4 }
 0xe5f   : > { %4895 = vmatpush3.bf16.msra.mxu1 %v5238_v51 }
 0xe60   : > { %4920 = vmatprep.subr.bf16.mxu1 %v5442_v4 }
 0xee8   : > { %v2145_v58 = vpop.xlane.xlu0 %2144 }
 0xee9   : > { %v2146_v59 = vmul.f32 0.015625, %v2145_v58 }
 0xeeb   : > { %v2147_v60 = vadd.f32 1e-06, %v2146_v59 }
 0xeed   : > { %5331 = vrsqrt.f32 %v2147_v60 }
 0xef7   : > { %v5332_v61 = vpop.eup %5331 }
 0xef8   : > { %v2149_v63 = vmul.f32 %v5332_v61, %v5934_v43 }
 0xefa   : > { %v2156_v1 = vmul.f32 %v4332_v62, %v2149_v63 }
 0xefc   : > { %v2157_v2 = vpack.c.bf16 %v2156_v1, %v2156_v1  ;;  %v5373_v1 = vld [vmem:[%s6493_s22] sm:$0xff] }
 0xefe   : > { %4897 = vmatmul.mubr.msk.bf16.vlgmr.msra.gmra.mrb[52].mxu1 %vm597_vm0, %v2157_v2 }
 0xeff   : > { %4928 = vmatprep.mubr.msk.bf16.mxu1 %vm5443_vm1, %v5442_v4  ;;  %4921 = vmatpush3.bf16.msra.mxu1 %v5247_v19 }
 0xf00   : > { %4922 = vmatprep.subr.bf16.mxu1 %v5442_v4 }
 0xf03   : > { %4923 = vmatpush3.bf16.msra.mxu1 %v5249_v21 }
 0xf04   : > { %4924 = vmatprep.subr.bf16.mxu1 %v5442_v4 }
 0xf07   : > { %4925 = vmatpush3.bf16.msra.mxu1 %v5251_v23 }
 0xf08   : > { %4926 = vmatprep.subr.bf16.mxu1 %v5442_v4 }
 0xf0b   : > { %4927 = vmatpush3.bf16.msra.mxu1 %v5253_v5  ;;  %v5376_v5 = vld [vmem:[%s6493_s22 + $0x18] sm:$0xff] }
 0xf0c   : > { %4932 = vmatprep.subr.bf16.mxu1 %v5442_v4 }
 0xfd1   : > { %v2227_v6 = vpop.f32.mrb[52].mxu1 }
 0xfd2   : > { %v2233_v7 = vmax.f32 %v2227_v6, 0.0  ;;  %v4898_v8 = vpop.f32.mrb[53].mxu1 }
 0xfd3   : > { %v2230_v9 = vpop.f32.mrb[54].mxu1 }
 0xfd4   : > { %v2234_v10 = vpack.c.bf16 %v2233_v7, %v2233_v7  ;;  %v4899_v11 = vpop.f32.mrb[55].mxu1 }
 0xfd6   : > { %4917 = vmatmul.mubr.bf16.vlgmr.msra.gmra.mrb[44].mxu0 %v2234_v10  ;;  %v5374_v10 = vld [vmem:[%s6493_s22 + $0x8] sm:$0xff] }
 0xfd7   : > { %4952 = vmatprep.mubr.msk.bf16.mxu0 %vm5443_vm1, %v5442_v4  ;;  %4945 = vmatpush3.bf16.msra.mxu0 %v5248_v20 }
 0xfd8   : > { %4946 = vmatprep.subr.bf16.mxu0 %v5442_v4 }
 0xfdb   : > { %4947 = vmatpush3.bf16.msra.mxu0 %v5250_v22 }
 0xfdc   : > { %4948 = vmatprep.subr.bf16.mxu0 %v5442_v4 }
 0xfdf   : > { %4949 = vmatpush3.bf16.msra.mxu0 %v5252_v24 }
 0xfe0   : > { %4950 = vmatprep.subr.bf16.mxu0 %v5442_v4 }
 0xfe3   : > { %4951 = vmatpush3.bf16.msra.mxu0 %v5254_v25 }
 0xfe4   : > { %4968 = vmatprep.subr.bf16.mxu0 %v5442_v4 }
0x10a9   : > { %v2333_v12 = vpop.f32.mrb[44].mxu0 }
0x10aa   : > { %v5997_v13 = vadd.f32 %v2333_v12, %v5934_v43  ;;  %v4918_v14 = vpop.f32.mrb[45].mxu0 }
0x10ab   : > { %v2336_v15 = vpop.f32.mrb[46].mxu0 }
0x10ac   : > { %v4919_v16 = vpop.f32.mrb[47].mxu0  ;;  %v2342_v17 = vmul.f32 %v5997_v13, %v5997_v13 }
0x10ae   : > { %v2343_v18 = vsel %vm597_vm0, %v2342_v17, 0.0 }
0x10af   : > { %2344 = vadd.xlane.f32.xlu1 %v2343_v18  ;;  %v5375_v18 = vld [vmem:[%s6493_s22 + $0x10] sm:$0xff] }
0x113c   : > { %v2345_v27 = vpop.xlane.xlu1 %2344 }
0x113d   : > { %v2346_v28 = vmul.f32 0.015625, %v2345_v27 }
0x113f   : > { %v2347_v29 = vadd.f32 1e-06, %v2346_v28 }
0x1141   : > { %5333 = vrsqrt.f32 %v2347_v29 }
0x114b   : > { %v5334_v30 = vpop.eup %5333 }
0x114c   : > { %v2349_v32 = vmul.f32 %v5334_v30, %v5997_v13 }
0x114e   : > { %v2356_v0 = vmul.f32 %v4347_v31, %v2349_v32 }
0x1150   : > { %v2357_v34 = vpack.c.bf16 %v2356_v0, %v2356_v0 }
0x1152   : > { %4929 = vmatmul.mubr.msk.bf16.vlgmr.msra.gmra.mrb[56].mxu1 %vm597_vm0, %v2357_v34  ;;  %4953 = vmatmul.mubr.msk.bf16.vlgmr.msra.gmra.mrb[48].mxu0 %vm597_vm0, %v2357_v34 }
0x1153   : > { %4933 = vmatpush3.bf16.msra.mxu1 %v5255_v33  ;;  %4940 = vmatprep.mubr.msk.bf16.mxu1 %vm5443_vm1, %v5442_v4 }
0x1154   : > { %4934 = vmatprep.subr.bf16.mxu1 %v5442_v4  ;;  %4970 = vmatprep.mubr.msk.bf16.mxu0 %vm5443_vm1, %v5442_v4 }
0x1157   : > { %4935 = vmatpush3.bf16.msra.mxu1 %v5256_v35 }
0x1158   : > { %4936 = vmatprep.subr.bf16.mxu1 %v5442_v4 }
0x115b   : > { %4937 = vmatpush3.bf16.msra.mxu1 %v5257_v37 }
0x115c   : > { %4938 = vmatprep.subr.bf16.mxu1 %v5442_v4 }
0x115f   : > { %4939 = vmatpush3.bf16.msra.mxu1 %v5258_v38 }
0x1160   : > { %4956 = vmatprep.subr.bf16.mxu1 %v5442_v4 }
0x1162   : > { %4941 = vmatmul.mubr.msk.bf16.vlgmr.msra.gmra.mrb[60].mxu1 %vm597_vm0, %v2357_v34 }
0x1163   : > { %4958 = vmatprep.mubr.msk.bf16.mxu1 %vm5443_vm1, %v5442_v4 }
0x1225   : > { %v2455_v39 = vpop.f32.mrb[56].mxu1  ;;  %v2585_v40 = vpop.f32.mrb[48].mxu0 }
0x1226   : > { %v2461_v41 = vpack.c.bf16 %v2455_v39, %v2455_v39  ;;  %v4930_v42 = vpop.f32.mrb[57].mxu1  ;;  %v4954_v43 = vpop.f32.mrb[49].mxu0  ;;  %v6069_v53 = vpack.c.bf16 %v2585_v40, %v2585_v40 }
0x1227   : > { %v2458_v44 = vpop.f32.mrb[58].mxu1  ;;  %v2588_v45 = vpop.f32.mrb[50].mxu0 }
0x1228   : > { %2697 = vrot.lane.b32.xlu1 %v2461_v41, %s6497_s29  ;;  %v4931_v46 = vpop.f32.mrb[59].mxu1  ;;  %v4955_v47 = vpop.f32.mrb[51].mxu0  ;;  %v2654_v54 = vsel %vm907_vm3, %v6069_v53, 0 }
0x122c   : > { %2809 = vrot.lane.b32.xlu1 %v2461_v41, %s6495_s25 }
0x1230   : > { %2919 = vrot.lane.b32.xlu1 %v2461_v41, %s6494_s26 }
0x1235   : > { %v2520_v48 = vpop.f32.mrb[60].mxu1 }
0x1236   : > { %v2526_v49 = vpack.c.bf16 %v2520_v48, %v2520_v48  ;;  %v4942_v26 = vpop.f32.mrb[61].mxu1 }
0x1237   : > { %v2523_v50 = vpop.f32.mrb[62].mxu1 }
0x1238   : > { %2700 = vrot.lane.b32.xlu0 %v2526_v49, %s6497_s29  ;;  %v4943_v51 = vpop.f32.mrb[63].mxu1  ;;  %v2596_v52 = vsel %vm844_vm2, %v2526_v49, 0 }
0x1239   : > { %4957 = vmatpush3.bf16.xpose.msra.mxu1 %v2596_v52 }
0x123a   : > { %4962 = vmatprep.subr.bf16.mxu1 %v5442_v4 }
0x123c   : > { %2811 = vrot.lane.b32.xlu0 %v2526_v49, %s6495_s25 }
0x1240   : > { %2921 = vrot.lane.b32.xlu0 %v2526_v49, %s6494_s26  ;;  %4959 = vmatmul.mubr.msk.bf16.vlgmr.msra.gmra.mrb[64].mxu1 %vm844_vm2, %v2461_v41 }
0x1241   : > { %4963 = vmatpush3.bf16.msra.mxu1 %v2654_v54  ;;  %4964 = vmatprep.mubr.msk.bf16.mxu1 %vm5443_vm1, %v5442_v4 }
0x1242   : > { %4974 = vmatprep.subr.bf16.mxu1 %v5442_v4 }
0x129a   : > { %v2698_v57 = vpop.permute.xlu1 %2697 }
0x129e   : > { %v2810_v60 = vpop.permute.xlu1 %2809 }
0x12a2   : > { %v2920_v62 = vpop.permute.xlu1 %2919 }
0x12aa   : > { %v2701_v55 = vpop.permute.xlu0 %2700 }
0x12ab   : > { %v2706_v36 = vsel %vm844_vm2, %v2701_v55, 0 }
0x12ac   : > { %4969 = vmatpush3.bf16.xpose.msra.mxu0 %v2706_v36 }
0x12ad   : > { %4980 = vmatprep.subr.bf16.mxu0 %v5442_v4 }
0x12ae   : > { %v2812_v56 = vpop.permute.xlu0 %2811 }
0x12af   : > { %v2817_v58 = vsel %vm844_vm2, %v2812_v56, 0 }
0x12b2   : > { %v2922_v59 = vpop.permute.xlu0 %2921 }
0x12b3   : > { %4971 = vmatmul.mubr.msk.bf16.vlgmr.msra.gmra.mrb[52].mxu0 %vm844_vm2, %v2698_v57  ;;  %v2927_v61 = vsel %vm844_vm2, %v2922_v59, 0 }
0x12b4   : > { %4981 = vmatpush3.bf16.xpose.msra.mxu0 %v2817_v58  ;;  %4982 = vmatprep.mubr.msk.bf16.mxu0 %vm5443_vm1, %v5442_v4 }
0x12b5   : > { %4992 = vmatprep.subr.bf16.mxu0 %v5442_v4 }
0x12bb   : > { %4983 = vmatmul.mubr.msk.bf16.vlgmr.msra.gmra.mrb[56].mxu0 %vm844_vm2, %v2810_v60 }
0x12bc   : > { %4993 = vmatpush3.bf16.xpose.msra.mxu0 %v2927_v61  ;;  %4994 = vmatprep.mubr.msk.bf16.mxu0 %vm5443_vm1, %v5442_v4 }
0x12bd   : > { %5004 = vmatprep.subr.bf16.mxu0 %v5442_v4 }
0x12c3   : > { %4995 = vmatmul.mubr.msk.bf16.vlgmr.msra.gmra.mrb[60].mxu0 %vm844_vm2, %v2920_v62 }
0x12c4   : > { %5012 = vmatprep.mubr.msk.bf16.mxu0 %vm5443_vm1, %v5442_v4 }
0x1313   : > { %v2632_v63 = vpop.f32.mrb[64].mxu1 }
0x1314   : > { %v2633_v2 = vadd.f32 %v5373_v1, %v2632_v63  ;;  %v4960_v3 = vpop.f32.mrb[65].mxu1 }
0x1315   : > { %v2635_v6 = vpop.f32.mrb[66].mxu1 }
0x1316   : > { %v4961_v7 = vpop.f32.mrb[67].mxu1  ;;  %v2638_v8 = vsel %vm891_vm4, %v2633_v2, -inf }
0x1317   : > { %2639 = vmax.xlane.f32.xlu0 %v2638_v8 }
0x1386   : > { %v2742_v9 = vpop.f32.mrb[52].mxu0 }
0x1387   : > { %v2743_v11 = vadd.f32 %v5374_v10, %v2742_v9  ;;  %v4972_v12 = vpop.f32.mrb[53].mxu0 }
0x1388   : > { %v2745_v14 = vpop.f32.mrb[54].mxu0 }
0x1389   : > { %v4973_v15 = vpop.f32.mrb[55].mxu0  ;;  %v2748_v16 = vsel %vm891_vm4, %v2743_v11, -inf }
0x138a   : > { %2749 = vmax.xlane.f32.xlu1 %v2748_v16  ;;  %v5259_v15 = vld [vmem:[%s6442_s7 + $0x20] sm:$0xff]   ;;  %v5260_v16 = vld [vmem:[%s6442_s7 + $0x28] sm:$0xff]  }
0x138b   : > { %5005 = vmatpush3.bf16.msra.mxu0 %v5259_v15  ;;  %v5274_v15 = vld [vmem:[%s6446_s11 + $0x38] sm:$0xff]  }
0x138c   : > { %5006 = vmatprep.subr.bf16.mxu0 %v5442_v4 }
0x138e   : > { %v2853_v17 = vpop.f32.mrb[56].mxu0 }
0x138f   : > { %v2854_v19 = vadd.f32 %v5375_v18, %v2853_v17  ;;  %v4984_v20 = vpop.f32.mrb[57].mxu0  ;;  %5007 = vmatpush3.bf16.msra.mxu0 %v5260_v16 }
0x1390   : > { %v2856_v21 = vpop.f32.mrb[58].mxu0  ;;  %v5261_v20 = vld [vmem:[%s6442_s7 + $0x30] sm:$0xff]   ;;  %5008 = vmatprep.subr.bf16.mxu0 %v5442_v4 }
0x1391   : > { %v4985_v22 = vpop.f32.mrb[59].mxu0  ;;  %v2859_v23 = vsel %vm891_vm4, %v2854_v19, -inf }
0x1392   : > { %2860 = vmax.xlane.f32.xlu0 %v2859_v23 }
0x1393   : > { %5009 = vmatpush3.bf16.msra.mxu0 %v5261_v20 }
0x1394   : > { %5010 = vmatprep.subr.bf16.mxu0 %v5442_v4 }
0x1396   : > { %v2963_v24 = vpop.f32.mrb[60].mxu0 }
0x1397   : > { %v2964_v25 = vadd.f32 %v5376_v5, %v2963_v24  ;;  %v4996_v27 = vpop.f32.mrb[61].mxu0 }
0x1398   : > { %v2966_v28 = vpop.f32.mrb[62].mxu0 }
0x1399   : > { %v4997_v29 = vpop.f32.mrb[63].mxu0  ;;  %v2969_v30 = vsel %vm891_vm4, %v2964_v25, -inf }
0x139a   : > { %2970 = vmax.xlane.f32.xlu0 %v2969_v30 }
0x13a4   : > { %v2640_v31 = vpop.xlane.xlu0 %2639 }
0x13a5   : > { %v2641_v32 = vsub.f32 %v2633_v2, %v2640_v31 }
0x13a7   : > { %v2642_v0 = vmul.f32 1.442695, %v2641_v32 }
0x13a9   : > { %5335 = vpow2.f32 %v2642_v0 }
0x13b3   : > { %v5336_v33 = vpop.eup %5335 }
0x13b4   : > { %v2644_v34 = vsel %vm891_vm4, %v5336_v33, 0.0 }
0x13b5   : > { %2645 = vadd.xlane.f32.xlu0 %v2644_v34 }
0x1417   : > { %v2750_v35 = vpop.xlane.xlu1 %2749 }
0x1418   : > { %v2751_v37 = vsub.f32 %v2743_v11, %v2750_v35 }
0x141a   : > { %v2752_v38 = vmul.f32 1.442695, %v2751_v37 }
0x141c   : > { %5337 = vpow2.f32 %v2752_v38  ;;  %v5263_v38 = vld [vmem:[%s6445_s10 + $0x20] sm:$0xff]  }
0x141f   : > { %v2861_v39 = vpop.xlane.xlu0 %2860 }
0x1420   : > { %v2862_v40 = vsub.f32 %v2854_v19, %v2861_v39  ;;  %v5264_v39 = vld [vmem:[%s6445_s10 + $0x28] sm:$0xff]  }
0x1422   : > { %v2863_v41 = vmul.f32 1.442695, %v2862_v40 }
0x1424   : > { %5339 = vpow2.f32 %v2863_v41 }
0x1426   : > { %v5338_v42 = vpop.eup %5337 }
0x1427   : > { %v2754_v43 = vsel %vm891_vm4, %v5338_v42, 0.0  ;;  %v2971_v46 = vpop.xlane.xlu0 %2970 }
0x1428   : > { %2755 = vadd.xlane.f32.xlu1 %v2754_v43  ;;  %v2972_v48 = vsub.f32 %v2964_v25, %v2971_v46  ;;  %v5262_v25 = vld [vmem:[%s6442_s7 + $0x38] sm:$0xff]  }
0x1429   : > { %5011 = vmatpush3.bf16.msra.mxu0 %v5262_v25 }
0x142a   : > { %v2973_v49 = vmul.f32 1.442695, %v2972_v48  ;;  %5028 = vmatprep.subr.bf16.mxu0 %v5442_v4  ;;  %v5267_v48 = vld [vmem:[%s6445_s10 + $0x38] sm:$0xff]  }
0x142e   : > { %v5340_v44 = vpop.eup %5339 }
0x142f   : > { %v2865_v45 = vsel %vm891_vm4, %v5340_v44, 0.0 }
0x1430   : > { %2866 = vadd.xlane.f32.xlu0 %v2865_v45 }
0x1439   : > { %2871 = vrot.lane.b32.xlu1 %v6069_v53, %s6495_s25 }
0x1442   : > { %v2646_v47 = vpop.xlane.xlu0 %2645 }
0x1443   : > { %5341 = vrcp.f32 %v2646_v47  ;;  %v5265_v47 = vld [vmem:[%s6445_s10 + $0x30] sm:$0xff]  }
0x1444   : > { %5343 = vpow2.f32 %v2973_v49  ;;  %v5268_v49 = vld [vmem:[%s6444_s9 + $0x28] sm:$0xff]  }
0x1446   : > { %2761 = vrot.lane.b32.xlu0 %v6069_v53, %s6497_s29 }
0x144d   : > { %v5342_v26 = vpop.eup %5341 }
0x144e   : > { %v2648_v50 = vmul.f32 %v5342_v26, %v5336_v33  ;;  %v5344_v52 = vpop.eup %5343  ;;  %v5377_v26 = vld [vmem:[%s5806_s19] sm:$0xf]  ;;  %s5382_s19 = sshll.u32 %s5450_s1, 4  ;;  %s5383_s19 = int_to_ptr.vmem [resolvable:$false] %s5382_s19 }
0x144f   : > { %v2975_v54 = vsel %vm891_vm4, %v5344_v52, 0.0 }
0x1450   : > { %v2649_v51 = vpack.c.bf16 %v2648_v50, %v2648_v50  ;;  %v5269_v50 = vld [vmem:[%s6444_s9 + $0x30] sm:$0xff]  }
0x1452   : > { %4965 = vmatmul.mubr.msk.bf16.vlgmr.msra.gmra.mrb[68].mxu1 %vm891_vm4, %v2649_v51  ;;  %v5270_v51 = vld [vmem:[%s6444_s9 + $0x38] sm:$0xff]  }
0x1453   : > { %4976 = vmatprep.mubr.msk.bf16.mxu1 %vm5443_vm1, %v5442_v4 }
0x145d   : > { %2976 = vadd.xlane.f32.xlu1 %v2975_v54 }
0x146e   : > { %2981 = vrot.lane.b32.xlu1 %v6069_v53, %s6494_s26 }
0x14b5   : > { %v2756_v55 = vpop.xlane.xlu1 %2755 }
0x14b6   : > { %5345 = vrcp.f32 %v2756_v55 }
0x14b9   : > { %v2872_v60 = vpop.permute.xlu1 %2871 }
0x14ba   : > { %v2877_v62 = vsel %vm907_vm3, %v2872_v60, 0 }
0x14bd   : > { %v2867_v36 = vpop.xlane.xlu0 %2866 }
0x14be   : > { %5347 = vrcp.f32 %v2867_v36 }
0x14c0   : > { %v5346_v56 = vpop.eup %5345 }
0x14c1   : > { %v2758_v57 = vmul.f32 %v5346_v56, %v5338_v42  ;;  %v2762_v58 = vpop.permute.xlu0 %2761  ;;  %v4409_v56 = vld [vmem:[%s6443_s8 + $0x1] ss:$0 sm:$0xff] }
0x14c2   : > { %v2767_v59 = vsel %vm907_vm3, %v2762_v58, 0 }
0x14c3   : > { %4975 = vmatpush3.bf16.msra.mxu1 %v2767_v59  ;;  %v2759_v61 = vpack.c.bf16 %v2758_v57, %v2758_v57 }
0x14c4   : > { %4986 = vmatprep.subr.bf16.mxu1 %v5442_v4 }
0x14c6   : > { %4977 = vmatmul.mubr.msk.bf16.vlgmr.msra.gmra.mrb[72].mxu1 %vm891_vm4, %v2759_v61 }
0x14c7   : > { %4987 = vmatpush3.bf16.msra.mxu1 %v2877_v62  ;;  %4988 = vmatprep.mubr.msk.bf16.mxu1 %vm5443_vm1, %v5442_v4 }
0x14c8   : > { %v5348_v53 = vpop.eup %5347  ;;  %4998 = vmatprep.subr.bf16.mxu1 %v5442_v4 }
0x14c9   : > { %v2869_v63 = vmul.f32 %v5348_v53, %v5340_v44 }
0x14cb   : > { %v2870_v1 = vpack.c.bf16 %v2869_v63, %v2869_v63 }
0x14ce   : > { %4989 = vmatmul.mubr.msk.bf16.vlgmr.msra.gmra.mrb[76].mxu1 %vm891_vm4, %v2870_v1 }
0x14cf   : > { %5000 = vmatprep.mubr.msk.bf16.mxu1 %vm5443_vm1, %v5442_v4 }
0x14ea   : > { %v2977_v2 = vpop.xlane.xlu1 %2976 }
0x14eb   : > { %5349 = vrcp.f32 %v2977_v2 }
0x14ee   : > { %v2982_v3 = vpop.permute.xlu1 %2981 }
0x14ef   : > { %v2987_v6 = vsel %vm907_vm3, %v2982_v3, 0 }
0x14f0   : > { %4999 = vmatpush3.bf16.msra.mxu1 %v2987_v6 }
0x14f1   : > { %5016 = vmatprep.subr.bf16.mxu1 %v5442_v4 }
0x14f5   : > { %v5350_v7 = vpop.eup %5349 }
0x14f6   : > { %v2979_v8 = vmul.f32 %v5350_v7, %v5344_v52 }
0x14f8   : > { %v2980_v9 = vpack.c.bf16 %v2979_v8, %v2979_v8 }
0x14fa   : > { %5001 = vmatmul.mubr.msk.bf16.vlgmr.msra.gmra.mrb[80].mxu1 %vm891_vm4, %v2980_v9 }
0x14fb   : > { %5024 = vmatprep.mubr.msk.bf16.mxu1 %vm5443_vm1, %v5442_v4 }
0x1525   : > { %v2690_v10 = vpop.f32.mrb[68].mxu1 }
0x1526   : > { %v4966_v11 = vpop.f32.mrb[69].mxu1 }
0x1527   : > { %v2693_v12 = vpop.f32.mrb[70].mxu1  ;;  %v5271_v11 = vld [vmem:[%s6446_s11 + $0x20] sm:$0xff]  }
0x1528   : > { %v4967_v14 = vpop.f32.mrb[71].mxu1  ;;  %v5272_v12 = vld [vmem:[%s6446_s11 + $0x28] sm:$0xff]  }
0x1529   : > { %v5273_v14 = vld [vmem:[%s6446_s11 + $0x30] sm:$0xff]  }
0x1599   : > { %v2803_v17 = vpop.f32.mrb[72].mxu1 }
0x159a   : > { %3030 = vrot.lane.b32.xlu1 %v2803_v17, %s6498_s27  ;;  %v4978_v18 = vpop.f32.mrb[73].mxu1 }
0x159b   : > { %v2806_v19 = vpop.f32.mrb[74].mxu1 }
0x159c   : > { %v4979_v21 = vpop.f32.mrb[75].mxu1 }
0x15a1   : > { %v2913_v22 = vpop.f32.mrb[76].mxu1 }
0x15a2   : > { %3034 = vrot.lane.b32.xlu0 %v2913_v22, %s6499_s23  ;;  %v4990_v23 = vpop.f32.mrb[77].mxu1 }
0x15a3   : > { %v2916_v24 = vpop.f32.mrb[78].mxu1 }
0x15a4   : > { %v4991_v5 = vpop.f32.mrb[79].mxu1 }
0x15cd   : > { %v3023_v27 = vpop.f32.mrb[80].mxu1 }
0x15ce   : > { %3038 = vrot.lane.b32.xlu1 %v3023_v27, %s6500_s24  ;;  %v5002_v28 = vpop.f32.mrb[81].mxu1 }
0x15cf   : > { %v3026_v29 = vpop.f32.mrb[82].mxu1 }
0x15d0   : > { %v5003_v30 = vpop.f32.mrb[83].mxu1 }
0x160c   : > { %v3031_v31 = vpop.permute.xlu1 %3030 }
0x160d   : > { %v3041_v0 = vsel %vm844_vm2, %v2690_v10, %v3031_v31 }
0x1614   : > { %v3035_v32 = vpop.permute.xlu0 %3034 }
0x1615   : > { %v3042_v33 = vsel %vm1297_vm5, %v3041_v0, %v3035_v32 }
0x1640   : > { %v3039_v34 = vpop.permute.xlu1 %3038 }
0x1641   : > { %v3043_v35 = vsel %vm1299_vm6, %v3042_v33, %v3039_v34 }
0x1642   : > { %v3044_v37 = vpack.c.bf16 %v3043_v35, %v3043_v35 }
0x1644   : > { %5013 = vmatmul.mubr.msk.bf16.vlgmr.msra.gmra.mrb[64].mxu0 %vm597_vm0, %v3044_v37 }
0x1645   : > { %5036 = vmatprep.mubr.msk.bf16.mxu0 %vm5443_vm1, %v5442_v4  ;;  %5029 = vmatpush3.bf16.msra.mxu0 %v5263_v38 }
0x1646   : > { %5030 = vmatprep.subr.bf16.mxu0 %v5442_v4 }
0x1649   : > { %5031 = vmatpush3.bf16.msra.mxu0 %v5264_v39 }
0x164a   : > { %5032 = vmatprep.subr.bf16.mxu0 %v5442_v4 }
0x164d   : > { %5033 = vmatpush3.bf16.msra.mxu0 %v5265_v47 }
0x164e   : > { %5034 = vmatprep.subr.bf16.mxu0 %v5442_v4 }
0x1651   : > { %5035 = vmatpush3.bf16.msra.mxu0 %v5267_v48 }
0x1652   : > { %5052 = vmatprep.subr.bf16.mxu0 %v5442_v4 }
0x1654   : > { %5037 = vmatmul.mubr.msk.bf16.vlgmr.msra.gmra.mrb[68].mxu0 %vm597_vm0, %v5377_v26 }
0x1655   : > { %5054 = vmatprep.mubr.msk.bf16.mxu0 %vm5443_vm1, %v5442_v4 }
0x1717   : > { %v3106_v40 = vpop.f32.mrb[64].mxu0 }
0x1718   : > { %v6172_v41 = vadd.f32 %v3106_v40, %v5997_v13  ;;  %v5014_v42 = vpop.f32.mrb[65].mxu0  ;;  %v5266_v13 = vld [vmem:[%s6444_s9 + $0x20] sm:$0xff]  }
0x1719   : > { %v3109_v43 = vpop.f32.mrb[66].mxu0  ;;  %5017 = vmatpush3.bf16.msra.mxu1 %v5266_v13 }
0x171a   : > { %v5015_v44 = vpop.f32.mrb[67].mxu0  ;;  %v3115_v45 = vmul.f32 %v6172_v41, %v6172_v41  ;;  %5018 = vmatprep.subr.bf16.mxu1 %v5442_v4 }
0x171c   : > { %v3116_v46 = vsel %vm597_vm0, %v3115_v45, 0.0 }
0x171d   : > { %3117 = vadd.xlane.f32.xlu0 %v3116_v46  ;;  %5019 = vmatpush3.bf16.msra.mxu1 %v5268_v49 }
0x171e   : > { %5020 = vmatprep.subr.bf16.mxu1 %v5442_v4 }
0x1721   : > { %5021 = vmatpush3.bf16.msra.mxu1 %v5269_v50 }
0x1722   : > { %5022 = vmatprep.subr.bf16.mxu1 %v5442_v4 }
0x1725   : > { %5023 = vmatpush3.bf16.msra.mxu1 %v5270_v51 }
0x1726   : > { %5040 = vmatprep.subr.bf16.mxu1 %v5442_v4 }
0x1727   : > { %v3293_v60 = vpop.f32.mrb[68].mxu0 }
0x1728   : > { %v3299_v61 = vpack.c.bf16 %v3293_v60, %v3293_v60  ;;  %v5038_v62 = vpop.f32.mrb[69].mxu0 }
0x1729   : > { %v3296_v53 = vpop.f32.mrb[70].mxu0 }
0x172a   : > { %3473 = vrot.lane.b32.xlu1 %v3299_v61, %s6497_s29  ;;  %v5039_v63 = vpop.f32.mrb[71].mxu0  ;;  %v3369_v1 = vsel %vm844_vm2, %v3299_v61, 0 }
0x172b   : > { %5053 = vmatpush3.bf16.xpose.msra.mxu0 %v3369_v1 }
0x172c   : > { %5064 = vmatprep.subr.bf16.mxu0 %v5442_v4 }
0x172e   : > { %3584 = vrot.lane.b32.xlu1 %v3299_v61, %s6495_s25 }
0x179c   : > { %v3474_v3 = vpop.permute.xlu1 %3473 }
0x179d   : > { %v3479_v8 = vsel %vm844_vm2, %v3474_v3, 0 }
0x17a0   : > { %v3585_v16 = vpop.permute.xlu1 %3584 }
0x17a1   : > { %v3590_v18 = vsel %vm844_vm2, %v3585_v16, 0 }
0x17aa   : > { %v3118_v52 = vpop.xlane.xlu0 %3117 }
0x17ab   : > { %v3119_v54 = vmul.f32 0.015625, %v3118_v52 }
0x17ad   : > { %v3120_v55 = vadd.f32 1e-06, %v3119_v54 }
0x17af   : > { %5351 = vrsqrt.f32 %v3120_v55 }
0x17b9   : > { %v5352_v36 = vpop.eup %5351 }
0x17ba   : > { %v3122_v57 = vmul.f32 %v5352_v36, %v6172_v41 }
0x17bc   : > { %v3129_v58 = vmul.f32 %v4409_v56, %v3122_v57 }
0x17be   : > { %v3130_v59 = vpack.c.bf16 %v3129_v58, %v3129_v58 }
0x17c0   : > { %5025 = vmatmul.mubr.msk.bf16.vlgmr.msra.gmra.mrb[84].mxu1 %vm597_vm0, %v3130_v59 }
0x17c1   : > { %5048 = vmatprep.mubr.msk.bf16.mxu1 %vm5443_vm1, %v5442_v4  ;;  %5041 = vmatpush3.bf16.msra.mxu1 %v5271_v11 }
0x17c2   : > { %5042 = vmatprep.subr.bf16.mxu1 %v5442_v4 }
0x17c5   : > { %5043 = vmatpush3.bf16.msra.mxu1 %v5272_v12 }
0x17c6   : > { %5044 = vmatprep.subr.bf16.mxu1 %v5442_v4 }
0x17c9   : > { %5045 = vmatpush3.bf16.msra.mxu1 %v5273_v14 }
0x17ca   : > { %5046 = vmatprep.subr.bf16.mxu1 %v5442_v4 }
0x17cd   : > { %5047 = vmatpush3.bf16.msra.mxu1 %v5274_v15 }
0x17ce   : > { %5058 = vmatprep.subr.bf16.mxu1 %v5442_v4 }
0x17d0   : > { %5049 = vmatmul.mubr.msk.bf16.vlgmr.msra.gmra.mrb[88].mxu1 %vm597_vm0, %v5377_v26 }
0x17d1   : > { %5060 = vmatprep.mubr.msk.bf16.mxu1 %vm5443_vm1, %v5442_v4 }
0x1893   : > { %v3228_v2 = vpop.f32.mrb[84].mxu1 }
0x1894   : > { %v3234_v6 = vpack.c.bf16 %v3228_v2, %v3228_v2  ;;  %v5026_v7 = vpop.f32.mrb[85].mxu1 }
0x1895   : > { %v3231_v9 = vpop.f32.mrb[86].mxu1 }
0x1896   : > { %v5027_v10 = vpop.f32.mrb[87].mxu1  ;;  %3470 = vrot.lane.b32.xlu1 %v3234_v6, %s6497_s29  ;;  %5055 = vmatmul.mubr.msk.bf16.vlgmr.msra.gmra.mrb[72].mxu0 %vm844_vm2, %v3234_v6 }
0x1897   : > { %5065 = vmatpush3.bf16.xpose.msra.mxu0 %v3479_v8  ;;  %5066 = vmatprep.mubr.msk.bf16.mxu0 %vm5443_vm1, %v5442_v4 }
0x1898   : > { %5076 = vmatprep.subr.bf16.mxu0 %v5442_v4 }
0x189a   : > { %3582 = vrot.lane.b32.xlu1 %v3234_v6, %s6495_s25 }
0x189e   : > { %3694 = vrot.lane.b32.xlu1 %v3299_v61, %s6494_s26 }
0x18a2   : > { %3692 = vrot.lane.b32.xlu1 %v3234_v6, %s6494_s26 }
0x18a3   : > { %v3358_v48 = vpop.f32.mrb[88].mxu1 }
0x18a4   : > { %v3364_v49 = vpack.c.bf16 %v3358_v48, %v3358_v48  ;;  %v5050_v26 = vpop.f32.mrb[89].mxu1 }
0x18a5   : > { %v3361_v50 = vpop.f32.mrb[90].mxu1 }
0x18a6   : > { %v3427_v51 = vsel %vm907_vm3, %v3364_v49, 0  ;;  %v5051_v52 = vpop.f32.mrb[91].mxu1 }
0x18a7   : > { %5059 = vmatpush3.bf16.msra.mxu1 %v3427_v51 }
0x18a8   : > { %5070 = vmatprep.subr.bf16.mxu1 %v5442_v4 }
0x1908   : > { %v3471_v17 = vpop.permute.xlu1 %3470 }
0x1909   : > { %5067 = vmatmul.mubr.msk.bf16.vlgmr.msra.gmra.mrb[76].mxu0 %vm844_vm2, %v3471_v17 }
0x190a   : > { %5077 = vmatpush3.bf16.xpose.msra.mxu0 %v3590_v18  ;;  %5078 = vmatprep.mubr.msk.bf16.mxu0 %vm5443_vm1, %v5442_v4 }
0x190b   : > { %5088 = vmatprep.subr.bf16.mxu0 %v5442_v4 }
0x190c   : > { %v3583_v19 = vpop.permute.xlu1 %3582 }
0x1910   : > { %v3695_v20 = vpop.permute.xlu1 %3694 }
0x1911   : > { %v3700_v21 = vsel %vm844_vm2, %v3695_v20, 0  ;;  %5079 = vmatmul.mubr.msk.bf16.vlgmr.msra.gmra.mrb[80].mxu0 %vm844_vm2, %v3583_v19 }
0x1912   : > { %5089 = vmatpush3.bf16.xpose.msra.mxu0 %v3700_v21  ;;  %5090 = vmatprep.mubr.msk.bf16.mxu0 %vm5443_vm1, %v5442_v4 }
0x1913   : > { %5100 = vmatprep.subr.bf16.mxu0 %v5442_v4 }
0x1914   : > { %v3693_v22 = vpop.permute.xlu1 %3692 }
0x1919   : > { %5091 = vmatmul.mubr.msk.bf16.vlgmr.msra.gmra.mrb[84].mxu0 %vm844_vm2, %v3693_v22 }
0x191a   : > { %5108 = vmatprep.mubr.msk.bf16.mxu0 %vm5443_vm1, %v5442_v4 }
0x1969   : > { %v3405_v23 = vpop.f32.mrb[72].mxu0 }
0x196a   : > { %v5056_v24 = vpop.f32.mrb[73].mxu0  ;;  %v3411_v5 = vsel %vm891_vm4, %v3405_v23, -inf }
0x196b   : > { %3412 = vmax.xlane.f32.xlu1 %v3411_v5  ;;  %v3408_v25 = vpop.f32.mrb[74].mxu0 }
0x196c   : > { %v5057_v27 = vpop.f32.mrb[75].mxu0 }
0x197c   : > { %3644 = vrot.lane.b32.xlu1 %v3364_v49, %s6495_s25 }
0x1980   : > { %3754 = vrot.lane.b32.xlu1 %v3364_v49, %s6494_s26  ;;  %s6502_s26 = sld [smem:[#allocation16_spill]] }
0x19dc   : > { %v3515_v28 = vpop.f32.mrb[76].mxu0 }
0x19dd   : > { %v5068_v29 = vpop.f32.mrb[77].mxu0  ;;  %v3521_v30 = vsel %vm891_vm4, %v3515_v28, -inf }
0x19de   : > { %3522 = vmax.xlane.f32.xlu0 %v3521_v30  ;;  %v3518_v31 = vpop.f32.mrb[78].mxu0 }
0x19df   : > { %v5069_v32 = vpop.f32.mrb[79].mxu0 }
0x19e4   : > { %v3626_v0 = vpop.f32.mrb[80].mxu0 }
0x19e5   : > { %v5080_v33 = vpop.f32.mrb[81].mxu0  ;;  %v3632_v34 = vsel %vm891_vm4, %v3626_v0, -inf }
0x19e6   : > { %3633 = vmax.xlane.f32.xlu0 %v3632_v34  ;;  %v3629_v35 = vpop.f32.mrb[82].mxu0  ;;  %v5276_v33 = vld [vmem:[%s6447_s12 + $0x28] sm:$0xff]   ;;  %v5277_v34 = vld [vmem:[%s6447_s12 + $0x30] sm:$0xff]  }
0x19e7   : > { %v5081_v37 = vpop.f32.mrb[83].mxu0 }
0x19ec   : > { %v3736_v38 = vpop.f32.mrb[84].mxu0 }
0x19ed   : > { %v5092_v39 = vpop.f32.mrb[85].mxu0  ;;  %v3742_v40 = vsel %vm891_vm4, %v3736_v38, -inf }
0x19ee   : > { %3743 = vmax.xlane.f32.xlu0 %v3742_v40  ;;  %v3739_v42 = vpop.f32.mrb[86].mxu0  ;;  %v5278_v40 = vld [vmem:[%s6447_s12 + $0x38] sm:$0xff]  }
0x19ef   : > { %v5093_v43 = vpop.f32.mrb[87].mxu0 }
0x19f8   : > { %v3413_v44 = vpop.xlane.xlu1 %3412 }
0x19f9   : > { %v3414_v45 = vsub.f32 %v3405_v23, %v3413_v44 }
0x19fb   : > { %v3415_v46 = vmul.f32 1.442695, %v3414_v45 }
0x19fc   : > { %v3645_v20 = vpop.permute.xlu1 %3644 }
0x19fd   : > { %5353 = vpow2.f32 %v3415_v46  ;;  %v3650_v21 = vsel %vm907_vm3, %v3645_v20, 0 }
0x1a00   : > { %v3755_v23 = vpop.permute.xlu1 %3754 }
0x1a01   : > { %v3760_v25 = vsel %vm907_vm3, %v3755_v23, 0 }
0x1a07   : > { %v5354_v47 = vpop.eup %5353 }
0x1a08   : > { %v3417_v13 = vsel %vm891_vm4, %v5354_v47, 0.0 }
0x1a09   : > { %3418 = vadd.xlane.f32.xlu0 %v3417_v13 }
0x1a6b   : > { %v3523_v54 = vpop.xlane.xlu0 %3522 }
0x1a6c   : > { %v3524_v55 = vsub.f32 %v3515_v28, %v3523_v54 }
0x1a6e   : > { %v3525_v36 = vmul.f32 1.442695, %v3524_v55 }
0x1a70   : > { %5355 = vpow2.f32 %v3525_v36 }
0x1a73   : > { %v3634_v56 = vpop.xlane.xlu0 %3633 }
0x1a74   : > { %v3635_v57 = vsub.f32 %v3626_v0, %v3634_v56  ;;  %v5275_v0 = vld [vmem:[%s6447_s12 + $0x20] sm:$0xff]  }
0x1a75   : > { %5101 = vmatpush3.bf16.msra.mxu0 %v5275_v0  ;;  %v5291_v0 = vld [vmem:[%s6452_s17] sm:$0xff]  }
0x1a76   : > { %v3636_v58 = vmul.f32 1.442695, %v3635_v57  ;;  %5102 = vmatprep.subr.bf16.mxu0 %v5442_v4 }
0x1a78   : > { %5357 = vpow2.f32 %v3636_v58 }
0x1a79   : > { %5103 = vmatpush3.bf16.msra.mxu0 %v5276_v33  ;;  %v5292_v33 = vld [vmem:[%s6452_s17 + $0x8] sm:$0xff]  }
0x1a7a   : > { %v5356_v59 = vpop.eup %5355  ;;  %5104 = vmatprep.subr.bf16.mxu0 %v5442_v4 }
0x1a7b   : > { %v3744_v60 = vpop.xlane.xlu0 %3743  ;;  %v3527_v61 = vsel %vm891_vm4, %v5356_v59, 0.0 }
0x1a7c   : > { %v3745_v62 = vsub.f32 %v3736_v38, %v3744_v60  ;;  %3528 = vadd.xlane.f32.xlu0 %v3527_v61 }
0x1a7d   : > { %5105 = vmatpush3.bf16.msra.mxu0 %v5277_v34  ;;  %v5293_v34 = vld [vmem:[%s6452_s17 + $0x10] sm:$0xff]  }
0x1a7e   : > { %v3746_v53 = vmul.f32 1.442695, %v3745_v62  ;;  %5106 = vmatprep.subr.bf16.mxu0 %v5442_v4  ;;  %v5279_v62 = vld [vmem:[%s6449_s14 + $0x20] sm:$0xff]  }
0x1a80   : > { %5359 = vpow2.f32 %v3746_v53  ;;  %v5280_v53 = vld [vmem:[%s6449_s14 + $0x28] sm:$0xff]  }
0x1a81   : > { %5107 = vmatpush3.bf16.msra.mxu0 %v5278_v40 }
0x1a82   : > { %v5358_v63 = vpop.eup %5357  ;;  %5124 = vmatprep.subr.bf16.mxu0 %v5442_v4 }
0x1a83   : > { %v3638_v1 = vsel %vm891_vm4, %v5358_v63, 0.0 }
0x1a84   : > { %3639 = vadd.xlane.f32.xlu0 %v3638_v1  ;;  %v5283_v1 = vld [vmem:[%s6450_s15 + $0x40] sm:$0xff]  }
0x1a8a   : > { %v5360_v2 = vpop.eup %5359 }
0x1a8b   : > { %v3748_v3 = vsel %vm891_vm4, %v5360_v2, 0.0 }
0x1a8c   : > { %3749 = vadd.xlane.f32.xlu0 %v3748_v3  ;;  %v5285_v3 = vld [vmem:[%s6450_s15 + $0x50] sm:$0xff]  }
0x1a96   : > { %v3419_v6 = vpop.xlane.xlu0 %3418 }
0x1a97   : > { %5361 = vrcp.f32 %v3419_v6  ;;  %v5286_v6 = vld [vmem:[%s6450_s15 + $0x58] sm:$0xff]  }
0x1aa1   : > { %v5362_v7 = vpop.eup %5361 }
0x1aa2   : > { %v3421_v8 = vmul.f32 %v5362_v7, %v5354_v47  ;;  %3534 = vrot.lane.b32.xlu0 %v3364_v49, %s6497_s29  ;;  %v5287_v7 = vld [vmem:[%s6450_s15 + $0x60] sm:$0xff]   ;;  %s577_s29 = sand.u32 1, %s5432_s28  }
0x1aa3   : > { %s4271_s2 = sshll.u32 %s577_s29, 3  ;;  %s4183_s30 = scalar_lea.sflag [#allocation3], %s577_s29 }
0x1aa4   : > { %v3422_v9 = vpack.c.bf16 %v3421_v8, %v3421_v8  ;;  %v5288_v8 = vld [vmem:[%s6450_s15 + $0x68] sm:$0xff]   ;;  %s579_s16 = scalar_lea.vmem [#allocation2], %s4271_s2 }
0x1aa5   : > { %s4196_s0 = sshll.u32 %s579_s16, 4  ;;  %s6390_s0 = int_to_ptr.vmem [resolvable:$true] %s4196_s0 }
0x1aa6   : > { %5061 = vmatmul.mubr.msk.bf16.vlgmr.msra.gmra.mrb[92].mxu1 %vm891_vm4, %v3422_v9  ;;  %v5289_v9 = vld [vmem:[%s6450_s15 + $0x70] sm:$0xff]   ;;  %s5378_s20 = scalar_lea.vmem %s6390_s0, 128  ;;  %p5385_p0 = scmp.lt.s32.totalorder %s6390_s0, %s5383_s19 }
0x1aa7   : > { %5072 = vmatprep.mubr.msk.bf16.mxu1 %vm5443_vm1, %v5442_v4  ;;  %p5379_p11 = scmp.ne.s32.totalorder %s6390_s0, %s5378_s20 }
0x1aa9   : > { %p5380_p12 = pnand %p5379_p11, %p5584_p5 }
0x1aab   : > { %p5381_p13 = pneg %p5380_p12 }
0x1b09   : > { %v3529_v10 = vpop.xlane.xlu0 %3528 }
0x1b0a   : > { %5363 = vrcp.f32 %v3529_v10 }
0x1b11   : > { %v3640_v11 = vpop.xlane.xlu0 %3639 }
0x1b12   : > { %5365 = vrcp.f32 %v3640_v11 }
0x1b14   : > { %v5364_v12 = vpop.eup %5363 }
0x1b15   : > { %v3531_v15 = vmul.f32 %v5364_v12, %v5356_v59 }
0x1b17   : > { %v3532_v18 = vpack.c.bf16 %v3531_v15, %v3531_v15  ;;  %v4471_v15 = vld [vmem:[%s6448_s13 + $0x1] ss:$0 sm:$0xff] }
0x1b19   : > { %v3750_v14 = vpop.xlane.xlu0 %3749 }
0x1b1a   : > { %5367 = vrcp.f32 %v3750_v14 }
0x1b1c   : > { %v5366_v19 = vpop.eup %5365 }
0x1b1d   : > { %v3535_v16 = vpop.permute.xlu0 %3534  ;;  %v3642_v22 = vmul.f32 %v5366_v19, %v5358_v63  ;;  %v5282_v63 = vld [vmem:[%s6449_s14 + $0x38] sm:$0xff]  }
0x1b1e   : > { %v3540_v17 = vsel %vm907_vm3, %v3535_v16, 0  ;;  %v5290_v19 = vld [vmem:[%s6450_s15 + $0x78] sm:$0xff]  }
0x1b1f   : > { %5071 = vmatpush3.bf16.msra.mxu1 %v3540_v17  ;;  %v3643_v24 = vpack.c.bf16 %v3642_v22, %v3642_v22 }
0x1b20   : > { %5082 = vmatprep.subr.bf16.mxu1 %v5442_v4 }
0x1b22   : > { %5073 = vmatmul.mubr.msk.bf16.vlgmr.msra.gmra.mrb[96].mxu1 %vm891_vm4, %v3532_v18 }
0x1b23   : > { %5083 = vmatpush3.bf16.msra.mxu1 %v3650_v21  ;;  %5084 = vmatprep.mubr.msk.bf16.mxu1 %vm5443_vm1, %v5442_v4 }
0x1b24   : > { %5094 = vmatprep.subr.bf16.mxu1 %v5442_v4  ;;  %v5368_v5 = vpop.eup %5367 }
0x1b25   : > { %v3752_v27 = vmul.f32 %v5368_v5, %v5360_v2  ;;  %v5284_v2 = vld [vmem:[%s6450_s15 + $0x48] sm:$0xff]  }
0x1b27   : > { %v3753_v28 = vpack.c.bf16 %v3752_v27, %v3752_v27 }
0x1b2a   : > { %5085 = vmatmul.mubr.msk.bf16.vlgmr.msra.gmra.mrb[100].mxu1 %vm891_vm4, %v3643_v24 }
0x1b2b   : > { %5095 = vmatpush3.bf16.msra.mxu1 %v3760_v25  ;;  %5096 = vmatprep.mubr.msk.bf16.mxu1 %vm5443_vm1, %v5442_v4 }
0x1b2c   : > { %5112 = vmatprep.subr.bf16.mxu1 %v5442_v4 }
0x1b32   : > { %5097 = vmatmul.mubr.msk.bf16.vlgmr.msra.gmra.mrb[104].mxu1 %vm891_vm4, %v3753_v28 }
0x1b33   : > { %5120 = vmatprep.mubr.msk.bf16.mxu1 %vm5443_vm1, %v5442_v4  ;;  %5113 = vmatpush3.bf16.msra.mxu1 %v5279_v62 }
0x1b34   : > { %5114 = vmatprep.subr.bf16.mxu1 %v5442_v4 }
0x1b37   : > { %5115 = vmatpush3.bf16.msra.mxu1 %v5280_v53 }
0x1b38   : > { %5116 = vmatprep.subr.bf16.mxu1 %v5442_v4 }
0x1b79   : > { %v3463_v29 = vpop.f32.mrb[92].mxu1 }
0x1b7a   : > { %v5062_v30 = vpop.f32.mrb[93].mxu1 }
0x1b7b   : > { %v3466_v31 = vpop.f32.mrb[94].mxu1 }
0x1b7c   : > { %v5063_v32 = vpop.f32.mrb[95].mxu1 }
0x1bf5   : > { %v3576_v35 = vpop.f32.mrb[96].mxu1 }
0x1bf6   : > { %3803 = vrot.lane.b32.xlu0 %v3576_v35, %s6498_s27  ;;  %v5074_v37 = vpop.f32.mrb[97].mxu1  ;;  %v5294_v35 = vld [vmem:[%s6452_s17 + $0x18] sm:$0xff]  }
0x1bf7   : > { %v3579_v38 = vpop.f32.mrb[98].mxu1 }
0x1bf8   : > { %v5075_v39 = vpop.f32.mrb[99].mxu1 }
0x1bfd   : > { %v3686_v42 = vpop.f32.mrb[100].mxu1 }
0x1bfe   : > { %3807 = vrot.lane.b32.xlu1 %v3686_v42, %s6499_s23  ;;  %v5086_v43 = vpop.f32.mrb[101].mxu1  ;;  %v4509_v42 = vld [vmem:[%s6502_s26] ss:$0 sm:$0xff]  ;;  %s6504_s23 = sld [smem:[#allocation17_spill]]  ;;  %s5384_s26 = scalar_lea.vmem %s5383_s19, 256 }
0x1bff   : > { %v3689_v44 = vpop.f32.mrb[102].mxu1  ;;  %p5386_p1 = scmp.lt.s32.totalorder %s5384_s26, %s5378_s20 }
0x1c00   : > { %v5087_v45 = vpop.f32.mrb[103].mxu1 }
0x1c01   : > { %p5387_p2 = por %p5386_p1, %p5385_p0 }
0x1c03   : > { %p5388_p3 = pnand %p5387_p2, %p5381_p13 }
0x1c05   : > { %v3796_v46 = vpop.f32.mrb[104].mxu1 }
0x1c06   : > { %3811 = vrot.lane.b32.xlu0 %v3796_v46, %s6500_s24  ;;  %v5098_v47 = vpop.f32.mrb[105].mxu1  ;;  %s6395_s24 = scalar_lea.hbm %s6504_s23, %s4516_s21 }
0x1c07   : > { %v3799_v13 = vpop.f32.mrb[106].mxu1 }
0x1c08   : > { %v5099_v48 = vpop.f32.mrb[107].mxu1 }
0x1c68   : > { %v3804_v49 = vpop.permute.xlu0 %3803 }
0x1c69   : > { %v3814_v50 = vsel %vm844_vm2, %v3463_v29, %v3804_v49 }
0x1c70   : > { %v3808_v26 = vpop.permute.xlu1 %3807 }
0x1c71   : > { %v3815_v51 = vsel %vm1297_vm5, %v3814_v50, %v3808_v26 }
0x1c78   : > { %v3812_v52 = vpop.permute.xlu0 %3811 }
0x1c79   : > { %v3816_v54 = vsel %vm1299_vm6, %v3815_v51, %v3812_v52 }
0x1c7a   : > { %v3817_v55 = vpack.c.bf16 %v3816_v54, %v3816_v54 }
0x1c7c   : > { %5109 = vmatmul.mubr.msk.bf16.vlgmr.msra.gmra.mrb[88].mxu0 %vm597_vm0, %v3817_v55 }
0x1c7d   : > { %5140 = vmatprep.mubr.msk.bf16.mxu0 %vm5443_vm1, %v5442_v4  ;;  %5125 = vmatpush3.bf16.msra.mxu0 %v5283_v1 }
0x1c7e   : > { %5126 = vmatprep.subr.bf16.mxu0 %v5442_v4 }
0x1c81   : > { %5127 = vmatpush3.bf16.msra.mxu0 %v5284_v2 }
0x1c82   : > { %5128 = vmatprep.subr.bf16.mxu0 %v5442_v4 }
0x1c85   : > { %5129 = vmatpush3.bf16.msra.mxu0 %v5285_v3 }
0x1c86   : > { %5130 = vmatprep.subr.bf16.mxu0 %v5442_v4 }
0x1c89   : > { %5131 = vmatpush3.bf16.msra.mxu0 %v5286_v6 }
0x1c8a   : > { %5132 = vmatprep.subr.bf16.mxu0 %v5442_v4 }
0x1c8d   : > { %5133 = vmatpush3.bf16.msra.mxu0 %v5287_v7 }
0x1c8e   : > { %5134 = vmatprep.subr.bf16.mxu0 %v5442_v4 }
0x1c91   : > { %5135 = vmatpush3.bf16.msra.mxu0 %v5288_v8 }
0x1c92   : > { %5136 = vmatprep.subr.bf16.mxu0 %v5442_v4 }
0x1c95   : > { %5137 = vmatpush3.bf16.msra.mxu0 %v5289_v9 }
0x1c96   : > { %5138 = vmatprep.subr.bf16.mxu0 %v5442_v4 }
0x1c99   : > { %5139 = vmatpush3.bf16.msra.mxu0 %v5290_v19 }
0x1d4f   : > { %v3879_v36 = vpop.f32.mrb[88].mxu0 }
0x1d50   : > { %v3885_v56 = vadd.f32 %v3879_v36, %v6172_v41  ;;  %v5110_v57 = vpop.f32.mrb[89].mxu0  ;;  %v5281_v41 = vld [vmem:[%s6449_s14 + $0x30] sm:$0xff]  }
0x1d51   : > { %v3882_v58 = vpop.f32.mrb[90].mxu0  ;;  %5117 = vmatpush3.bf16.msra.mxu1 %v5281_v41 }
0x1d52   : > { %v5111_v59 = vpop.f32.mrb[91].mxu0  ;;  %v3888_v60 = vmul.f32 %v3885_v56, %v3885_v56  ;;  %5118 = vmatprep.subr.bf16.mxu1 %v5442_v4 }
0x1d54   : > { %v3889_v61 = vsel %vm597_vm0, %v3888_v60, 0.0 }
0x1d55   : > { %3890 = vadd.xlane.f32.xlu1 %v3889_v61  ;;  %5119 = vmatpush3.bf16.msra.mxu1 %v5282_v63 }
0x1d56   : > { %5144 = vmatprep.subr.bf16.mxu1 %v5442_v4 }
0x1de2   : > { %v3891_v10 = vpop.xlane.xlu1 %3890 }
0x1de3   : > { %v3892_v11 = vmul.f32 0.015625, %v3891_v10 }
0x1de5   : > { %v3893_v12 = vadd.f32 1e-06, %v3892_v11 }
0x1de7   : > { %5369 = vrsqrt.f32 %v3893_v12 }
0x1df1   : > { %v5370_v14 = vpop.eup %5369 }
0x1df2   : > { %v3895_v16 = vmul.f32 %v5370_v14, %v3885_v56 }
0x1df4   : > { %v3902_v17 = vmul.f32 %v4471_v15, %v3895_v16 }
0x1df6   : > { %v3903_v18 = vpack.c.bf16 %v3902_v17, %v3902_v17 }
0x1df8   : > { %5121 = vmatmul.mubr.msk.bf16.vlgmr.msra.gmra.mrb[108].mxu1 %vm597_vm0, %v3903_v18 }
0x1df9   : > { %5152 = vmatprep.mubr.msk.bf16.mxu1 %vm5443_vm1, %v5442_v4  ;;  %5145 = vmatpush3.bf16.msra.mxu1 %v5291_v0 }
0x1dfa   : > { %5146 = vmatprep.subr.bf16.mxu1 %v5442_v4 }
0x1dfd   : > { %5147 = vmatpush3.bf16.msra.mxu1 %v5292_v33 }
0x1dfe   : > { %5148 = vmatprep.subr.bf16.mxu1 %v5442_v4 }
0x1e01   : > { %5149 = vmatpush3.bf16.msra.mxu1 %v5293_v34 }
0x1e02   : > { %5150 = vmatprep.subr.bf16.mxu1 %v5442_v4 }
0x1e05   : > { %5151 = vmatpush3.bf16.msra.mxu1 %v5294_v35 }
0x1ecb   : > { %v3974_v20 = vpop.f32.mrb[108].mxu1 }
0x1ecc   : > { %v3980_v21 = vmax.f32 %v3974_v20, 0.0  ;;  %v5122_v22 = vpop.f32.mrb[109].mxu1 }
0x1ecd   : > { %v3977_v23 = vpop.f32.mrb[110].mxu1 }
0x1ece   : > { %v3981_v24 = vpack.c.bf16 %v3980_v21, %v3980_v21  ;;  %v5123_v5 = vpop.f32.mrb[111].mxu1 }
0x1ed0   : > { %5141 = vmatmul.mubr.bf16.vlgmr.msra.gmra.mrb[92].mxu0 %v3981_v24 }
0x1fa3   : > { %v4081_v25 = vpop.f32.mrb[92].mxu0 }
0x1fa4   : > { %v4087_v27 = vadd.f32 %v4081_v25, %v3885_v56  ;;  %v5142_v28 = vpop.f32.mrb[93].mxu0 }
0x1fa5   : > { %v4084_v29 = vpop.f32.mrb[94].mxu0 }
0x1fa6   : > { %v5143_v30 = vpop.f32.mrb[95].mxu0  ;;  %v4089_v31 = vmul.f32 %v4087_v27, %v4087_v27 }
0x1fa8   : > { %v4090_v32 = vsel %vm597_vm0, %v4089_v31, 0.0 }
0x1fa9   : > { %4091 = vadd.xlane.f32.xlu0 %v4090_v32 }
0x2036   : > { %v4092_v37 = vpop.xlane.xlu0 %4091 }
0x2037   : > { %v4093_v38 = vmul.f32 0.015625, %v4092_v37 }
0x2039   : > { %v4094_v39 = vadd.f32 1e-06, %v4093_v38 }
0x203b   : > { %5371 = vrsqrt.f32 %v4094_v39 }
0x2045   : > { %v5372_v40 = vpop.eup %5371 }
0x2046   : > { %v4096_v43 = vmul.f32 %v5372_v40, %v4087_v27 }
0x2048   : > { %v4103_v44 = vmul.f32 %v4509_v42, %v4096_v43 }
0x204a   : > { %v4104_v45 = vmul.f32 0.03608439, %v4103_v44 }
0x204c   : > { %v4105_v46 = vpack.c.bf16 %v4104_v45, %v4104_v45 }
0x204e   : > { %5153 = vmatmul.mubr.msk.bf16.vlgmr.msra.gmra.mrb[112].mxu1 %vm597_vm0, %v4105_v46 }
0x2121   : > { %v4175_v4 = vpop.f32.mrb[112].mxu1 }
0x2122   : > { %4181 = vst [vmem:[%s579_s16] sm:$0xff] %v4175_v4  ;;  %v5154_v47 = vpop.f32.mrb[113].mxu1 }
0x2123   : > { %v4178_v13 = vpop.f32.mrb[114].mxu1 }
0x2124   : > { %5391 = shalt.err (!%p5388_p3)
}
0x2125   : > { %s5392_s29 = scalar_lea.hbm %s6395_s24, 128  ;;  %s5396_s21 = scalar_lea.hbm %s6504_s23, 256 }
0x2126   : > { %p5393_p4 = scmp.ne.s32.totalorder %s6395_s24, %s5392_s29  ;;  %p5397_p9 = scmp.lt.u32.totalorder %s6395_s24, %s6504_s23 }
0x2127   : > { %p5398_p10 = scmp.lt.u32.totalorder %s5396_s21, %s5392_s29  ;;  %p5400_p12 = scmp.lt.u32.totalorder %s5392_s29, %s6395_s24 }
0x2128   : > { %p5394_p7 = pnand %p5393_p4, %p5584_p5 }
0x2129   : > { %p5399_p11 = por %p5398_p10, %p5397_p9 }
0x212a   : > { %p5395_p8 = pneg %p5394_p7 }
0x212b   : > { %p5401_p13 = por %p5400_p12, %p5399_p11 }
0x212d   : > { %p5402_p0 = pnand %p5401_p13, %p5395_p8 }
0x212f   : > { %5405 = shalt.err (!%p5402_p0)
}
0x2130   : > { %5156 = dma.vmem_to_hbm [thread:$0]  (%p5584_p5), %s6390_s0, 128, %s6395_s24, %s4183_s30   ;;  %v5155_v48 = vpop.f32.mrb[115].mxu1 }
0x2131 PF: > { %s6505_s20 = sld [smem:[#allocation7_spill]]  ;;  %s6506_s1 = sld [smem:[#allocation5_spill]] }
0x2137   : > { %p5162_p1 = scmp.ge.s32.totalorder %s6505_s20, 2  ;;  %s4208_s26 = sand.u32 1, %s6506_s1  }
0x2138   : > { %s4209_s2 = scalar_lea.sflag [#allocation3], %s4208_s26 }
0x2139   : > { %p5159_p2 = pnand %p5162_p1, %p5588_p6 }
0x213b   : > { %5423 = dma.done.wait (!%p5159_p2), %s4209_s2, 128  }
0x213c   : > { %5425 = vsyncadd (!%p5159_p2), %s4209_s2, 4294967168  ;;  %s6508_s30 = sld [smem:[#allocation9_spill]]  ;;  %s6509_s29 = sld [smem:[#allocation6_spill]] }
0x213d   : > { %s6510_s16 = sld [smem:[#allocation10_spill]]  ;;  %s6511_s27 = smov %s5432_s28 }
0x2142   : > { %p28_p3 = scmp.ge.s32.totalorder %s6508_s30, 4   ;;  %s6512_s28 = smov %s6509_s29 }
0x2143   : > { %s6513_s29 = smov %s6510_s16 }
0x2144   :  { %30 = sbr.rel (!%p28_p3) target bundleno = 9 (0x9), region = 143 }
0x214b   :  { %4214 = vsyncpa [#allocation3], 1 }
0x214c   :  { %4216 = vsyncpa [#allocation3 + $0x1], 1 }

</bundles_post_ra>
